<compile_context>
chip_gen: v7x
topology: tpu7x:2x2x1
jax: 0.10.0
libtpu: 0.0.40
codegen_flags: <defaults>
</compile_context>

<pallas_src>
import functools

import numpy as np

import jax
import jax.numpy as jnp
from jax.experimental import pallas as pl
from jax.experimental.pallas import tpu as pltpu


def _pad8(n):
    return ((n + 7) // 8) * 8


# ----------------------------------------------------------------------------
# Static description of the PyTorch UNetHDC(in_c, out_c, stride_=2) layer graph
# ----------------------------------------------------------------------------
def _branch_defs(in_c, out_c):
    ic4, ic8 = in_c // 4, in_c // 8
    oc4, oc8 = out_c // 4, out_c // 8
    # (cin, cout, kh, kw, dilation); first conv of every branch is the 1x1 "head"
    # (ReLU after it), remaining convs are the "tail" (ReLU between, none after last).
    stage1 = (
        ((in_c, ic4, 1, 1, 1), (ic4, in_c - 3 * ic4, 3, 3, 1)),
        ((in_c, ic4, 1, 1, 1), (ic4, ic4, 3, 1, 1), (ic4, ic4, 3, 3, 3)),
        ((in_c, ic4, 1, 1, 1), (ic4, ic4, 1, 3, 1), (ic4, ic4, 3, 3, 3)),
        ((in_c, ic8, 1, 1, 1), (ic8, in_c * 3 // 16, 1, 3, 1),
         (in_c * 3 // 16, ic4, 3, 1, 1), (ic4, ic4, 3, 3, 5)),
    )
    stage2 = (
        ((in_c, oc4, 1, 1, 1), (oc4, out_c - 3 * oc4, 3, 3, 1)),
        ((in_c, oc4, 1, 1, 1), (oc4, oc4, 3, 1, 1), (oc4, oc4, 3, 3, 3)),
        ((in_c, oc4, 1, 1, 1), (oc4, oc4, 1, 3, 1), (oc4, oc4, 3, 3, 3)),
        ((in_c, oc8, 1, 1, 1), (oc8, out_c * 3 // 16, 1, 3, 1),
         (out_c * 3 // 16, oc4, 3, 1, 1), (oc4, oc4, 3, 3, 5)),
    )
    return stage1, stage2


def build_config(in_c, out_c, H, W, Ns, use_roll=True, roll_is_jnp=True):
    """Flattens the layer graph into static per-layer specs usable inside the kernel.

    Channel convention: every activation carries its channels padded up to a multiple
    of 8 sublanes (zero rows); weight columns/rows for padded channels are zero, so
    results are exact and all sublane concats/slices are 8-aligned.
    """
    assert in_c % 8 == 0 and out_c % 8 == 0, "channel counts must be multiples of 8"
    assert H % 2 == 0 and W % 2 == 0
    H2, W2 = H // 2, W // 2
    R1, R2 = H * W, H2 * W2
    NsR1, NsR2 = Ns * R1, Ns * R2

    stage1, stage2 = _branch_defs(in_c, out_c)

    off_reg = ({}, {})                 # per-resolution: (dh, dw) -> mask row index
    widths = (W, W2)
    lanes = (NsR1, NsR2)
    layers = []

    def add_layer(kh, kw, dil, act, cin_p, cout_p, pieces, res):
        taps_ij = tuple((i, j) for i in range(kh) for j in range(kw))
        taps = []
        for (i, j) in taps_ij:
            dh, dw = (i - kh // 2) * dil, (j - kw // 2) * dil
            if dh == 0 and dw == 0:
                taps.append((-1, 0))                          # center tap: no shift/mask
            else:
                midx = off_reg[res].setdefault((dh, dw), len(off_reg[res]))
                taps.append((midx, (dh * widths[res] + dw) % lanes[res]))
        layers.append(dict(act=act, cin_p=cin_p, cout_p=cout_p, kh=kh, kw=kw,
                           taps=tuple(taps), taps_ij=taps_ij, pieces=tuple(pieces)))
        return len(layers) - 1

    def add_stage(branches, res):
        # Fused 1x1 branch-head conv: all four heads read the same input tensor, so
        # their weights are stacked along cout (at 8-aligned row offsets).
        head_couts = [br[0][1] for br in branches]
        head_cin = branches[0][0][0]
        hoffs, pieces, off = [], [], 0
        for hc in head_couts:
            hoffs.append(off)
            pieces.append(dict(cin=head_cin, cout=hc, row_off=off,
                               col_map=tuple(range(head_cin))))
            off += _pad8(hc)
        head = add_layer(1, 1, 1, "relu", _pad8(head_cin), off, pieces, res)
        hslices = tuple((hoffs[b], hoffs[b] + _pad8(head_couts[b])) for b in range(4))
        # Branch tails (ReLU between convs, no activation after the last conv).
        tails, coffs, cperm, coff = [], [], [], 0
        for b, br in enumerate(branches):
            cin_p = _pad8(head_couts[b])
            lidxs = []
            n_tail = len(br) - 1
            for li, (cin, cout, kh, kw, dil) in enumerate(br[1:]):
                act = "relu" if li < n_tail - 1 else None
                piece = dict(cin=cin, cout=cout, row_off=0, col_map=tuple(range(cin)))
                lidxs.append(add_layer(kh, kw, dil, act, cin_p, _pad8(cout),
                                       (piece,), res))
                cin_p = _pad8(cout)
            tails.append(tuple(lidxs))
            coffs.append(coff)
            last_cout = br[-1][1]
            cperm.extend(coff + t for t in range(last_cout))   # real -> padded row
            coff += _pad8(last_cout)
        cslices = tuple((coffs[b], coffs[b] + _pad8(branches[b][-1][1]))
                        for b in range(4))
        return head, hslices, tuple(tails), cslices, coff, tuple(cperm)

    head1, hsl1, tails1, csl1, cat1_p, perm1 = add_stage(stage1, 0)
    # ConvLinear1 + LeakyReLU(0.1): a pure 1x1 pointwise op, so it commutes with the
    # stride-2 subsample and runs at half resolution in the kernel.
    lin1 = add_layer(1, 1, 1, "leaky", cat1_p, _pad8(in_c),
                     (dict(cin=in_c, cout=in_c, row_off=0, col_map=perm1),), 1)
    head2, hsl2, tails2, csl2, cat2_p, perm2 = add_stage(stage2, 1)
    lin2 = add_layer(1, 1, 1, "leaky", cat2_p, _pad8(out_c),
                     (dict(cin=out_c, cout=out_c, row_off=0, col_map=perm2),), 1)

    Cmax = max(s["cout_p"] for s in layers)
    Kraw = max(len(s["taps"]) * s["cin_p"] + 1 for s in layers)
    Kmax = ((Kraw + 127) // 128) * 128          # lane-aligned packed-weight buffer

    return dict(
        layers=tuple(layers),
        head1=head1, hsl1=hsl1, tails1=tails1, csl1=csl1, cat1_p=cat1_p, lin1=lin1,
        head2=head2, hsl2=hsl2, tails2=tails2, csl2=csl2, cat2_p=cat2_p, lin2=lin2,
        in_c=in_c, out_c=out_c, H=H, W=W, H2=H2, W2=W2, R1=R1, R2=R2,
        Ns=Ns, NsR1=NsR1, NsR2=NsR2, Cmax=Cmax, Kmax=Kmax,
        offsets1=tuple(sorted(off_reg[0], key=off_reg[0].get)),
        offsets2=tuple(sorted(off_reg[1], key=off_reg[1].get)),
        use_roll=use_roll, roll_is_jnp=roll_is_jnp,
    )


# ----------------------------------------------------------------------------
# Precomputed constants: border masks (zero padding) and stride-2 selection matrix
# ----------------------------------------------------------------------------
def _build_masks(H, W, offsets):
    R = H * W
    h = np.arange(R) // W
    w = np.arange(R) % W
    rows = []
    for (dh, dw) in offsets:
        valid = (h + dh >= 0) & (h + dh < H) & (w + dw >= 0) & (w + dw < W)
        rows.append(valid.astype(np.float32))
    if not rows:
        rows.append(np.ones((R,), np.float32))
    return np.stack(rows, axis=0)                       # (n_offsets, R)


def _build_subsample(H, W):
    """S with (C, H*W) @ S -> (C, (H//2)*(W//2)) picking even (h, w) positions."""
    H2, W2 = H // 2, W // 2
    S = np.zeros((H * W, H2 * W2), np.float32)
    for h2 in range(H2):
        for w2 in range(W2):
            S[(2 * h2) * W + 2 * w2, h2 * W2 + w2] = 1.0
    return S


def make_params(key, cfg):
    """PyTorch-default uniform init, packed into one padded (L, Cmax, Kmax) buffer
    (bias folded in as the last used weight column of every layer)."""
    layers = cfg["layers"]
    L, Cmax, Kmax = len(layers), cfg["Cmax"], cfg["Kmax"]
    wpack = np.zeros((L, Cmax, Kmax), np.float32)
    n_pieces = sum(len(s["pieces"]) for s in layers)
    keys = jax.random.split(key, 2 * n_pieces)
    ki = 0
    for lidx, spec in enumerate(layers):
        cin_p = spec["cin_p"]
        n_taps = len(spec["taps_ij"])
        for piece in spec["pieces"]:
            cin, cout, r0 = piece["cin"], piece["cout"], piece["row_off"]
            kh, kw = spec["kh"], spec["kw"]
            bound = 1.0 / float(np.sqrt(cin * kh * kw))   # PyTorch Conv2d default init
            wt = np.asarray(jax.random.uniform(
                keys[ki], (cout, cin, kh, kw), jnp.float32, -bound, bound))
            bt = np.asarray(jax.random.uniform(
                keys[ki + 1], (cout,), jnp.float32, -bound, bound))
            ki += 2
            for t, (i, j) in enumerate(spec["taps_ij"]):
                for c, cp in enumerate(piece["col_map"]):
                    wpack[lidx, r0:r0 + cout, t * cin_p + cp] = wt[:, c, i, j]
            wpack[lidx, r0:r0 + cout, n_taps * cin_p] = bt    # bias column
    m1 = np.tile(_build_masks(cfg["H"], cfg["W"], cfg["offsets1"]), (1, cfg["Ns"]))
    m2 = np.tile(_build_masks(cfg["H2"], cfg["W2"], cfg["offsets2"]), (1, cfg["Ns"]))
    sub = np.kron(np.eye(cfg["Ns"], dtype=np.float32),
                  _build_subsample(cfg["H"], cfg["W"]))
    return dict(
        w=jnp.asarray(wpack, jnp.bfloat16),      # bf16 MXU path; f32 accumulation
        masks1=jnp.asarray(m1, jnp.bfloat16),    # 0/1 masks: exact in bf16
        masks2=jnp.asarray(m2, jnp.bfloat16),
        subsel=jnp.asarray(sub, jnp.bfloat16),   # 0/1 stride-2 selection: exact in bf16
    )


# ----------------------------------------------------------------------------
# Fused UNetHDC kernel: one grid step == Ns batch-folded samples, all in VMEM
# ----------------------------------------------------------------------------
def _unet_hdc_kernel(x_ref, w_ref, m1_ref, m2_ref, sub_ref, o_ref,
                     cat1_ref, cat2_ref, *, cfg):
    layers = cfg["layers"]
    use_roll, roll_is_jnp = cfg["use_roll"], cfg["roll_is_jnp"]
    # Hoisted bias rows (bias is folded into the matmul as an extra "ones" K column).
    ones1 = jnp.ones((1, cfg["NsR1"]), jnp.bfloat16)
    ones2 = jnp.ones((1, cfg["NsR2"]), jnp.bfloat16)

    def shift_pixels(a, s):
        # out[:, i] = a[:, (i + s) % L]; wrapped lanes are always border-masked.
        L = a.shape[1]
        if use_roll:
            amt = (L - s) % L if roll_is_jnp else s
            return pltpu.roll(a, amt, 1)
        return jnp.concatenate([a[:, s:], a[:, :s]], axis=1)

    def conv(a, lidx, m_ref, ones_row, out_dtype=jnp.bfloat16):
        spec = layers[lidx]
        assert a.shape[0] == spec["cin_p"]
        blocks = []
        for (midx, s) in spec["taps"]:
            if midx < 0:
                blocks.append(a)                              # center tap
            else:
                blocks.append(shift_pixels(a, s) * m_ref[midx:midx + 1, :])
        blocks.append(ones_row)
        xt = jnp.concatenate(blocks, axis=0)                  # (n_taps*cin_p + 1, R)
        w = w_ref[lidx, :spec["cout_p"], :xt.shape[0]]        # bf16 weights (+bias col)
        y = jnp.dot(w, xt, preferred_element_type=jnp.float32)
        if spec["act"] == "relu":
            y = jnp.maximum(y, 0.0)
        elif spec["act"] == "leaky":
            y = jnp.maximum(y, 0.1 * y)                       # LeakyReLU(0.1)
        return y.astype(out_dtype)

    def run_stage(a, head, hslices, tails, cslices, cat_ref, m_ref, ones_row):
        h = conv(a, head, m_ref, ones_row)                    # fused 4x 1x1 branch heads
        for b in range(4):
            y = h[hslices[b][0]:hslices[b][1], :]
            for lidx in tails[b]:
                y = conv(y, lidx, m_ref, ones_row)
            cat_ref[cslices[b][0]:cslices[b][1], :] = y       # channel concat via scratch

    x = x_ref[...]                                            # (in_c, Ns*R1) bf16
    run_stage(x, cfg["head1"], cfg["hsl1"], cfg["tails1"], cfg["csl1"],
              cat1_ref, m1_ref, ones1)
    # stride-2: the 1x1 ConvLinear1 commutes with the subsample, so subsample once with
    # a 0/1 selection matmul and run everything downstream at half resolution.
    y = jnp.dot(cat1_ref[...], sub_ref[...],
                preferred_element_type=jnp.float32).astype(jnp.bfloat16)
    y = conv(y, cfg["lin1"], m2_ref, ones2)                   # ConvLinear1 + LeakyReLU
    run_stage(y, cfg["head2"], cfg["hsl2"], cfg["tails2"], cfg["csl2"],
              cat2_ref, m2_ref, ones2)
    y = conv(cat2_ref[...], cfg["lin2"], m2_ref, ones2,
             out_dtype=jnp.float32)                           # ConvLinear2 + LeakyReLU
    o_ref[...] = y[:cfg["out_c"], :]


def down_hdc_forward(cfg, params, x_nchw):
    N, C, H, W = x_nchw.shape
    Ns = cfg["Ns"]
    assert C == cfg["in_c"] and H == cfg["H"] and W == cfg["W"] and N % Ns == 0
    steps = N // Ns
    R1, R2 = cfg["R1"], cfg["R2"]
    NsR1, NsR2 = cfg["NsR1"], cfg["NsR2"]
    out_c, H2, W2 = cfg["out_c"], cfg["H2"], cfg["W2"]

    # Fold the batch into the lane (pixel) axis: (steps, C, Ns*H*W); cast to bf16 once.
    x_fold = (x_nchw.reshape(steps, Ns, C, R1).transpose(0, 2, 1, 3)
              .reshape(steps, C, NsR1).astype(jnp.bfloat16))

    L, Cmax, Kmax = params["w"].shape
    M1, M2 = params["masks1"].shape[0], params["masks2"].shape[0]

    out = pl.pallas_call(
        functools.partial(_unet_hdc_kernel, cfg=cfg),
        out_shape=jax.ShapeDtypeStruct((steps, out_c, NsR2), jnp.float32),
        grid=(steps,),
        in_specs=[
            pl.BlockSpec((None, C, NsR1), lambda g: (g, 0, 0)),   # batch-folded input
            pl.BlockSpec((L, Cmax, Kmax), lambda g: (0, 0, 0)),   # packed weights+bias
            pl.BlockSpec((M1, NsR1), lambda g: (0, 0)),           # border masks, full res
            pl.BlockSpec((M2, NsR2), lambda g: (0, 0)),           # border masks, half res
            pl.BlockSpec((NsR1, NsR2), lambda g: (0, 0)),         # stride-2 selection
        ],
        out_specs=pl.BlockSpec((None, out_c, NsR2), lambda g: (g, 0, 0)),
        scratch_shapes=[
            pltpu.VMEM((cfg["cat1_p"], NsR1), jnp.bfloat16),      # stage-1 concat
            pltpu.VMEM((cfg["cat2_p"], NsR2), jnp.bfloat16),      # stage-2 concat
        ],
        compiler_params=pltpu.CompilerParams(
            dimension_semantics=("parallel",),       # v7x: one grid step per TensorCore
            vmem_limit_bytes=32 * 1024 * 1024),
    )(x_fold, params["w"], params["masks1"], params["masks2"], params["subsel"])

    y = (out.reshape(steps, out_c, Ns, R2).transpose(0, 2, 1, 3)
         .reshape(N, out_c, H2, W2))
    # TODO(synk): the two EHDCwoSA(out_channels) blocks of DownHDC are not translatable
    #             (class definition not provided in the reference source); identity here.
    return y


def _probe_roll():
    """Detect availability and sign convention of pltpu.roll with a tiny on-device kernel."""
    try:
        def probe(o_ref):
            x = jax.lax.broadcasted_iota(jnp.float32, (8, 128), 1).astype(jnp.bfloat16)
            o_ref[...] = pltpu.roll(x, 1, 1)
        r = pl.pallas_call(
            probe, out_shape=jax.ShapeDtypeStruct((8, 128), jnp.bfloat16))()
        # jnp.roll convention: out[i] = x[i - shift]  ->  out[0, 0] == 127
        return True, bool(float(jax.device_get(r)[0, 0]) > 64.0)
    except Exception:
        return False, True        # fall back to a concat-of-two-lane-slices shift


# ----------------------------------------------------------------------------
# Demo
# ----------------------------------------------------------------------------
if __name__ == "__main__":
    in_channels, out_channels = 16, 32
    N, H, W = 4, 16, 16
    steps = 2            # v7x: 2 TensorCores -> 2 parallel grid steps; use 1 on v5e/v6e
    Ns = N // steps      # samples folded into the lane axis per grid step

    use_roll, roll_is_jnp = _probe_roll()
    cfg = build_config(in_channels, out_channels, H, W, Ns,
                       use_roll=use_roll, roll_is_jnp=roll_is_jnp)

    key = jax.random.PRNGKey(0)
    kx, kp = jax.random.split(key)
    x = jax.random.normal(kx, (N, in_channels, H, W), jnp.float32)   # NCHW like PyTorch
    params = make_params(kp, cfg)

    fwd = jax.jit(functools.partial(down_hdc_forward, cfg))
    out = jax.block_until_ready(fwd(params, x))

    assert out.shape == (N, out_channels, H // 2, W // 2), out.shape
    assert bool(jnp.all(jnp.isfinite(out)))
    print("KERNEL_OK")
</pallas_src>

<mosaic_0001>
module attributes {stable_mosaic.version = 11 : i64} {
  func.func @_unet_hdc_kernel(%arg0: i32, %arg1: memref<1x16x512xbf16, #tpu.memory_space<vmem>>, %arg2: memref<20x32x128xbf16, #tpu.memory_space<vmem>>, %arg3: memref<24x512xbf16, #tpu.memory_space<vmem>>, %arg4: memref<24x128xbf16, #tpu.memory_space<vmem>>, %arg5: memref<512x128xbf16, #tpu.memory_space<vmem>>, %arg6: memref<1x32x128xf32, #tpu.memory_space<vmem>>, %arg7: memref<32x512xbf16, #tpu.memory_space<vmem>>, %arg8: memref<32x128xbf16, #tpu.memory_space<vmem>>) attributes {dimension_semantics = [#tpu.dimension_semantics<parallel>], iteration_bounds = array<i64: 2>, scalar_prefetch = 0 : i64, scratch_operands = 2 : i64, tpu.core_type = #tpu.core_type<tc>, window_params = [{transform_indices = @transform_0, window_bounds = array<i64: 1, 16, 512>}, {pipeline_mode = #tpu.pipeline_mode<synchronous>, transform_indices = @transform_1, window_bounds = array<i64: 20, 32, 128>}, {pipeline_mode = #tpu.pipeline_mode<synchronous>, transform_indices = @transform_2, window_bounds = array<i64: 24, 512>}, {pipeline_mode = #tpu.pipeline_mode<synchronous>, transform_indices = @transform_3, window_bounds = array<i64: 24, 128>}, {pipeline_mode = #tpu.pipeline_mode<synchronous>, transform_indices = @transform_4, window_bounds = array<i64: 512, 128>}, {transform_indices = @transform_5, window_bounds = array<i64: 1, 32, 128>}]} {
    %cst = arith.constant 1.000000e+00 : bf16
    %0 = vector.broadcast %cst : bf16 to vector<1x512xbf16>
    %cst_0 = arith.constant 1.000000e+00 : bf16
    %1 = vector.broadcast %cst_0 : bf16 to vector<1x128xbf16>
    %c0 = arith.constant 0 : index
    %c0_1 = arith.constant 0 : index
    %c0_2 = arith.constant 0 : index
    %2 = vector.load %arg1[%c0, %c0_1, %c0_2] : memref<1x16x512xbf16, #tpu.memory_space<vmem>>, vector<1x16x512xbf16>
    %3 = vector.shape_cast %2 : vector<1x16x512xbf16> to vector<16x512xbf16>
    %4 = tpu.concatenate %3, %0 in 0 : vector<16x512xbf16>, vector<1x512xbf16> -> vector<17x512xbf16>
    %c0_3 = arith.constant 0 : index
    %c0_4 = arith.constant 0 : index
    %c0_5 = arith.constant 0 : index
    %5 = vector.load %arg2[%c0_3, %c0_4, %c0_5] : memref<20x32x128xbf16, #tpu.memory_space<vmem>>, vector<1x32x17xbf16>
    %6 = vector.shape_cast %5 : vector<1x32x17xbf16> to vector<32x17xbf16>
    %cst_6 = arith.constant dense<0.000000e+00> : vector<32x512xf32>
    %7 = tpu.matmul %6, %4, %cst_6 {dimension_numbers = #tpu.dot_dimension_numbers<[1], [0], [0], [1], [0, 0, 1, 1], [], []>} : vector<32x17xbf16>, vector<17x512xbf16>, vector<32x512xf32> -> vector<32x512xf32>
    %cst_7 = arith.constant 0.000000e+00 : f32
    %8 = vector.broadcast %cst_7 : f32 to vector<32x512xf32>
    %9 = arith.maximumf %7, %8 : vector<32x512xf32>
    %10 = arith.truncf %9 : vector<32x512xf32> to vector<32x512xbf16>
    %11 = vector.extract_strided_slice %10 {offsets = [0, 0], sizes = [8, 512], strides = [1, 1]} : vector<32x512xbf16> to vector<8x512xbf16>
    %12 = vector.extract_strided_slice %11 {offsets = [0, 495], sizes = [8, 17], strides = [1, 1]} : vector<8x512xbf16> to vector<8x17xbf16>
    %13 = vector.extract_strided_slice %11 {offsets = [0, 0], sizes = [8, 495], strides = [1, 1]} : vector<8x512xbf16> to vector<8x495xbf16>
    %14 = tpu.concatenate %12, %13 in 1 : vector<8x17xbf16>, vector<8x495xbf16> -> vector<8x512xbf16>
    %c0_8 = arith.constant 0 : index
    %c0_9 = arith.constant 0 : index
    %15 = vector.load %arg3[%c0_8, %c0_9] : memref<24x512xbf16, #tpu.memory_space<vmem>>, vector<1x512xbf16>
    %16 = vector.broadcast %15 : vector<1x512xbf16> to vector<8x512xbf16>
    %17 = arith.mulf %14, %16 : vector<8x512xbf16>
    %18 = vector.extract_strided_slice %11 {offsets = [0, 496], sizes = [8, 16], strides = [1, 1]} : vector<8x512xbf16> to vector<8x16xbf16>
    %19 = vector.extract_strided_slice %11 {offsets = [0, 0], sizes = [8, 496], strides = [1, 1]} : vector<8x512xbf16> to vector<8x496xbf16>
    %20 = tpu.concatenate %18, %19 in 1 : vector<8x16xbf16>, vector<8x496xbf16> -> vector<8x512xbf16>
    %c1 = arith.constant 1 : index
    %c0_10 = arith.constant 0 : index
    %21 = vector.load %arg3[%c1, %c0_10] : memref<24x512xbf16, #tpu.memory_space<vmem>>, vector<1x512xbf16>
    %22 = vector.broadcast %21 : vector<1x512xbf16> to vector<8x512xbf16>
    %23 = arith.mulf %20, %22 : vector<8x512xbf16>
    %24 = vector.extract_strided_slice %11 {offsets = [0, 497], sizes = [8, 15], strides = [1, 1]} : vector<8x512xbf16> to vector<8x15xbf16>
    %25 = vector.extract_strided_slice %11 {offsets = [0, 0], sizes = [8, 497], strides = [1, 1]} : vector<8x512xbf16> to vector<8x497xbf16>
    %26 = tpu.concatenate %24, %25 in 1 : vector<8x15xbf16>, vector<8x497xbf16> -> vector<8x512xbf16>
    %c2 = arith.constant 2 : index
    %c0_11 = arith.constant 0 : index
    %27 = vector.load %arg3[%c2, %c0_11] : memref<24x512xbf16, #tpu.memory_space<vmem>>, vector<1x512xbf16>
    %28 = vector.broadcast %27 : vector<1x512xbf16> to vector<8x512xbf16>
    %29 = arith.mulf %26, %28 : vector<8x512xbf16>
    %30 = vector.extract_strided_slice %11 {offsets = [0, 511], sizes = [8, 1], strides = [1, 1]} : vector<8x512xbf16> to vector<8x1xbf16>
    %31 = vector.extract_strided_slice %11 {offsets = [0, 0], sizes = [8, 511], strides = [1, 1]} : vector<8x512xbf16> to vector<8x511xbf16>
    %32 = tpu.concatenate %30, %31 in 1 : vector<8x1xbf16>, vector<8x511xbf16> -> vector<8x512xbf16>
    %c3 = arith.constant 3 : index
    %c0_12 = arith.constant 0 : index
    %33 = vector.load %arg3[%c3, %c0_12] : memref<24x512xbf16, #tpu.memory_space<vmem>>, vector<1x512xbf16>
    %34 = vector.broadcast %33 : vector<1x512xbf16> to vector<8x512xbf16>
    %35 = arith.mulf %32, %34 : vector<8x512xbf16>
    %36 = vector.extract_strided_slice %11 {offsets = [0, 1], sizes = [8, 511], strides = [1, 1]} : vector<8x512xbf16> to vector<8x511xbf16>
    %37 = vector.extract_strided_slice %11 {offsets = [0, 0], sizes = [8, 1], strides = [1, 1]} : vector<8x512xbf16> to vector<8x1xbf16>
    %38 = tpu.concatenate %36, %37 in 1 : vector<8x511xbf16>, vector<8x1xbf16> -> vector<8x512xbf16>
    %c4 = arith.constant 4 : index
    %c0_13 = arith.constant 0 : index
    %39 = vector.load %arg3[%c4, %c0_13] : memref<24x512xbf16, #tpu.memory_space<vmem>>, vector<1x512xbf16>
    %40 = vector.broadcast %39 : vector<1x512xbf16> to vector<8x512xbf16>
    %41 = arith.mulf %38, %40 : vector<8x512xbf16>
    %42 = vector.extract_strided_slice %11 {offsets = [0, 15], sizes = [8, 497], strides = [1, 1]} : vector<8x512xbf16> to vector<8x497xbf16>
    %43 = vector.extract_strided_slice %11 {offsets = [0, 0], sizes = [8, 15], strides = [1, 1]} : vector<8x512xbf16> to vector<8x15xbf16>
    %44 = tpu.concatenate %42, %43 in 1 : vector<8x497xbf16>, vector<8x15xbf16> -> vector<8x512xbf16>
    %c5 = arith.constant 5 : index
    %c0_14 = arith.constant 0 : index
    %45 = vector.load %arg3[%c5, %c0_14] : memref<24x512xbf16, #tpu.memory_space<vmem>>, vector<1x512xbf16>
    %46 = vector.broadcast %45 : vector<1x512xbf16> to vector<8x512xbf16>
    %47 = arith.mulf %44, %46 : vector<8x512xbf16>
    %48 = vector.extract_strided_slice %11 {offsets = [0, 16], sizes = [8, 496], strides = [1, 1]} : vector<8x512xbf16> to vector<8x496xbf16>
    %49 = vector.extract_strided_slice %11 {offsets = [0, 0], sizes = [8, 16], strides = [1, 1]} : vector<8x512xbf16> to vector<8x16xbf16>
    %50 = tpu.concatenate %48, %49 in 1 : vector<8x496xbf16>, vector<8x16xbf16> -> vector<8x512xbf16>
    %c6 = arith.constant 6 : index
    %c0_15 = arith.constant 0 : index
    %51 = vector.load %arg3[%c6, %c0_15] : memref<24x512xbf16, #tpu.memory_space<vmem>>, vector<1x512xbf16>
    %52 = vector.broadcast %51 : vector<1x512xbf16> to vector<8x512xbf16>
    %53 = arith.mulf %50, %52 : vector<8x512xbf16>
    %54 = vector.extract_strided_slice %11 {offsets = [0, 17], sizes = [8, 495], strides = [1, 1]} : vector<8x512xbf16> to vector<8x495xbf16>
    %55 = vector.extract_strided_slice %11 {offsets = [0, 0], sizes = [8, 17], strides = [1, 1]} : vector<8x512xbf16> to vector<8x17xbf16>
    %56 = tpu.concatenate %54, %55 in 1 : vector<8x495xbf16>, vector<8x17xbf16> -> vector<8x512xbf16>
    %c7 = arith.constant 7 : index
    %c0_16 = arith.constant 0 : index
    %57 = vector.load %arg3[%c7, %c0_16] : memref<24x512xbf16, #tpu.memory_space<vmem>>, vector<1x512xbf16>
    %58 = vector.broadcast %57 : vector<1x512xbf16> to vector<8x512xbf16>
    %59 = arith.mulf %56, %58 : vector<8x512xbf16>
    %60 = tpu.concatenate %17, %23, %29, %35, %11, %41, %47, %53, %59, %0 in 0 : vector<8x512xbf16>, vector<8x512xbf16>, vector<8x512xbf16>, vector<8x512xbf16>, vector<8x512xbf16>, vector<8x512xbf16>, vector<8x512xbf16>, vector<8x512xbf16>, vector<8x512xbf16>, vector<1x512xbf16> -> vector<73x512xbf16>
    %c1_17 = arith.constant 1 : index
    %c0_18 = arith.constant 0 : index
    %c0_19 = arith.constant 0 : index
    %61 = vector.load %arg2[%c1_17, %c0_18, %c0_19] : memref<20x32x128xbf16, #tpu.memory_space<vmem>>, vector<1x8x73xbf16>
    %62 = vector.shape_cast %61 : vector<1x8x73xbf16> to vector<8x73xbf16>
    %cst_20 = arith.constant dense<0.000000e+00> : vector<8x512xf32>
    %63 = tpu.matmul %62, %60, %cst_20 {dimension_numbers = #tpu.dot_dimension_numbers<[1], [0], [0], [1], [0, 0, 1, 1], [], []>} : vector<8x73xbf16>, vector<73x512xbf16>, vector<8x512xf32> -> vector<8x512xf32>
    %64 = arith.truncf %63 : vector<8x512xf32> to vector<8x512xbf16>
    %c0_21 = arith.constant 0 : index
    %c0_22 = arith.constant 0 : index
    %65 = vector.load %arg7[%c0_21, %c0_22] : memref<32x512xbf16, #tpu.memory_space<vmem>>, vector<8x512xbf16>
    tpu.vector_store %arg7[%c0_21, %c0_22], %64 {strides = array<i32>} : memref<32x512xbf16, #tpu.memory_space<vmem>>, vector<8x512xbf16>,
    %66 = vector.extract_strided_slice %10 {offsets = [8, 0], sizes = [8, 512], strides = [1, 1]} : vector<32x512xbf16> to vector<8x512xbf16>
    %67 = vector.extract_strided_slice %66 {offsets = [0, 496], sizes = [8, 16], strides = [1, 1]} : vector<8x512xbf16> to vector<8x16xbf16>
    %68 = vector.extract_strided_slice %66 {offsets = [0, 0], sizes = [8, 496], strides = [1, 1]} : vector<8x512xbf16> to vector<8x496xbf16>
    %69 = tpu.concatenate %67, %68 in 1 : vector<8x16xbf16>, vector<8x496xbf16> -> vector<8x512xbf16>
    %c1_23 = arith.constant 1 : index
    %c0_24 = arith.constant 0 : index
    %70 = vector.load %arg3[%c1_23, %c0_24] : memref<24x512xbf16, #tpu.memory_space<vmem>>, vector<1x512xbf16>
    %71 = vector.broadcast %70 : vector<1x512xbf16> to vector<8x512xbf16>
    %72 = arith.mulf %69, %71 : vector<8x512xbf16>
    %73 = vector.extract_strided_slice %66 {offsets = [0, 16], sizes = [8, 496], strides = [1, 1]} : vector<8x512xbf16> to vector<8x496xbf16>
    %74 = vector.extract_strided_slice %66 {offsets = [0, 0], sizes = [8, 16], strides = [1, 1]} : vector<8x512xbf16> to vector<8x16xbf16>
    %75 = tpu.concatenate %73, %74 in 1 : vector<8x496xbf16>, vector<8x16xbf16> -> vector<8x512xbf16>
    %c6_25 = arith.constant 6 : index
    %c0_26 = arith.constant 0 : index
    %76 = vector.load %arg3[%c6_25, %c0_26] : memref<24x512xbf16, #tpu.memory_space<vmem>>, vector<1x512xbf16>
    %77 = vector.broadcast %76 : vector<1x512xbf16> to vector<8x512xbf16>
    %78 = arith.mulf %75, %77 : vector<8x512xbf16>
    %79 = tpu.concatenate %72, %66, %78, %0 in 0 : vector<8x512xbf16>, vector<8x512xbf16>, vector<8x512xbf16>, vector<1x512xbf16> -> vector<25x512xbf16>
    %c2_27 = arith.constant 2 : index
    %c0_28 = arith.constant 0 : index
    %c0_29 = arith.constant 0 : index
    %80 = vector.load %arg2[%c2_27, %c0_28, %c0_29] : memref<20x32x128xbf16, #tpu.memory_space<vmem>>, vector<1x8x25xbf16>
    %81 = vector.shape_cast %80 : vector<1x8x25xbf16> to vector<8x25xbf16>
    %cst_30 = arith.constant dense<0.000000e+00> : vector<8x512xf32>
    %82 = tpu.matmul %81, %79, %cst_30 {dimension_numbers = #tpu.dot_dimension_numbers<[1], [0], [0], [1], [0, 0, 1, 1], [], []>} : vector<8x25xbf16>, vector<25x512xbf16>, vector<8x512xf32> -> vector<8x512xf32>
    %cst_31 = arith.constant 0.000000e+00 : f32
    %83 = vector.broadcast %cst_31 : f32 to vector<8x512xf32>
    %84 = arith.maximumf %82, %83 : vector<8x512xf32>
    %85 = arith.truncf %84 : vector<8x512xf32> to vector<8x512xbf16>
    %86 = vector.extract_strided_slice %85 {offsets = [0, 461], sizes = [8, 51], strides = [1, 1]} : vector<8x512xbf16> to vector<8x51xbf16>
    %87 = vector.extract_strided_slice %85 {offsets = [0, 0], sizes = [8, 461], strides = [1, 1]} : vector<8x512xbf16> to vector<8x461xbf16>
    %88 = tpu.concatenate %86, %87 in 1 : vector<8x51xbf16>, vector<8x461xbf16> -> vector<8x512xbf16>
    %c8 = arith.constant 8 : index
    %c0_32 = arith.constant 0 : index
    %89 = vector.load %arg3[%c8, %c0_32] : memref<24x512xbf16, #tpu.memory_space<vmem>>, vector<1x512xbf16>
    %90 = vector.broadcast %89 : vector<1x512xbf16> to vector<8x512xbf16>
    %91 = arith.mulf %88, %90 : vector<8x512xbf16>
    %92 = vector.extract_strided_slice %85 {offsets = [0, 464], sizes = [8, 48], strides = [1, 1]} : vector<8x512xbf16> to vector<8x48xbf16>
    %93 = vector.extract_strided_slice %85 {offsets = [0, 0], sizes = [8, 464], strides = [1, 1]} : vector<8x512xbf16> to vector<8x464xbf16>
    %94 = tpu.concatenate %92, %93 in 1 : vector<8x48xbf16>, vector<8x464xbf16> -> vector<8x512xbf16>
    %c9 = arith.constant 9 : index
    %c0_33 = arith.constant 0 : index
    %95 = vector.load %arg3[%c9, %c0_33] : memref<24x512xbf16, #tpu.memory_space<vmem>>, vector<1x512xbf16>
    %96 = vector.broadcast %95 : vector<1x512xbf16> to vector<8x512xbf16>
    %97 = arith.mulf %94, %96 : vector<8x512xbf16>
    %98 = vector.extract_strided_slice %85 {offsets = [0, 467], sizes = [8, 45], strides = [1, 1]} : vector<8x512xbf16> to vector<8x45xbf16>
    %99 = vector.extract_strided_slice %85 {offsets = [0, 0], sizes = [8, 467], strides = [1, 1]} : vector<8x512xbf16> to vector<8x467xbf16>
    %100 = tpu.concatenate %98, %99 in 1 : vector<8x45xbf16>, vector<8x467xbf16> -> vector<8x512xbf16>
    %c10 = arith.constant 10 : index
    %c0_34 = arith.constant 0 : index
    %101 = vector.load %arg3[%c10, %c0_34] : memref<24x512xbf16, #tpu.memory_space<vmem>>, vector<1x512xbf16>
    %102 = vector.broadcast %101 : vector<1x512xbf16> to vector<8x512xbf16>
    %103 = arith.mulf %100, %102 : vector<8x512xbf16>
    %104 = vector.extract_strided_slice %85 {offsets = [0, 509], sizes = [8, 3], strides = [1, 1]} : vector<8x512xbf16> to vector<8x3xbf16>
    %105 = vector.extract_strided_slice %85 {offsets = [0, 0], sizes = [8, 509], strides = [1, 1]} : vector<8x512xbf16> to vector<8x509xbf16>
    %106 = tpu.concatenate %104, %105 in 1 : vector<8x3xbf16>, vector<8x509xbf16> -> vector<8x512xbf16>
    %c11 = arith.constant 11 : index
    %c0_35 = arith.constant 0 : index
    %107 = vector.load %arg3[%c11, %c0_35] : memref<24x512xbf16, #tpu.memory_space<vmem>>, vector<1x512xbf16>
    %108 = vector.broadcast %107 : vector<1x512xbf16> to vector<8x512xbf16>
    %109 = arith.mulf %106, %108 : vector<8x512xbf16>
    %110 = vector.extract_strided_slice %85 {offsets = [0, 3], sizes = [8, 509], strides = [1, 1]} : vector<8x512xbf16> to vector<8x509xbf16>
    %111 = vector.extract_strided_slice %85 {offsets = [0, 0], sizes = [8, 3], strides = [1, 1]} : vector<8x512xbf16> to vector<8x3xbf16>
    %112 = tpu.concatenate %110, %111 in 1 : vector<8x509xbf16>, vector<8x3xbf16> -> vector<8x512xbf16>
    %c12 = arith.constant 12 : index
    %c0_36 = arith.constant 0 : index
    %113 = vector.load %arg3[%c12, %c0_36] : memref<24x512xbf16, #tpu.memory_space<vmem>>, vector<1x512xbf16>
    %114 = vector.broadcast %113 : vector<1x512xbf16> to vector<8x512xbf16>
    %115 = arith.mulf %112, %114 : vector<8x512xbf16>
    %116 = vector.extract_strided_slice %85 {offsets = [0, 45], sizes = [8, 467], strides = [1, 1]} : vector<8x512xbf16> to vector<8x467xbf16>
    %117 = vector.extract_strided_slice %85 {offsets = [0, 0], sizes = [8, 45], strides = [1, 1]} : vector<8x512xbf16> to vector<8x45xbf16>
    %118 = tpu.concatenate %116, %117 in 1 : vector<8x467xbf16>, vector<8x45xbf16> -> vector<8x512xbf16>
    %c13 = arith.constant 13 : index
    %c0_37 = arith.constant 0 : index
    %119 = vector.load %arg3[%c13, %c0_37] : memref<24x512xbf16, #tpu.memory_space<vmem>>, vector<1x512xbf16>
    %120 = vector.broadcast %119 : vector<1x512xbf16> to vector<8x512xbf16>
    %121 = arith.mulf %118, %120 : vector<8x512xbf16>
    %122 = vector.extract_strided_slice %85 {offsets = [0, 48], sizes = [8, 464], strides = [1, 1]} : vector<8x512xbf16> to vector<8x464xbf16>
    %123 = vector.extract_strided_slice %85 {offsets = [0, 0], sizes = [8, 48], strides = [1, 1]} : vector<8x512xbf16> to vector<8x48xbf16>
    %124 = tpu.concatenate %122, %123 in 1 : vector<8x464xbf16>, vector<8x48xbf16> -> vector<8x512xbf16>
    %c14 = arith.constant 14 : index
    %c0_38 = arith.constant 0 : index
    %125 = vector.load %arg3[%c14, %c0_38] : memref<24x512xbf16, #tpu.memory_space<vmem>>, vector<1x512xbf16>
    %126 = vector.broadcast %125 : vector<1x512xbf16> to vector<8x512xbf16>
    %127 = arith.mulf %124, %126 : vector<8x512xbf16>
    %128 = vector.extract_strided_slice %85 {offsets = [0, 51], sizes = [8, 461], strides = [1, 1]} : vector<8x512xbf16> to vector<8x461xbf16>
    %129 = vector.extract_strided_slice %85 {offsets = [0, 0], sizes = [8, 51], strides = [1, 1]} : vector<8x512xbf16> to vector<8x51xbf16>
    %130 = tpu.concatenate %128, %129 in 1 : vector<8x461xbf16>, vector<8x51xbf16> -> vector<8x512xbf16>
    %c15 = arith.constant 15 : index
    %c0_39 = arith.constant 0 : index
    %131 = vector.load %arg3[%c15, %c0_39] : memref<24x512xbf16, #tpu.memory_space<vmem>>, vector<1x512xbf16>
    %132 = vector.broadcast %131 : vector<1x512xbf16> to vector<8x512xbf16>
    %133 = arith.mulf %130, %132 : vector<8x512xbf16>
    %134 = tpu.concatenate %91, %97, %103, %109, %85, %115, %121, %127, %133, %0 in 0 : vector<8x512xbf16>, vector<8x512xbf16>, vector<8x512xbf16>, vector<8x512xbf16>, vector<8x512xbf16>, vector<8x512xbf16>, vector<8x512xbf16>, vector<8x512xbf16>, vector<8x512xbf16>, vector<1x512xbf16> -> vector<73x512xbf16>
    %c3_40 = arith.constant 3 : index
    %c0_41 = arith.constant 0 : index
    %c0_42 = arith.constant 0 : index
    %135 = vector.load %arg2[%c3_40, %c0_41, %c0_42] : memref<20x32x128xbf16, #tpu.memory_space<vmem>>, vector<1x8x73xbf16>
    %136 = vector.shape_cast %135 : vector<1x8x73xbf16> to vector<8x73xbf16>
    %cst_43 = arith.constant dense<0.000000e+00> : vector<8x512xf32>
    %137 = tpu.matmul %136, %134, %cst_43 {dimension_numbers = #tpu.dot_dimension_numbers<[1], [0], [0], [1], [0, 0, 1, 1], [], []>} : vector<8x73xbf16>, vector<73x512xbf16>, vector<8x512xf32> -> vector<8x512xf32>
    %138 = arith.truncf %137 : vector<8x512xf32> to vector<8x512xbf16>
    %c8_44 = arith.constant 8 : index
    %c0_45 = arith.constant 0 : index
    %139 = vector.load %arg7[%c8_44, %c0_45] : memref<32x512xbf16, #tpu.memory_space<vmem>>, vector<8x512xbf16>
    tpu.vector_store %arg7[%c8_44, %c0_45], %138 {strides = array<i32>} : memref<32x512xbf16, #tpu.memory_space<vmem>>, vector<8x512xbf16>,
    %140 = vector.extract_strided_slice %10 {offsets = [16, 0], sizes = [8, 512], strides = [1, 1]} : vector<32x512xbf16> to vector<8x512xbf16>
    %141 = vector.extract_strided_slice %140 {offsets = [0, 511], sizes = [8, 1], strides = [1, 1]} : vector<8x512xbf16> to vector<8x1xbf16>
    %142 = vector.extract_strided_slice %140 {offsets = [0, 0], sizes = [8, 511], strides = [1, 1]} : vector<8x512xbf16> to vector<8x511xbf16>
    %143 = tpu.concatenate %141, %142 in 1 : vector<8x1xbf16>, vector<8x511xbf16> -> vector<8x512xbf16>
    %c3_46 = arith.constant 3 : index
    %c0_47 = arith.constant 0 : index
    %144 = vector.load %arg3[%c3_46, %c0_47] : memref<24x512xbf16, #tpu.memory_space<vmem>>, vector<1x512xbf16>
    %145 = vector.broadcast %144 : vector<1x512xbf16> to vector<8x512xbf16>
    %146 = arith.mulf %143, %145 : vector<8x512xbf16>
    %147 = vector.extract_strided_slice %140 {offsets = [0, 1], sizes = [8, 511], strides = [1, 1]} : vector<8x512xbf16> to vector<8x511xbf16>
    %148 = vector.extract_strided_slice %140 {offsets = [0, 0], sizes = [8, 1], strides = [1, 1]} : vector<8x512xbf16> to vector<8x1xbf16>
    %149 = tpu.concatenate %147, %148 in 1 : vector<8x511xbf16>, vector<8x1xbf16> -> vector<8x512xbf16>
    %c4_48 = arith.constant 4 : index
    %c0_49 = arith.constant 0 : index
    %150 = vector.load %arg3[%c4_48, %c0_49] : memref<24x512xbf16, #tpu.memory_space<vmem>>, vector<1x512xbf16>
    %151 = vector.broadcast %150 : vector<1x512xbf16> to vector<8x512xbf16>
    %152 = arith.mulf %149, %151 : vector<8x512xbf16>
    %153 = tpu.concatenate %146, %140, %152, %0 in 0 : vector<8x512xbf16>, vector<8x512xbf16>, vector<8x512xbf16>, vector<1x512xbf16> -> vector<25x512xbf16>
    %c4_50 = arith.constant 4 : index
    %c0_51 = arith.constant 0 : index
    %c0_52 = arith.constant 0 : index
    %154 = vector.load %arg2[%c4_50, %c0_51, %c0_52] : memref<20x32x128xbf16, #tpu.memory_space<vmem>>, vector<1x8x25xbf16>
    %155 = vector.shape_cast %154 : vector<1x8x25xbf16> to vector<8x25xbf16>
    %cst_53 = arith.constant dense<0.000000e+00> : vector<8x512xf32>
    %156 = tpu.matmul %155, %153, %cst_53 {dimension_numbers = #tpu.dot_dimension_numbers<[1], [0], [0], [1], [0, 0, 1, 1], [], []>} : vector<8x25xbf16>, vector<25x512xbf16>, vector<8x512xf32> -> vector<8x512xf32>
    %cst_54 = arith.constant 0.000000e+00 : f32
    %157 = vector.broadcast %cst_54 : f32 to vector<8x512xf32>
    %158 = arith.maximumf %156, %157 : vector<8x512xf32>
    %159 = arith.truncf %158 : vector<8x512xf32> to vector<8x512xbf16>
    %160 = vector.extract_strided_slice %159 {offsets = [0, 461], sizes = [8, 51], strides = [1, 1]} : vector<8x512xbf16> to vector<8x51xbf16>
    %161 = vector.extract_strided_slice %159 {offsets = [0, 0], sizes = [8, 461], strides = [1, 1]} : vector<8x512xbf16> to vector<8x461xbf16>
    %162 = tpu.concatenate %160, %161 in 1 : vector<8x51xbf16>, vector<8x461xbf16> -> vector<8x512xbf16>
    %c8_55 = arith.constant 8 : index
    %c0_56 = arith.constant 0 : index
    %163 = vector.load %arg3[%c8_55, %c0_56] : memref<24x512xbf16, #tpu.memory_space<vmem>>, vector<1x512xbf16>
    %164 = vector.broadcast %163 : vector<1x512xbf16> to vector<8x512xbf16>
    %165 = arith.mulf %162, %164 : vector<8x512xbf16>
    %166 = vector.extract_strided_slice %159 {offsets = [0, 464], sizes = [8, 48], strides = [1, 1]} : vector<8x512xbf16> to vector<8x48xbf16>
    %167 = vector.extract_strided_slice %159 {offsets = [0, 0], sizes = [8, 464], strides = [1, 1]} : vector<8x512xbf16> to vector<8x464xbf16>
    %168 = tpu.concatenate %166, %167 in 1 : vector<8x48xbf16>, vector<8x464xbf16> -> vector<8x512xbf16>
    %c9_57 = arith.constant 9 : index
    %c0_58 = arith.constant 0 : index
    %169 = vector.load %arg3[%c9_57, %c0_58] : memref<24x512xbf16, #tpu.memory_space<vmem>>, vector<1x512xbf16>
    %170 = vector.broadcast %169 : vector<1x512xbf16> to vector<8x512xbf16>
    %171 = arith.mulf %168, %170 : vector<8x512xbf16>
    %172 = vector.extract_strided_slice %159 {offsets = [0, 467], sizes = [8, 45], strides = [1, 1]} : vector<8x512xbf16> to vector<8x45xbf16>
    %173 = vector.extract_strided_slice %159 {offsets = [0, 0], sizes = [8, 467], strides = [1, 1]} : vector<8x512xbf16> to vector<8x467xbf16>
    %174 = tpu.concatenate %172, %173 in 1 : vector<8x45xbf16>, vector<8x467xbf16> -> vector<8x512xbf16>
    %c10_59 = arith.constant 10 : index
    %c0_60 = arith.constant 0 : index
    %175 = vector.load %arg3[%c10_59, %c0_60] : memref<24x512xbf16, #tpu.memory_space<vmem>>, vector<1x512xbf16>
    %176 = vector.broadcast %175 : vector<1x512xbf16> to vector<8x512xbf16>
    %177 = arith.mulf %174, %176 : vector<8x512xbf16>
    %178 = vector.extract_strided_slice %159 {offsets = [0, 509], sizes = [8, 3], strides = [1, 1]} : vector<8x512xbf16> to vector<8x3xbf16>
    %179 = vector.extract_strided_slice %159 {offsets = [0, 0], sizes = [8, 509], strides = [1, 1]} : vector<8x512xbf16> to vector<8x509xbf16>
    %180 = tpu.concatenate %178, %179 in 1 : vector<8x3xbf16>, vector<8x509xbf16> -> vector<8x512xbf16>
    %c11_61 = arith.constant 11 : index
    %c0_62 = arith.constant 0 : index
    %181 = vector.load %arg3[%c11_61, %c0_62] : memref<24x512xbf16, #tpu.memory_space<vmem>>, vector<1x512xbf16>
    %182 = vector.broadcast %181 : vector<1x512xbf16> to vector<8x512xbf16>
    %183 = arith.mulf %180, %182 : vector<8x512xbf16>
    %184 = vector.extract_strided_slice %159 {offsets = [0, 3], sizes = [8, 509], strides = [1, 1]} : vector<8x512xbf16> to vector<8x509xbf16>
    %185 = vector.extract_strided_slice %159 {offsets = [0, 0], sizes = [8, 3], strides = [1, 1]} : vector<8x512xbf16> to vector<8x3xbf16>
    %186 = tpu.concatenate %184, %185 in 1 : vector<8x509xbf16>, vector<8x3xbf16> -> vector<8x512xbf16>
    %c12_63 = arith.constant 12 : index
    %c0_64 = arith.constant 0 : index
    %187 = vector.load %arg3[%c12_63, %c0_64] : memref<24x512xbf16, #tpu.memory_space<vmem>>, vector<1x512xbf16>
    %188 = vector.broadcast %187 : vector<1x512xbf16> to vector<8x512xbf16>
    %189 = arith.mulf %186, %188 : vector<8x512xbf16>
    %190 = vector.extract_strided_slice %159 {offsets = [0, 45], sizes = [8, 467], strides = [1, 1]} : vector<8x512xbf16> to vector<8x467xbf16>
    %191 = vector.extract_strided_slice %159 {offsets = [0, 0], sizes = [8, 45], strides = [1, 1]} : vector<8x512xbf16> to vector<8x45xbf16>
    %192 = tpu.concatenate %190, %191 in 1 : vector<8x467xbf16>, vector<8x45xbf16> -> vector<8x512xbf16>
    %c13_65 = arith.constant 13 : index
    %c0_66 = arith.constant 0 : index
    %193 = vector.load %arg3[%c13_65, %c0_66] : memref<24x512xbf16, #tpu.memory_space<vmem>>, vector<1x512xbf16>
    %194 = vector.broadcast %193 : vector<1x512xbf16> to vector<8x512xbf16>
    %195 = arith.mulf %192, %194 : vector<8x512xbf16>
    %196 = vector.extract_strided_slice %159 {offsets = [0, 48], sizes = [8, 464], strides = [1, 1]} : vector<8x512xbf16> to vector<8x464xbf16>
    %197 = vector.extract_strided_slice %159 {offsets = [0, 0], sizes = [8, 48], strides = [1, 1]} : vector<8x512xbf16> to vector<8x48xbf16>
    %198 = tpu.concatenate %196, %197 in 1 : vector<8x464xbf16>, vector<8x48xbf16> -> vector<8x512xbf16>
    %c14_67 = arith.constant 14 : index
    %c0_68 = arith.constant 0 : index
    %199 = vector.load %arg3[%c14_67, %c0_68] : memref<24x512xbf16, #tpu.memory_space<vmem>>, vector<1x512xbf16>
    %200 = vector.broadcast %199 : vector<1x512xbf16> to vector<8x512xbf16>
    %201 = arith.mulf %198, %200 : vector<8x512xbf16>
    %202 = vector.extract_strided_slice %159 {offsets = [0, 51], sizes = [8, 461], strides = [1, 1]} : vector<8x512xbf16> to vector<8x461xbf16>
    %203 = vector.extract_strided_slice %159 {offsets = [0, 0], sizes = [8, 51], strides = [1, 1]} : vector<8x512xbf16> to vector<8x51xbf16>
    %204 = tpu.concatenate %202, %203 in 1 : vector<8x461xbf16>, vector<8x51xbf16> -> vector<8x512xbf16>
    %c15_69 = arith.constant 15 : index
    %c0_70 = arith.constant 0 : index
    %205 = vector.load %arg3[%c15_69, %c0_70] : memref<24x512xbf16, #tpu.memory_space<vmem>>, vector<1x512xbf16>
    %206 = vector.broadcast %205 : vector<1x512xbf16> to vector<8x512xbf16>
    %207 = arith.mulf %204, %206 : vector<8x512xbf16>
    %208 = tpu.concatenate %165, %171, %177, %183, %159, %189, %195, %201, %207, %0 in 0 : vector<8x512xbf16>, vector<8x512xbf16>, vector<8x512xbf16>, vector<8x512xbf16>, vector<8x512xbf16>, vector<8x512xbf16>, vector<8x512xbf16>, vector<8x512xbf16>, vector<8x512xbf16>, vector<1x512xbf16> -> vector<73x512xbf16>
    %c5_71 = arith.constant 5 : index
    %c0_72 = arith.constant 0 : index
    %c0_73 = arith.constant 0 : index
    %209 = vector.load %arg2[%c5_71, %c0_72, %c0_73] : memref<20x32x128xbf16, #tpu.memory_space<vmem>>, vector<1x8x73xbf16>
    %210 = vector.shape_cast %209 : vector<1x8x73xbf16> to vector<8x73xbf16>
    %cst_74 = arith.constant dense<0.000000e+00> : vector<8x512xf32>
    %211 = tpu.matmul %210, %208, %cst_74 {dimension_numbers = #tpu.dot_dimension_numbers<[1], [0], [0], [1], [0, 0, 1, 1], [], []>} : vector<8x73xbf16>, vector<73x512xbf16>, vector<8x512xf32> -> vector<8x512xf32>
    %212 = arith.truncf %211 : vector<8x512xf32> to vector<8x512xbf16>
    %c16 = arith.constant 16 : index
    %c0_75 = arith.constant 0 : index
    %213 = vector.load %arg7[%c16, %c0_75] : memref<32x512xbf16, #tpu.memory_space<vmem>>, vector<8x512xbf16>
    tpu.vector_store %arg7[%c16, %c0_75], %212 {strides = array<i32>} : memref<32x512xbf16, #tpu.memory_space<vmem>>, vector<8x512xbf16>,
    %214 = vector.extract_strided_slice %10 {offsets = [24, 0], sizes = [8, 512], strides = [1, 1]} : vector<32x512xbf16> to vector<8x512xbf16>
    %215 = vector.extract_strided_slice %214 {offsets = [0, 511], sizes = [8, 1], strides = [1, 1]} : vector<8x512xbf16> to vector<8x1xbf16>
    %216 = vector.extract_strided_slice %214 {offsets = [0, 0], sizes = [8, 511], strides = [1, 1]} : vector<8x512xbf16> to vector<8x511xbf16>
    %217 = tpu.concatenate %215, %216 in 1 : vector<8x1xbf16>, vector<8x511xbf16> -> vector<8x512xbf16>
    %c3_76 = arith.constant 3 : index
    %c0_77 = arith.constant 0 : index
    %218 = vector.load %arg3[%c3_76, %c0_77] : memref<24x512xbf16, #tpu.memory_space<vmem>>, vector<1x512xbf16>
    %219 = vector.broadcast %218 : vector<1x512xbf16> to vector<8x512xbf16>
    %220 = arith.mulf %217, %219 : vector<8x512xbf16>
    %221 = vector.extract_strided_slice %214 {offsets = [0, 1], sizes = [8, 511], strides = [1, 1]} : vector<8x512xbf16> to vector<8x511xbf16>
    %222 = vector.extract_strided_slice %214 {offsets = [0, 0], sizes = [8, 1], strides = [1, 1]} : vector<8x512xbf16> to vector<8x1xbf16>
    %223 = tpu.concatenate %221, %222 in 1 : vector<8x511xbf16>, vector<8x1xbf16> -> vector<8x512xbf16>
    %c4_78 = arith.constant 4 : index
    %c0_79 = arith.constant 0 : index
    %224 = vector.load %arg3[%c4_78, %c0_79] : memref<24x512xbf16, #tpu.memory_space<vmem>>, vector<1x512xbf16>
    %225 = vector.broadcast %224 : vector<1x512xbf16> to vector<8x512xbf16>
    %226 = arith.mulf %223, %225 : vector<8x512xbf16>
    %227 = tpu.concatenate %220, %214, %226, %0 in 0 : vector<8x512xbf16>, vector<8x512xbf16>, vector<8x512xbf16>, vector<1x512xbf16> -> vector<25x512xbf16>
    %c6_80 = arith.constant 6 : index
    %c0_81 = arith.constant 0 : index
    %c0_82 = arith.constant 0 : index
    %228 = vector.load %arg2[%c6_80, %c0_81, %c0_82] : memref<20x32x128xbf16, #tpu.memory_space<vmem>>, vector<1x8x25xbf16>
    %229 = vector.shape_cast %228 : vector<1x8x25xbf16> to vector<8x25xbf16>
    %cst_83 = arith.constant dense<0.000000e+00> : vector<8x512xf32>
    %230 = tpu.matmul %229, %227, %cst_83 {dimension_numbers = #tpu.dot_dimension_numbers<[1], [0], [0], [1], [0, 0, 1, 1], [], []>} : vector<8x25xbf16>, vector<25x512xbf16>, vector<8x512xf32> -> vector<8x512xf32>
    %cst_84 = arith.constant 0.000000e+00 : f32
    %231 = vector.broadcast %cst_84 : f32 to vector<8x512xf32>
    %232 = arith.maximumf %230, %231 : vector<8x512xf32>
    %233 = arith.truncf %232 : vector<8x512xf32> to vector<8x512xbf16>
    %234 = vector.extract_strided_slice %233 {offsets = [0, 496], sizes = [8, 16], strides = [1, 1]} : vector<8x512xbf16> to vector<8x16xbf16>
    %235 = vector.extract_strided_slice %233 {offsets = [0, 0], sizes = [8, 496], strides = [1, 1]} : vector<8x512xbf16> to vector<8x496xbf16>
    %236 = tpu.concatenate %234, %235 in 1 : vector<8x16xbf16>, vector<8x496xbf16> -> vector<8x512xbf16>
    %c1_85 = arith.constant 1 : index
    %c0_86 = arith.constant 0 : index
    %237 = vector.load %arg3[%c1_85, %c0_86] : memref<24x512xbf16, #tpu.memory_space<vmem>>, vector<1x512xbf16>
    %238 = vector.broadcast %237 : vector<1x512xbf16> to vector<8x512xbf16>
    %239 = arith.mulf %236, %238 : vector<8x512xbf16>
    %240 = vector.extract_strided_slice %233 {offsets = [0, 16], sizes = [8, 496], strides = [1, 1]} : vector<8x512xbf16> to vector<8x496xbf16>
    %241 = vector.extract_strided_slice %233 {offsets = [0, 0], sizes = [8, 16], strides = [1, 1]} : vector<8x512xbf16> to vector<8x16xbf16>
    %242 = tpu.concatenate %240, %241 in 1 : vector<8x496xbf16>, vector<8x16xbf16> -> vector<8x512xbf16>
    %c6_87 = arith.constant 6 : index
    %c0_88 = arith.constant 0 : index
    %243 = vector.load %arg3[%c6_87, %c0_88] : memref<24x512xbf16, #tpu.memory_space<vmem>>, vector<1x512xbf16>
    %244 = vector.broadcast %243 : vector<1x512xbf16> to vector<8x512xbf16>
    %245 = arith.mulf %242, %244 : vector<8x512xbf16>
    %246 = tpu.concatenate %239, %233, %245, %0 in 0 : vector<8x512xbf16>, vector<8x512xbf16>, vector<8x512xbf16>, vector<1x512xbf16> -> vector<25x512xbf16>
    %c7_89 = arith.constant 7 : index
    %c0_90 = arith.constant 0 : index
    %c0_91 = arith.constant 0 : index
    %247 = vector.load %arg2[%c7_89, %c0_90, %c0_91] : memref<20x32x128xbf16, #tpu.memory_space<vmem>>, vector<1x8x25xbf16>
    %248 = vector.shape_cast %247 : vector<1x8x25xbf16> to vector<8x25xbf16>
    %cst_92 = arith.constant dense<0.000000e+00> : vector<8x512xf32>
    %249 = tpu.matmul %248, %246, %cst_92 {dimension_numbers = #tpu.dot_dimension_numbers<[1], [0], [0], [1], [0, 0, 1, 1], [], []>} : vector<8x25xbf16>, vector<25x512xbf16>, vector<8x512xf32> -> vector<8x512xf32>
    %cst_93 = arith.constant 0.000000e+00 : f32
    %250 = vector.broadcast %cst_93 : f32 to vector<8x512xf32>
    %251 = arith.maximumf %249, %250 : vector<8x512xf32>
    %252 = arith.truncf %251 : vector<8x512xf32> to vector<8x512xbf16>
    %253 = vector.extract_strided_slice %252 {offsets = [0, 427], sizes = [8, 85], strides = [1, 1]} : vector<8x512xbf16> to vector<8x85xbf16>
    %254 = vector.extract_strided_slice %252 {offsets = [0, 0], sizes = [8, 427], strides = [1, 1]} : vector<8x512xbf16> to vector<8x427xbf16>
    %255 = tpu.concatenate %253, %254 in 1 : vector<8x85xbf16>, vector<8x427xbf16> -> vector<8x512xbf16>
    %c16_94 = arith.constant 16 : index
    %c0_95 = arith.constant 0 : index
    %256 = vector.load %arg3[%c16_94, %c0_95] : memref<24x512xbf16, #tpu.memory_space<vmem>>, vector<1x512xbf16>
    %257 = vector.broadcast %256 : vector<1x512xbf16> to vector<8x512xbf16>
    %258 = arith.mulf %255, %257 : vector<8x512xbf16>
    %259 = vector.extract_strided_slice %252 {offsets = [0, 432], sizes = [8, 80], strides = [1, 1]} : vector<8x512xbf16> to vector<8x80xbf16>
    %260 = vector.extract_strided_slice %252 {offsets = [0, 0], sizes = [8, 432], strides = [1, 1]} : vector<8x512xbf16> to vector<8x432xbf16>
    %261 = tpu.concatenate %259, %260 in 1 : vector<8x80xbf16>, vector<8x432xbf16> -> vector<8x512xbf16>
    %c17 = arith.constant 17 : index
    %c0_96 = arith.constant 0 : index
    %262 = vector.load %arg3[%c17, %c0_96] : memref<24x512xbf16, #tpu.memory_space<vmem>>, vector<1x512xbf16>
    %263 = vector.broadcast %262 : vector<1x512xbf16> to vector<8x512xbf16>
    %264 = arith.mulf %261, %263 : vector<8x512xbf16>
    %265 = vector.extract_strided_slice %252 {offsets = [0, 437], sizes = [8, 75], strides = [1, 1]} : vector<8x512xbf16> to vector<8x75xbf16>
    %266 = vector.extract_strided_slice %252 {offsets = [0, 0], sizes = [8, 437], strides = [1, 1]} : vector<8x512xbf16> to vector<8x437xbf16>
    %267 = tpu.concatenate %265, %266 in 1 : vector<8x75xbf16>, vector<8x437xbf16> -> vector<8x512xbf16>
    %c18 = arith.constant 18 : index
    %c0_97 = arith.constant 0 : index
    %268 = vector.load %arg3[%c18, %c0_97] : memref<24x512xbf16, #tpu.memory_space<vmem>>, vector<1x512xbf16>
    %269 = vector.broadcast %268 : vector<1x512xbf16> to vector<8x512xbf16>
    %270 = arith.mulf %267, %269 : vector<8x512xbf16>
    %271 = vector.extract_strided_slice %252 {offsets = [0, 507], sizes = [8, 5], strides = [1, 1]} : vector<8x512xbf16> to vector<8x5xbf16>
    %272 = vector.extract_strided_slice %252 {offsets = [0, 0], sizes = [8, 507], strides = [1, 1]} : vector<8x512xbf16> to vector<8x507xbf16>
    %273 = tpu.concatenate %271, %272 in 1 : vector<8x5xbf16>, vector<8x507xbf16> -> vector<8x512xbf16>
    %c19 = arith.constant 19 : index
    %c0_98 = arith.constant 0 : index
    %274 = vector.load %arg3[%c19, %c0_98] : memref<24x512xbf16, #tpu.memory_space<vmem>>, vector<1x512xbf16>
    %275 = vector.broadcast %274 : vector<1x512xbf16> to vector<8x512xbf16>
    %276 = arith.mulf %273, %275 : vector<8x512xbf16>
    %277 = vector.extract_strided_slice %252 {offsets = [0, 5], sizes = [8, 507], strides = [1, 1]} : vector<8x512xbf16> to vector<8x507xbf16>
    %278 = vector.extract_strided_slice %252 {offsets = [0, 0], sizes = [8, 5], strides = [1, 1]} : vector<8x512xbf16> to vector<8x5xbf16>
    %279 = tpu.concatenate %277, %278 in 1 : vector<8x507xbf16>, vector<8x5xbf16> -> vector<8x512xbf16>
    %c20 = arith.constant 20 : index
    %c0_99 = arith.constant 0 : index
    %280 = vector.load %arg3[%c20, %c0_99] : memref<24x512xbf16, #tpu.memory_space<vmem>>, vector<1x512xbf16>
    %281 = vector.broadcast %280 : vector<1x512xbf16> to vector<8x512xbf16>
    %282 = arith.mulf %279, %281 : vector<8x512xbf16>
    %283 = vector.extract_strided_slice %252 {offsets = [0, 75], sizes = [8, 437], strides = [1, 1]} : vector<8x512xbf16> to vector<8x437xbf16>
    %284 = vector.extract_strided_slice %252 {offsets = [0, 0], sizes = [8, 75], strides = [1, 1]} : vector<8x512xbf16> to vector<8x75xbf16>
    %285 = tpu.concatenate %283, %284 in 1 : vector<8x437xbf16>, vector<8x75xbf16> -> vector<8x512xbf16>
    %c21 = arith.constant 21 : index
    %c0_100 = arith.constant 0 : index
    %286 = vector.load %arg3[%c21, %c0_100] : memref<24x512xbf16, #tpu.memory_space<vmem>>, vector<1x512xbf16>
    %287 = vector.broadcast %286 : vector<1x512xbf16> to vector<8x512xbf16>
    %288 = arith.mulf %285, %287 : vector<8x512xbf16>
    %289 = vector.extract_strided_slice %252 {offsets = [0, 80], sizes = [8, 432], strides = [1, 1]} : vector<8x512xbf16> to vector<8x432xbf16>
    %290 = vector.extract_strided_slice %252 {offsets = [0, 0], sizes = [8, 80], strides = [1, 1]} : vector<8x512xbf16> to vector<8x80xbf16>
    %291 = tpu.concatenate %289, %290 in 1 : vector<8x432xbf16>, vector<8x80xbf16> -> vector<8x512xbf16>
    %c22 = arith.constant 22 : index
    %c0_101 = arith.constant 0 : index
    %292 = vector.load %arg3[%c22, %c0_101] : memref<24x512xbf16, #tpu.memory_space<vmem>>, vector<1x512xbf16>
    %293 = vector.broadcast %292 : vector<1x512xbf16> to vector<8x512xbf16>
    %294 = arith.mulf %291, %293 : vector<8x512xbf16>
    %295 = vector.extract_strided_slice %252 {offsets = [0, 85], sizes = [8, 427], strides = [1, 1]} : vector<8x512xbf16> to vector<8x427xbf16>
    %296 = vector.extract_strided_slice %252 {offsets = [0, 0], sizes = [8, 85], strides = [1, 1]} : vector<8x512xbf16> to vector<8x85xbf16>
    %297 = tpu.concatenate %295, %296 in 1 : vector<8x427xbf16>, vector<8x85xbf16> -> vector<8x512xbf16>
    %c23 = arith.constant 23 : index
    %c0_102 = arith.constant 0 : index
    %298 = vector.load %arg3[%c23, %c0_102] : memref<24x512xbf16, #tpu.memory_space<vmem>>, vector<1x512xbf16>
    %299 = vector.broadcast %298 : vector<1x512xbf16> to vector<8x512xbf16>
    %300 = arith.mulf %297, %299 : vector<8x512xbf16>
    %301 = tpu.concatenate %258, %264, %270, %276, %252, %282, %288, %294, %300, %0 in 0 : vector<8x512xbf16>, vector<8x512xbf16>, vector<8x512xbf16>, vector<8x512xbf16>, vector<8x512xbf16>, vector<8x512xbf16>, vector<8x512xbf16>, vector<8x512xbf16>, vector<8x512xbf16>, vector<1x512xbf16> -> vector<73x512xbf16>
    %c8_103 = arith.constant 8 : index
    %c0_104 = arith.constant 0 : index
    %c0_105 = arith.constant 0 : index
    %302 = vector.load %arg2[%c8_103, %c0_104, %c0_105] : memref<20x32x128xbf16, #tpu.memory_space<vmem>>, vector<1x8x73xbf16>
    %303 = vector.shape_cast %302 : vector<1x8x73xbf16> to vector<8x73xbf16>
    %cst_106 = arith.constant dense<0.000000e+00> : vector<8x512xf32>
    %304 = tpu.matmul %303, %301, %cst_106 {dimension_numbers = #tpu.dot_dimension_numbers<[1], [0], [0], [1], [0, 0, 1, 1], [], []>} : vector<8x73xbf16>, vector<73x512xbf16>, vector<8x512xf32> -> vector<8x512xf32>
    %305 = arith.truncf %304 : vector<8x512xf32> to vector<8x512xbf16>
    %c24 = arith.constant 24 : index
    %c0_107 = arith.constant 0 : index
    %306 = vector.load %arg7[%c24, %c0_107] : memref<32x512xbf16, #tpu.memory_space<vmem>>, vector<8x512xbf16>
    tpu.vector_store %arg7[%c24, %c0_107], %305 {strides = array<i32>} : memref<32x512xbf16, #tpu.memory_space<vmem>>, vector<8x512xbf16>,
    %c0_108 = arith.constant 0 : index
    %c0_109 = arith.constant 0 : index
    %307 = vector.load %arg7[%c0_108, %c0_109] : memref<32x512xbf16, #tpu.memory_space<vmem>>, vector<32x512xbf16>
    %c0_110 = arith.constant 0 : index
    %c0_111 = arith.constant 0 : index
    %308 = vector.load %arg5[%c0_110, %c0_111] : memref<512x128xbf16, #tpu.memory_space<vmem>>, vector<512x128xbf16>
    %cst_112 = arith.constant dense<0.000000e+00> : vector<32x128xf32>
    %309 = tpu.matmul %307, %308, %cst_112 {dimension_numbers = #tpu.dot_dimension_numbers<[1], [0], [0], [1], [0, 0, 1, 1], [], []>} : vector<32x512xbf16>, vector<512x128xbf16>, vector<32x128xf32> -> vector<32x128xf32>
    %310 = arith.truncf %309 : vector<32x128xf32> to vector<32x128xbf16>
    %311 = tpu.concatenate %310, %1 in 0 : vector<32x128xbf16>, vector<1x128xbf16> -> vector<33x128xbf16>
    %c9_113 = arith.constant 9 : index
    %c0_114 = arith.constant 0 : index
    %c0_115 = arith.constant 0 : index
    %312 = vector.load %arg2[%c9_113, %c0_114, %c0_115] : memref<20x32x128xbf16, #tpu.memory_space<vmem>>, vector<1x16x33xbf16>
    %313 = vector.shape_cast %312 : vector<1x16x33xbf16> to vector<16x33xbf16>
    %cst_116 = arith.constant dense<0.000000e+00> : vector<16x128xf32>
    %314 = tpu.matmul %313, %311, %cst_116 {dimension_numbers = #tpu.dot_dimension_numbers<[1], [0], [0], [1], [0, 0, 1, 1], [], []>} : vector<16x33xbf16>, vector<33x128xbf16>, vector<16x128xf32> -> vector<16x128xf32>
    %cst_117 = arith.constant 1.000000e-01 : f32
    %315 = vector.broadcast %cst_117 : f32 to vector<16x128xf32>
    %316 = arith.mulf %315, %314 : vector<16x128xf32>
    %317 = arith.maximumf %314, %316 : vector<16x128xf32>
    %318 = arith.truncf %317 : vector<16x128xf32> to vector<16x128xbf16>
    %319 = tpu.concatenate %318, %1 in 0 : vector<16x128xbf16>, vector<1x128xbf16> -> vector<17x128xbf16>
    %c10_118 = arith.constant 10 : index
    %c0_119 = arith.constant 0 : index
    %c0_120 = arith.constant 0 : index
    %320 = vector.load %arg2[%c10_118, %c0_119, %c0_120] : memref<20x32x128xbf16, #tpu.memory_space<vmem>>, vector<1x32x17xbf16>
    %321 = vector.shape_cast %320 : vector<1x32x17xbf16> to vector<32x17xbf16>
    %cst_121 = arith.constant dense<0.000000e+00> : vector<32x128xf32>
    %322 = tpu.matmul %321, %319, %cst_121 {dimension_numbers = #tpu.dot_dimension_numbers<[1], [0], [0], [1], [0, 0, 1, 1], [], []>} : vector<32x17xbf16>, vector<17x128xbf16>, vector<32x128xf32> -> vector<32x128xf32>
    %cst_122 = arith.constant 0.000000e+00 : f32
    %323 = vector.broadcast %cst_122 : f32 to vector<32x128xf32>
    %324 = arith.maximumf %322, %323 : vector<32x128xf32>
    %325 = arith.truncf %324 : vector<32x128xf32> to vector<32x128xbf16>
    %326 = vector.extract_strided_slice %325 {offsets = [0, 0], sizes = [8, 128], strides = [1, 1]} : vector<32x128xbf16> to vector<8x128xbf16>
    %327 = vector.extract_strided_slice %326 {offsets = [0, 119], sizes = [8, 9], strides = [1, 1]} : vector<8x128xbf16> to vector<8x9xbf16>
    %328 = vector.extract_strided_slice %326 {offsets = [0, 0], sizes = [8, 119], strides = [1, 1]} : vector<8x128xbf16> to vector<8x119xbf16>
    %329 = tpu.concatenate %327, %328 in 1 : vector<8x9xbf16>, vector<8x119xbf16> -> vector<8x128xbf16>
    %c0_123 = arith.constant 0 : index
    %c0_124 = arith.constant 0 : index
    %330 = vector.load %arg4[%c0_123, %c0_124] : memref<24x128xbf16, #tpu.memory_space<vmem>>, vector<1x128xbf16>
    %331 = vector.broadcast %330 : vector<1x128xbf16> to vector<8x128xbf16>
    %332 = arith.mulf %329, %331 : vector<8x128xbf16>
    %333 = vector.extract_strided_slice %326 {offsets = [0, 120], sizes = [8, 8], strides = [1, 1]} : vector<8x128xbf16> to vector<8x8xbf16>
    %334 = vector.extract_strided_slice %326 {offsets = [0, 0], sizes = [8, 120], strides = [1, 1]} : vector<8x128xbf16> to vector<8x120xbf16>
    %335 = tpu.concatenate %333, %334 in 1 : vector<8x8xbf16>, vector<8x120xbf16> -> vector<8x128xbf16>
    %c1_125 = arith.constant 1 : index
    %c0_126 = arith.constant 0 : index
    %336 = vector.load %arg4[%c1_125, %c0_126] : memref<24x128xbf16, #tpu.memory_space<vmem>>, vector<1x128xbf16>
    %337 = vector.broadcast %336 : vector<1x128xbf16> to vector<8x128xbf16>
    %338 = arith.mulf %335, %337 : vector<8x128xbf16>
    %339 = vector.extract_strided_slice %326 {offsets = [0, 121], sizes = [8, 7], strides = [1, 1]} : vector<8x128xbf16> to vector<8x7xbf16>
    %340 = vector.extract_strided_slice %326 {offsets = [0, 0], sizes = [8, 121], strides = [1, 1]} : vector<8x128xbf16> to vector<8x121xbf16>
    %341 = tpu.concatenate %339, %340 in 1 : vector<8x7xbf16>, vector<8x121xbf16> -> vector<8x128xbf16>
    %c2_127 = arith.constant 2 : index
    %c0_128 = arith.constant 0 : index
    %342 = vector.load %arg4[%c2_127, %c0_128] : memref<24x128xbf16, #tpu.memory_space<vmem>>, vector<1x128xbf16>
    %343 = vector.broadcast %342 : vector<1x128xbf16> to vector<8x128xbf16>
    %344 = arith.mulf %341, %343 : vector<8x128xbf16>
    %345 = vector.extract_strided_slice %326 {offsets = [0, 127], sizes = [8, 1], strides = [1, 1]} : vector<8x128xbf16> to vector<8x1xbf16>
    %346 = vector.extract_strided_slice %326 {offsets = [0, 0], sizes = [8, 127], strides = [1, 1]} : vector<8x128xbf16> to vector<8x127xbf16>
    %347 = tpu.concatenate %345, %346 in 1 : vector<8x1xbf16>, vector<8x127xbf16> -> vector<8x128xbf16>
    %c3_129 = arith.constant 3 : index
    %c0_130 = arith.constant 0 : index
    %348 = vector.load %arg4[%c3_129, %c0_130] : memref<24x128xbf16, #tpu.memory_space<vmem>>, vector<1x128xbf16>
    %349 = vector.broadcast %348 : vector<1x128xbf16> to vector<8x128xbf16>
    %350 = arith.mulf %347, %349 : vector<8x128xbf16>
    %351 = vector.extract_strided_slice %326 {offsets = [0, 1], sizes = [8, 127], strides = [1, 1]} : vector<8x128xbf16> to vector<8x127xbf16>
    %352 = vector.extract_strided_slice %326 {offsets = [0, 0], sizes = [8, 1], strides = [1, 1]} : vector<8x128xbf16> to vector<8x1xbf16>
    %353 = tpu.concatenate %351, %352 in 1 : vector<8x127xbf16>, vector<8x1xbf16> -> vector<8x128xbf16>
    %c4_131 = arith.constant 4 : index
    %c0_132 = arith.constant 0 : index
    %354 = vector.load %arg4[%c4_131, %c0_132] : memref<24x128xbf16, #tpu.memory_space<vmem>>, vector<1x128xbf16>
    %355 = vector.broadcast %354 : vector<1x128xbf16> to vector<8x128xbf16>
    %356 = arith.mulf %353, %355 : vector<8x128xbf16>
    %357 = vector.extract_strided_slice %326 {offsets = [0, 7], sizes = [8, 121], strides = [1, 1]} : vector<8x128xbf16> to vector<8x121xbf16>
    %358 = vector.extract_strided_slice %326 {offsets = [0, 0], sizes = [8, 7], strides = [1, 1]} : vector<8x128xbf16> to vector<8x7xbf16>
    %359 = tpu.concatenate %357, %358 in 1 : vector<8x121xbf16>, vector<8x7xbf16> -> vector<8x128xbf16>
    %c5_133 = arith.constant 5 : index
    %c0_134 = arith.constant 0 : index
    %360 = vector.load %arg4[%c5_133, %c0_134] : memref<24x128xbf16, #tpu.memory_space<vmem>>, vector<1x128xbf16>
    %361 = vector.broadcast %360 : vector<1x128xbf16> to vector<8x128xbf16>
    %362 = arith.mulf %359, %361 : vector<8x128xbf16>
    %363 = vector.extract_strided_slice %326 {offsets = [0, 8], sizes = [8, 120], strides = [1, 1]} : vector<8x128xbf16> to vector<8x120xbf16>
    %364 = vector.extract_strided_slice %326 {offsets = [0, 0], sizes = [8, 8], strides = [1, 1]} : vector<8x128xbf16> to vector<8x8xbf16>
    %365 = tpu.concatenate %363, %364 in 1 : vector<8x120xbf16>, vector<8x8xbf16> -> vector<8x128xbf16>
    %c6_135 = arith.constant 6 : index
    %c0_136 = arith.constant 0 : index
    %366 = vector.load %arg4[%c6_135, %c0_136] : memref<24x128xbf16, #tpu.memory_space<vmem>>, vector<1x128xbf16>
    %367 = vector.broadcast %366 : vector<1x128xbf16> to vector<8x128xbf16>
    %368 = arith.mulf %365, %367 : vector<8x128xbf16>
    %369 = vector.extract_strided_slice %326 {offsets = [0, 9], sizes = [8, 119], strides = [1, 1]} : vector<8x128xbf16> to vector<8x119xbf16>
    %370 = vector.extract_strided_slice %326 {offsets = [0, 0], sizes = [8, 9], strides = [1, 1]} : vector<8x128xbf16> to vector<8x9xbf16>
    %371 = tpu.concatenate %369, %370 in 1 : vector<8x119xbf16>, vector<8x9xbf16> -> vector<8x128xbf16>
    %c7_137 = arith.constant 7 : index
    %c0_138 = arith.constant 0 : index
    %372 = vector.load %arg4[%c7_137, %c0_138] : memref<24x128xbf16, #tpu.memory_space<vmem>>, vector<1x128xbf16>
    %373 = vector.broadcast %372 : vector<1x128xbf16> to vector<8x128xbf16>
    %374 = arith.mulf %371, %373 : vector<8x128xbf16>
    %375 = tpu.concatenate %332, %338, %344, %350, %326, %356, %362, %368, %374, %1 in 0 : vector<8x128xbf16>, vector<8x128xbf16>, vector<8x128xbf16>, vector<8x128xbf16>, vector<8x128xbf16>, vector<8x128xbf16>, vector<8x128xbf16>, vector<8x128xbf16>, vector<8x128xbf16>, vector<1x128xbf16> -> vector<73x128xbf16>
    %c11_139 = arith.constant 11 : index
    %c0_140 = arith.constant 0 : index
    %c0_141 = arith.constant 0 : index
    %376 = vector.load %arg2[%c11_139, %c0_140, %c0_141] : memref<20x32x128xbf16, #tpu.memory_space<vmem>>, vector<1x8x73xbf16>
    %377 = vector.shape_cast %376 : vector<1x8x73xbf16> to vector<8x73xbf16>
    %cst_142 = arith.constant dense<0.000000e+00> : vector<8x128xf32>
    %378 = tpu.matmul %377, %375, %cst_142 {dimension_numbers = #tpu.dot_dimension_numbers<[1], [0], [0], [1], [0, 0, 1, 1], [], []>} : vector<8x73xbf16>, vector<73x128xbf16>, vector<8x128xf32> -> vector<8x128xf32>
    %379 = arith.truncf %378 : vector<8x128xf32> to vector<8x128xbf16>
    %c0_143 = arith.constant 0 : index
    %c0_144 = arith.constant 0 : index
    %380 = vector.load %arg8[%c0_143, %c0_144] : memref<32x128xbf16, #tpu.memory_space<vmem>>, vector<8x128xbf16>
    tpu.vector_store %arg8[%c0_143, %c0_144], %379 {strides = array<i32>} : memref<32x128xbf16, #tpu.memory_space<vmem>>, vector<8x128xbf16>,
    %381 = vector.extract_strided_slice %325 {offsets = [8, 0], sizes = [8, 128], strides = [1, 1]} : vector<32x128xbf16> to vector<8x128xbf16>
    %382 = vector.extract_strided_slice %381 {offsets = [0, 120], sizes = [8, 8], strides = [1, 1]} : vector<8x128xbf16> to vector<8x8xbf16>
    %383 = vector.extract_strided_slice %381 {offsets = [0, 0], sizes = [8, 120], strides = [1, 1]} : vector<8x128xbf16> to vector<8x120xbf16>
    %384 = tpu.concatenate %382, %383 in 1 : vector<8x8xbf16>, vector<8x120xbf16> -> vector<8x128xbf16>
    %c1_145 = arith.constant 1 : index
    %c0_146 = arith.constant 0 : index
    %385 = vector.load %arg4[%c1_145, %c0_146] : memref<24x128xbf16, #tpu.memory_space<vmem>>, vector<1x128xbf16>
    %386 = vector.broadcast %385 : vector<1x128xbf16> to vector<8x128xbf16>
    %387 = arith.mulf %384, %386 : vector<8x128xbf16>
    %388 = vector.extract_strided_slice %381 {offsets = [0, 8], sizes = [8, 120], strides = [1, 1]} : vector<8x128xbf16> to vector<8x120xbf16>
    %389 = vector.extract_strided_slice %381 {offsets = [0, 0], sizes = [8, 8], strides = [1, 1]} : vector<8x128xbf16> to vector<8x8xbf16>
    %390 = tpu.concatenate %388, %389 in 1 : vector<8x120xbf16>, vector<8x8xbf16> -> vector<8x128xbf16>
    %c6_147 = arith.constant 6 : index
    %c0_148 = arith.constant 0 : index
    %391 = vector.load %arg4[%c6_147, %c0_148] : memref<24x128xbf16, #tpu.memory_space<vmem>>, vector<1x128xbf16>
    %392 = vector.broadcast %391 : vector<1x128xbf16> to vector<8x128xbf16>
    %393 = arith.mulf %390, %392 : vector<8x128xbf16>
    %394 = tpu.concatenate %387, %381, %393, %1 in 0 : vector<8x128xbf16>, vector<8x128xbf16>, vector<8x128xbf16>, vector<1x128xbf16> -> vector<25x128xbf16>
    %c12_149 = arith.constant 12 : index
    %c0_150 = arith.constant 0 : index
    %c0_151 = arith.constant 0 : index
    %395 = vector.load %arg2[%c12_149, %c0_150, %c0_151] : memref<20x32x128xbf16, #tpu.memory_space<vmem>>, vector<1x8x25xbf16>
    %396 = vector.shape_cast %395 : vector<1x8x25xbf16> to vector<8x25xbf16>
    %cst_152 = arith.constant dense<0.000000e+00> : vector<8x128xf32>
    %397 = tpu.matmul %396, %394, %cst_152 {dimension_numbers = #tpu.dot_dimension_numbers<[1], [0], [0], [1], [0, 0, 1, 1], [], []>} : vector<8x25xbf16>, vector<25x128xbf16>, vector<8x128xf32> -> vector<8x128xf32>
    %cst_153 = arith.constant 0.000000e+00 : f32
    %398 = vector.broadcast %cst_153 : f32 to vector<8x128xf32>
    %399 = arith.maximumf %397, %398 : vector<8x128xf32>
    %400 = arith.truncf %399 : vector<8x128xf32> to vector<8x128xbf16>
    %401 = vector.extract_strided_slice %400 {offsets = [0, 101], sizes = [8, 27], strides = [1, 1]} : vector<8x128xbf16> to vector<8x27xbf16>
    %402 = vector.extract_strided_slice %400 {offsets = [0, 0], sizes = [8, 101], strides = [1, 1]} : vector<8x128xbf16> to vector<8x101xbf16>
    %403 = tpu.concatenate %401, %402 in 1 : vector<8x27xbf16>, vector<8x101xbf16> -> vector<8x128xbf16>
    %c8_154 = arith.constant 8 : index
    %c0_155 = arith.constant 0 : index
    %404 = vector.load %arg4[%c8_154, %c0_155] : memref<24x128xbf16, #tpu.memory_space<vmem>>, vector<1x128xbf16>
    %405 = vector.broadcast %404 : vector<1x128xbf16> to vector<8x128xbf16>
    %406 = arith.mulf %403, %405 : vector<8x128xbf16>
    %407 = vector.extract_strided_slice %400 {offsets = [0, 104], sizes = [8, 24], strides = [1, 1]} : vector<8x128xbf16> to vector<8x24xbf16>
    %408 = vector.extract_strided_slice %400 {offsets = [0, 0], sizes = [8, 104], strides = [1, 1]} : vector<8x128xbf16> to vector<8x104xbf16>
    %409 = tpu.concatenate %407, %408 in 1 : vector<8x24xbf16>, vector<8x104xbf16> -> vector<8x128xbf16>
    %c9_156 = arith.constant 9 : index
    %c0_157 = arith.constant 0 : index
    %410 = vector.load %arg4[%c9_156, %c0_157] : memref<24x128xbf16, #tpu.memory_space<vmem>>, vector<1x128xbf16>
    %411 = vector.broadcast %410 : vector<1x128xbf16> to vector<8x128xbf16>
    %412 = arith.mulf %409, %411 : vector<8x128xbf16>
    %413 = vector.extract_strided_slice %400 {offsets = [0, 107], sizes = [8, 21], strides = [1, 1]} : vector<8x128xbf16> to vector<8x21xbf16>
    %414 = vector.extract_strided_slice %400 {offsets = [0, 0], sizes = [8, 107], strides = [1, 1]} : vector<8x128xbf16> to vector<8x107xbf16>
    %415 = tpu.concatenate %413, %414 in 1 : vector<8x21xbf16>, vector<8x107xbf16> -> vector<8x128xbf16>
    %c10_158 = arith.constant 10 : index
    %c0_159 = arith.constant 0 : index
    %416 = vector.load %arg4[%c10_158, %c0_159] : memref<24x128xbf16, #tpu.memory_space<vmem>>, vector<1x128xbf16>
    %417 = vector.broadcast %416 : vector<1x128xbf16> to vector<8x128xbf16>
    %418 = arith.mulf %415, %417 : vector<8x128xbf16>
    %419 = vector.extract_strided_slice %400 {offsets = [0, 125], sizes = [8, 3], strides = [1, 1]} : vector<8x128xbf16> to vector<8x3xbf16>
    %420 = vector.extract_strided_slice %400 {offsets = [0, 0], sizes = [8, 125], strides = [1, 1]} : vector<8x128xbf16> to vector<8x125xbf16>
    %421 = tpu.concatenate %419, %420 in 1 : vector<8x3xbf16>, vector<8x125xbf16> -> vector<8x128xbf16>
    %c11_160 = arith.constant 11 : index
    %c0_161 = arith.constant 0 : index
    %422 = vector.load %arg4[%c11_160, %c0_161] : memref<24x128xbf16, #tpu.memory_space<vmem>>, vector<1x128xbf16>
    %423 = vector.broadcast %422 : vector<1x128xbf16> to vector<8x128xbf16>
    %424 = arith.mulf %421, %423 : vector<8x128xbf16>
    %425 = vector.extract_strided_slice %400 {offsets = [0, 3], sizes = [8, 125], strides = [1, 1]} : vector<8x128xbf16> to vector<8x125xbf16>
    %426 = vector.extract_strided_slice %400 {offsets = [0, 0], sizes = [8, 3], strides = [1, 1]} : vector<8x128xbf16> to vector<8x3xbf16>
    %427 = tpu.concatenate %425, %426 in 1 : vector<8x125xbf16>, vector<8x3xbf16> -> vector<8x128xbf16>
    %c12_162 = arith.constant 12 : index
    %c0_163 = arith.constant 0 : index
    %428 = vector.load %arg4[%c12_162, %c0_163] : memref<24x128xbf16, #tpu.memory_space<vmem>>, vector<1x128xbf16>
    %429 = vector.broadcast %428 : vector<1x128xbf16> to vector<8x128xbf16>
    %430 = arith.mulf %427, %429 : vector<8x128xbf16>
    %431 = vector.extract_strided_slice %400 {offsets = [0, 21], sizes = [8, 107], strides = [1, 1]} : vector<8x128xbf16> to vector<8x107xbf16>
    %432 = vector.extract_strided_slice %400 {offsets = [0, 0], sizes = [8, 21], strides = [1, 1]} : vector<8x128xbf16> to vector<8x21xbf16>
    %433 = tpu.concatenate %431, %432 in 1 : vector<8x107xbf16>, vector<8x21xbf16> -> vector<8x128xbf16>
    %c13_164 = arith.constant 13 : index
    %c0_165 = arith.constant 0 : index
    %434 = vector.load %arg4[%c13_164, %c0_165] : memref<24x128xbf16, #tpu.memory_space<vmem>>, vector<1x128xbf16>
    %435 = vector.broadcast %434 : vector<1x128xbf16> to vector<8x128xbf16>
    %436 = arith.mulf %433, %435 : vector<8x128xbf16>
    %437 = vector.extract_strided_slice %400 {offsets = [0, 24], sizes = [8, 104], strides = [1, 1]} : vector<8x128xbf16> to vector<8x104xbf16>
    %438 = vector.extract_strided_slice %400 {offsets = [0, 0], sizes = [8, 24], strides = [1, 1]} : vector<8x128xbf16> to vector<8x24xbf16>
    %439 = tpu.concatenate %437, %438 in 1 : vector<8x104xbf16>, vector<8x24xbf16> -> vector<8x128xbf16>
    %c14_166 = arith.constant 14 : index
    %c0_167 = arith.constant 0 : index
    %440 = vector.load %arg4[%c14_166, %c0_167] : memref<24x128xbf16, #tpu.memory_space<vmem>>, vector<1x128xbf16>
    %441 = vector.broadcast %440 : vector<1x128xbf16> to vector<8x128xbf16>
    %442 = arith.mulf %439, %441 : vector<8x128xbf16>
    %443 = vector.extract_strided_slice %400 {offsets = [0, 27], sizes = [8, 101], strides = [1, 1]} : vector<8x128xbf16> to vector<8x101xbf16>
    %444 = vector.extract_strided_slice %400 {offsets = [0, 0], sizes = [8, 27], strides = [1, 1]} : vector<8x128xbf16> to vector<8x27xbf16>
    %445 = tpu.concatenate %443, %444 in 1 : vector<8x101xbf16>, vector<8x27xbf16> -> vector<8x128xbf16>
    %c15_168 = arith.constant 15 : index
    %c0_169 = arith.constant 0 : index
    %446 = vector.load %arg4[%c15_168, %c0_169] : memref<24x128xbf16, #tpu.memory_space<vmem>>, vector<1x128xbf16>
    %447 = vector.broadcast %446 : vector<1x128xbf16> to vector<8x128xbf16>
    %448 = arith.mulf %445, %447 : vector<8x128xbf16>
    %449 = tpu.concatenate %406, %412, %418, %424, %400, %430, %436, %442, %448, %1 in 0 : vector<8x128xbf16>, vector<8x128xbf16>, vector<8x128xbf16>, vector<8x128xbf16>, vector<8x128xbf16>, vector<8x128xbf16>, vector<8x128xbf16>, vector<8x128xbf16>, vector<8x128xbf16>, vector<1x128xbf16> -> vector<73x128xbf16>
    %c13_170 = arith.constant 13 : index
    %c0_171 = arith.constant 0 : index
    %c0_172 = arith.constant 0 : index
    %450 = vector.load %arg2[%c13_170, %c0_171, %c0_172] : memref<20x32x128xbf16, #tpu.memory_space<vmem>>, vector<1x8x73xbf16>
    %451 = vector.shape_cast %450 : vector<1x8x73xbf16> to vector<8x73xbf16>
    %cst_173 = arith.constant dense<0.000000e+00> : vector<8x128xf32>
    %452 = tpu.matmul %451, %449, %cst_173 {dimension_numbers = #tpu.dot_dimension_numbers<[1], [0], [0], [1], [0, 0, 1, 1], [], []>} : vector<8x73xbf16>, vector<73x128xbf16>, vector<8x128xf32> -> vector<8x128xf32>
    %453 = arith.truncf %452 : vector<8x128xf32> to vector<8x128xbf16>
    %c8_174 = arith.constant 8 : index
    %c0_175 = arith.constant 0 : index
    %454 = vector.load %arg8[%c8_174, %c0_175] : memref<32x128xbf16, #tpu.memory_space<vmem>>, vector<8x128xbf16>
    tpu.vector_store %arg8[%c8_174, %c0_175], %453 {strides = array<i32>} : memref<32x128xbf16, #tpu.memory_space<vmem>>, vector<8x128xbf16>,
    %455 = vector.extract_strided_slice %325 {offsets = [16, 0], sizes = [8, 128], strides = [1, 1]} : vector<32x128xbf16> to vector<8x128xbf16>
    %456 = vector.extract_strided_slice %455 {offsets = [0, 127], sizes = [8, 1], strides = [1, 1]} : vector<8x128xbf16> to vector<8x1xbf16>
    %457 = vector.extract_strided_slice %455 {offsets = [0, 0], sizes = [8, 127], strides = [1, 1]} : vector<8x128xbf16> to vector<8x127xbf16>
    %458 = tpu.concatenate %456, %457 in 1 : vector<8x1xbf16>, vector<8x127xbf16> -> vector<8x128xbf16>
    %c3_176 = arith.constant 3 : index
    %c0_177 = arith.constant 0 : index
    %459 = vector.load %arg4[%c3_176, %c0_177] : memref<24x128xbf16, #tpu.memory_space<vmem>>, vector<1x128xbf16>
    %460 = vector.broadcast %459 : vector<1x128xbf16> to vector<8x128xbf16>
    %461 = arith.mulf %458, %460 : vector<8x128xbf16>
    %462 = vector.extract_strided_slice %455 {offsets = [0, 1], sizes = [8, 127], strides = [1, 1]} : vector<8x128xbf16> to vector<8x127xbf16>
    %463 = vector.extract_strided_slice %455 {offsets = [0, 0], sizes = [8, 1], strides = [1, 1]} : vector<8x128xbf16> to vector<8x1xbf16>
    %464 = tpu.concatenate %462, %463 in 1 : vector<8x127xbf16>, vector<8x1xbf16> -> vector<8x128xbf16>
    %c4_178 = arith.constant 4 : index
    %c0_179 = arith.constant 0 : index
    %465 = vector.load %arg4[%c4_178, %c0_179] : memref<24x128xbf16, #tpu.memory_space<vmem>>, vector<1x128xbf16>
    %466 = vector.broadcast %465 : vector<1x128xbf16> to vector<8x128xbf16>
    %467 = arith.mulf %464, %466 : vector<8x128xbf16>
    %468 = tpu.concatenate %461, %455, %467, %1 in 0 : vector<8x128xbf16>, vector<8x128xbf16>, vector<8x128xbf16>, vector<1x128xbf16> -> vector<25x128xbf16>
    %c14_180 = arith.constant 14 : index
    %c0_181 = arith.constant 0 : index
    %c0_182 = arith.constant 0 : index
    %469 = vector.load %arg2[%c14_180, %c0_181, %c0_182] : memref<20x32x128xbf16, #tpu.memory_space<vmem>>, vector<1x8x25xbf16>
    %470 = vector.shape_cast %469 : vector<1x8x25xbf16> to vector<8x25xbf16>
    %cst_183 = arith.constant dense<0.000000e+00> : vector<8x128xf32>
    %471 = tpu.matmul %470, %468, %cst_183 {dimension_numbers = #tpu.dot_dimension_numbers<[1], [0], [0], [1], [0, 0, 1, 1], [], []>} : vector<8x25xbf16>, vector<25x128xbf16>, vector<8x128xf32> -> vector<8x128xf32>
    %cst_184 = arith.constant 0.000000e+00 : f32
    %472 = vector.broadcast %cst_184 : f32 to vector<8x128xf32>
    %473 = arith.maximumf %471, %472 : vector<8x128xf32>
    %474 = arith.truncf %473 : vector<8x128xf32> to vector<8x128xbf16>
    %475 = vector.extract_strided_slice %474 {offsets = [0, 101], sizes = [8, 27], strides = [1, 1]} : vector<8x128xbf16> to vector<8x27xbf16>
    %476 = vector.extract_strided_slice %474 {offsets = [0, 0], sizes = [8, 101], strides = [1, 1]} : vector<8x128xbf16> to vector<8x101xbf16>
    %477 = tpu.concatenate %475, %476 in 1 : vector<8x27xbf16>, vector<8x101xbf16> -> vector<8x128xbf16>
    %c8_185 = arith.constant 8 : index
    %c0_186 = arith.constant 0 : index
    %478 = vector.load %arg4[%c8_185, %c0_186] : memref<24x128xbf16, #tpu.memory_space<vmem>>, vector<1x128xbf16>
    %479 = vector.broadcast %478 : vector<1x128xbf16> to vector<8x128xbf16>
    %480 = arith.mulf %477, %479 : vector<8x128xbf16>
    %481 = vector.extract_strided_slice %474 {offsets = [0, 104], sizes = [8, 24], strides = [1, 1]} : vector<8x128xbf16> to vector<8x24xbf16>
    %482 = vector.extract_strided_slice %474 {offsets = [0, 0], sizes = [8, 104], strides = [1, 1]} : vector<8x128xbf16> to vector<8x104xbf16>
    %483 = tpu.concatenate %481, %482 in 1 : vector<8x24xbf16>, vector<8x104xbf16> -> vector<8x128xbf16>
    %c9_187 = arith.constant 9 : index
    %c0_188 = arith.constant 0 : index
    %484 = vector.load %arg4[%c9_187, %c0_188] : memref<24x128xbf16, #tpu.memory_space<vmem>>, vector<1x128xbf16>
    %485 = vector.broadcast %484 : vector<1x128xbf16> to vector<8x128xbf16>
    %486 = arith.mulf %483, %485 : vector<8x128xbf16>
    %487 = vector.extract_strided_slice %474 {offsets = [0, 107], sizes = [8, 21], strides = [1, 1]} : vector<8x128xbf16> to vector<8x21xbf16>
    %488 = vector.extract_strided_slice %474 {offsets = [0, 0], sizes = [8, 107], strides = [1, 1]} : vector<8x128xbf16> to vector<8x107xbf16>
    %489 = tpu.concatenate %487, %488 in 1 : vector<8x21xbf16>, vector<8x107xbf16> -> vector<8x128xbf16>
    %c10_189 = arith.constant 10 : index
    %c0_190 = arith.constant 0 : index
    %490 = vector.load %arg4[%c10_189, %c0_190] : memref<24x128xbf16, #tpu.memory_space<vmem>>, vector<1x128xbf16>
    %491 = vector.broadcast %490 : vector<1x128xbf16> to vector<8x128xbf16>
    %492 = arith.mulf %489, %491 : vector<8x128xbf16>
    %493 = vector.extract_strided_slice %474 {offsets = [0, 125], sizes = [8, 3], strides = [1, 1]} : vector<8x128xbf16> to vector<8x3xbf16>
    %494 = vector.extract_strided_slice %474 {offsets = [0, 0], sizes = [8, 125], strides = [1, 1]} : vector<8x128xbf16> to vector<8x125xbf16>
    %495 = tpu.concatenate %493, %494 in 1 : vector<8x3xbf16>, vector<8x125xbf16> -> vector<8x128xbf16>
    %c11_191 = arith.constant 11 : index
    %c0_192 = arith.constant 0 : index
    %496 = vector.load %arg4[%c11_191, %c0_192] : memref<24x128xbf16, #tpu.memory_space<vmem>>, vector<1x128xbf16>
    %497 = vector.broadcast %496 : vector<1x128xbf16> to vector<8x128xbf16>
    %498 = arith.mulf %495, %497 : vector<8x128xbf16>
    %499 = vector.extract_strided_slice %474 {offsets = [0, 3], sizes = [8, 125], strides = [1, 1]} : vector<8x128xbf16> to vector<8x125xbf16>
    %500 = vector.extract_strided_slice %474 {offsets = [0, 0], sizes = [8, 3], strides = [1, 1]} : vector<8x128xbf16> to vector<8x3xbf16>
    %501 = tpu.concatenate %499, %500 in 1 : vector<8x125xbf16>, vector<8x3xbf16> -> vector<8x128xbf16>
    %c12_193 = arith.constant 12 : index
    %c0_194 = arith.constant 0 : index
    %502 = vector.load %arg4[%c12_193, %c0_194] : memref<24x128xbf16, #tpu.memory_space<vmem>>, vector<1x128xbf16>
    %503 = vector.broadcast %502 : vector<1x128xbf16> to vector<8x128xbf16>
    %504 = arith.mulf %501, %503 : vector<8x128xbf16>
    %505 = vector.extract_strided_slice %474 {offsets = [0, 21], sizes = [8, 107], strides = [1, 1]} : vector<8x128xbf16> to vector<8x107xbf16>
    %506 = vector.extract_strided_slice %474 {offsets = [0, 0], sizes = [8, 21], strides = [1, 1]} : vector<8x128xbf16> to vector<8x21xbf16>
    %507 = tpu.concatenate %505, %506 in 1 : vector<8x107xbf16>, vector<8x21xbf16> -> vector<8x128xbf16>
    %c13_195 = arith.constant 13 : index
    %c0_196 = arith.constant 0 : index
    %508 = vector.load %arg4[%c13_195, %c0_196] : memref<24x128xbf16, #tpu.memory_space<vmem>>, vector<1x128xbf16>
    %509 = vector.broadcast %508 : vector<1x128xbf16> to vector<8x128xbf16>
    %510 = arith.mulf %507, %509 : vector<8x128xbf16>
    %511 = vector.extract_strided_slice %474 {offsets = [0, 24], sizes = [8, 104], strides = [1, 1]} : vector<8x128xbf16> to vector<8x104xbf16>
    %512 = vector.extract_strided_slice %474 {offsets = [0, 0], sizes = [8, 24], strides = [1, 1]} : vector<8x128xbf16> to vector<8x24xbf16>
    %513 = tpu.concatenate %511, %512 in 1 : vector<8x104xbf16>, vector<8x24xbf16> -> vector<8x128xbf16>
    %c14_197 = arith.constant 14 : index
    %c0_198 = arith.constant 0 : index
    %514 = vector.load %arg4[%c14_197, %c0_198] : memref<24x128xbf16, #tpu.memory_space<vmem>>, vector<1x128xbf16>
    %515 = vector.broadcast %514 : vector<1x128xbf16> to vector<8x128xbf16>
    %516 = arith.mulf %513, %515 : vector<8x128xbf16>
    %517 = vector.extract_strided_slice %474 {offsets = [0, 27], sizes = [8, 101], strides = [1, 1]} : vector<8x128xbf16> to vector<8x101xbf16>
    %518 = vector.extract_strided_slice %474 {offsets = [0, 0], sizes = [8, 27], strides = [1, 1]} : vector<8x128xbf16> to vector<8x27xbf16>
    %519 = tpu.concatenate %517, %518 in 1 : vector<8x101xbf16>, vector<8x27xbf16> -> vector<8x128xbf16>
    %c15_199 = arith.constant 15 : index
    %c0_200 = arith.constant 0 : index
    %520 = vector.load %arg4[%c15_199, %c0_200] : memref<24x128xbf16, #tpu.memory_space<vmem>>, vector<1x128xbf16>
    %521 = vector.broadcast %520 : vector<1x128xbf16> to vector<8x128xbf16>
    %522 = arith.mulf %519, %521 : vector<8x128xbf16>
    %523 = tpu.concatenate %480, %486, %492, %498, %474, %504, %510, %516, %522, %1 in 0 : vector<8x128xbf16>, vector<8x128xbf16>, vector<8x128xbf16>, vector<8x128xbf16>, vector<8x128xbf16>, vector<8x128xbf16>, vector<8x128xbf16>, vector<8x128xbf16>, vector<8x128xbf16>, vector<1x128xbf16> -> vector<73x128xbf16>
    %c15_201 = arith.constant 15 : index
    %c0_202 = arith.constant 0 : index
    %c0_203 = arith.constant 0 : index
    %524 = vector.load %arg2[%c15_201, %c0_202, %c0_203] : memref<20x32x128xbf16, #tpu.memory_space<vmem>>, vector<1x8x73xbf16>
    %525 = vector.shape_cast %524 : vector<1x8x73xbf16> to vector<8x73xbf16>
    %cst_204 = arith.constant dense<0.000000e+00> : vector<8x128xf32>
    %526 = tpu.matmul %525, %523, %cst_204 {dimension_numbers = #tpu.dot_dimension_numbers<[1], [0], [0], [1], [0, 0, 1, 1], [], []>} : vector<8x73xbf16>, vector<73x128xbf16>, vector<8x128xf32> -> vector<8x128xf32>
    %527 = arith.truncf %526 : vector<8x128xf32> to vector<8x128xbf16>
    %c16_205 = arith.constant 16 : index
    %c0_206 = arith.constant 0 : index
    %528 = vector.load %arg8[%c16_205, %c0_206] : memref<32x128xbf16, #tpu.memory_space<vmem>>, vector<8x128xbf16>
    tpu.vector_store %arg8[%c16_205, %c0_206], %527 {strides = array<i32>} : memref<32x128xbf16, #tpu.memory_space<vmem>>, vector<8x128xbf16>,
    %529 = vector.extract_strided_slice %325 {offsets = [24, 0], sizes = [8, 128], strides = [1, 1]} : vector<32x128xbf16> to vector<8x128xbf16>
    %530 = vector.extract_strided_slice %529 {offsets = [0, 127], sizes = [8, 1], strides = [1, 1]} : vector<8x128xbf16> to vector<8x1xbf16>
    %531 = vector.extract_strided_slice %529 {offsets = [0, 0], sizes = [8, 127], strides = [1, 1]} : vector<8x128xbf16> to vector<8x127xbf16>
    %532 = tpu.concatenate %530, %531 in 1 : vector<8x1xbf16>, vector<8x127xbf16> -> vector<8x128xbf16>
    %c3_207 = arith.constant 3 : index
    %c0_208 = arith.constant 0 : index
    %533 = vector.load %arg4[%c3_207, %c0_208] : memref<24x128xbf16, #tpu.memory_space<vmem>>, vector<1x128xbf16>
    %534 = vector.broadcast %533 : vector<1x128xbf16> to vector<8x128xbf16>
    %535 = arith.mulf %532, %534 : vector<8x128xbf16>
    %536 = vector.extract_strided_slice %529 {offsets = [0, 1], sizes = [8, 127], strides = [1, 1]} : vector<8x128xbf16> to vector<8x127xbf16>
    %537 = vector.extract_strided_slice %529 {offsets = [0, 0], sizes = [8, 1], strides = [1, 1]} : vector<8x128xbf16> to vector<8x1xbf16>
    %538 = tpu.concatenate %536, %537 in 1 : vector<8x127xbf16>, vector<8x1xbf16> -> vector<8x128xbf16>
    %c4_209 = arith.constant 4 : index
    %c0_210 = arith.constant 0 : index
    %539 = vector.load %arg4[%c4_209, %c0_210] : memref<24x128xbf16, #tpu.memory_space<vmem>>, vector<1x128xbf16>
    %540 = vector.broadcast %539 : vector<1x128xbf16> to vector<8x128xbf16>
    %541 = arith.mulf %538, %540 : vector<8x128xbf16>
    %542 = tpu.concatenate %535, %529, %541, %1 in 0 : vector<8x128xbf16>, vector<8x128xbf16>, vector<8x128xbf16>, vector<1x128xbf16> -> vector<25x128xbf16>
    %c16_211 = arith.constant 16 : index
    %c0_212 = arith.constant 0 : index
    %c0_213 = arith.constant 0 : index
    %543 = vector.load %arg2[%c16_211, %c0_212, %c0_213] : memref<20x32x128xbf16, #tpu.memory_space<vmem>>, vector<1x8x25xbf16>
    %544 = vector.shape_cast %543 : vector<1x8x25xbf16> to vector<8x25xbf16>
    %cst_214 = arith.constant dense<0.000000e+00> : vector<8x128xf32>
    %545 = tpu.matmul %544, %542, %cst_214 {dimension_numbers = #tpu.dot_dimension_numbers<[1], [0], [0], [1], [0, 0, 1, 1], [], []>} : vector<8x25xbf16>, vector<25x128xbf16>, vector<8x128xf32> -> vector<8x128xf32>
    %cst_215 = arith.constant 0.000000e+00 : f32
    %546 = vector.broadcast %cst_215 : f32 to vector<8x128xf32>
    %547 = arith.maximumf %545, %546 : vector<8x128xf32>
    %548 = arith.truncf %547 : vector<8x128xf32> to vector<8x128xbf16>
    %549 = vector.extract_strided_slice %548 {offsets = [0, 120], sizes = [8, 8], strides = [1, 1]} : vector<8x128xbf16> to vector<8x8xbf16>
    %550 = vector.extract_strided_slice %548 {offsets = [0, 0], sizes = [8, 120], strides = [1, 1]} : vector<8x128xbf16> to vector<8x120xbf16>
    %551 = tpu.concatenate %549, %550 in 1 : vector<8x8xbf16>, vector<8x120xbf16> -> vector<8x128xbf16>
    %c1_216 = arith.constant 1 : index
    %c0_217 = arith.constant 0 : index
    %552 = vector.load %arg4[%c1_216, %c0_217] : memref<24x128xbf16, #tpu.memory_space<vmem>>, vector<1x128xbf16>
    %553 = vector.broadcast %552 : vector<1x128xbf16> to vector<8x128xbf16>
    %554 = arith.mulf %551, %553 : vector<8x128xbf16>
    %555 = vector.extract_strided_slice %548 {offsets = [0, 8], sizes = [8, 120], strides = [1, 1]} : vector<8x128xbf16> to vector<8x120xbf16>
    %556 = vector.extract_strided_slice %548 {offsets = [0, 0], sizes = [8, 8], strides = [1, 1]} : vector<8x128xbf16> to vector<8x8xbf16>
    %557 = tpu.concatenate %555, %556 in 1 : vector<8x120xbf16>, vector<8x8xbf16> -> vector<8x128xbf16>
    %c6_218 = arith.constant 6 : index
    %c0_219 = arith.constant 0 : index
    %558 = vector.load %arg4[%c6_218, %c0_219] : memref<24x128xbf16, #tpu.memory_space<vmem>>, vector<1x128xbf16>
    %559 = vector.broadcast %558 : vector<1x128xbf16> to vector<8x128xbf16>
    %560 = arith.mulf %557, %559 : vector<8x128xbf16>
    %561 = tpu.concatenate %554, %548, %560, %1 in 0 : vector<8x128xbf16>, vector<8x128xbf16>, vector<8x128xbf16>, vector<1x128xbf16> -> vector<25x128xbf16>
    %c17_220 = arith.constant 17 : index
    %c0_221 = arith.constant 0 : index
    %c0_222 = arith.constant 0 : index
    %562 = vector.load %arg2[%c17_220, %c0_221, %c0_222] : memref<20x32x128xbf16, #tpu.memory_space<vmem>>, vector<1x8x25xbf16>
    %563 = vector.shape_cast %562 : vector<1x8x25xbf16> to vector<8x25xbf16>
    %cst_223 = arith.constant dense<0.000000e+00> : vector<8x128xf32>
    %564 = tpu.matmul %563, %561, %cst_223 {dimension_numbers = #tpu.dot_dimension_numbers<[1], [0], [0], [1], [0, 0, 1, 1], [], []>} : vector<8x25xbf16>, vector<25x128xbf16>, vector<8x128xf32> -> vector<8x128xf32>
    %cst_224 = arith.constant 0.000000e+00 : f32
    %565 = vector.broadcast %cst_224 : f32 to vector<8x128xf32>
    %566 = arith.maximumf %564, %565 : vector<8x128xf32>
    %567 = arith.truncf %566 : vector<8x128xf32> to vector<8x128xbf16>
    %568 = vector.extract_strided_slice %567 {offsets = [0, 83], sizes = [8, 45], strides = [1, 1]} : vector<8x128xbf16> to vector<8x45xbf16>
    %569 = vector.extract_strided_slice %567 {offsets = [0, 0], sizes = [8, 83], strides = [1, 1]} : vector<8x128xbf16> to vector<8x83xbf16>
    %570 = tpu.concatenate %568, %569 in 1 : vector<8x45xbf16>, vector<8x83xbf16> -> vector<8x128xbf16>
    %c16_225 = arith.constant 16 : index
    %c0_226 = arith.constant 0 : index
    %571 = vector.load %arg4[%c16_225, %c0_226] : memref<24x128xbf16, #tpu.memory_space<vmem>>, vector<1x128xbf16>
    %572 = vector.broadcast %571 : vector<1x128xbf16> to vector<8x128xbf16>
    %573 = arith.mulf %570, %572 : vector<8x128xbf16>
    %574 = vector.extract_strided_slice %567 {offsets = [0, 88], sizes = [8, 40], strides = [1, 1]} : vector<8x128xbf16> to vector<8x40xbf16>
    %575 = vector.extract_strided_slice %567 {offsets = [0, 0], sizes = [8, 88], strides = [1, 1]} : vector<8x128xbf16> to vector<8x88xbf16>
    %576 = tpu.concatenate %574, %575 in 1 : vector<8x40xbf16>, vector<8x88xbf16> -> vector<8x128xbf16>
    %c17_227 = arith.constant 17 : index
    %c0_228 = arith.constant 0 : index
    %577 = vector.load %arg4[%c17_227, %c0_228] : memref<24x128xbf16, #tpu.memory_space<vmem>>, vector<1x128xbf16>
    %578 = vector.broadcast %577 : vector<1x128xbf16> to vector<8x128xbf16>
    %579 = arith.mulf %576, %578 : vector<8x128xbf16>
    %580 = vector.extract_strided_slice %567 {offsets = [0, 93], sizes = [8, 35], strides = [1, 1]} : vector<8x128xbf16> to vector<8x35xbf16>
    %581 = vector.extract_strided_slice %567 {offsets = [0, 0], sizes = [8, 93], strides = [1, 1]} : vector<8x128xbf16> to vector<8x93xbf16>
    %582 = tpu.concatenate %580, %581 in 1 : vector<8x35xbf16>, vector<8x93xbf16> -> vector<8x128xbf16>
    %c18_229 = arith.constant 18 : index
    %c0_230 = arith.constant 0 : index
    %583 = vector.load %arg4[%c18_229, %c0_230] : memref<24x128xbf16, #tpu.memory_space<vmem>>, vector<1x128xbf16>
    %584 = vector.broadcast %583 : vector<1x128xbf16> to vector<8x128xbf16>
    %585 = arith.mulf %582, %584 : vector<8x128xbf16>
    %586 = vector.extract_strided_slice %567 {offsets = [0, 123], sizes = [8, 5], strides = [1, 1]} : vector<8x128xbf16> to vector<8x5xbf16>
    %587 = vector.extract_strided_slice %567 {offsets = [0, 0], sizes = [8, 123], strides = [1, 1]} : vector<8x128xbf16> to vector<8x123xbf16>
    %588 = tpu.concatenate %586, %587 in 1 : vector<8x5xbf16>, vector<8x123xbf16> -> vector<8x128xbf16>
    %c19_231 = arith.constant 19 : index
    %c0_232 = arith.constant 0 : index
    %589 = vector.load %arg4[%c19_231, %c0_232] : memref<24x128xbf16, #tpu.memory_space<vmem>>, vector<1x128xbf16>
    %590 = vector.broadcast %589 : vector<1x128xbf16> to vector<8x128xbf16>
    %591 = arith.mulf %588, %590 : vector<8x128xbf16>
    %592 = vector.extract_strided_slice %567 {offsets = [0, 5], sizes = [8, 123], strides = [1, 1]} : vector<8x128xbf16> to vector<8x123xbf16>
    %593 = vector.extract_strided_slice %567 {offsets = [0, 0], sizes = [8, 5], strides = [1, 1]} : vector<8x128xbf16> to vector<8x5xbf16>
    %594 = tpu.concatenate %592, %593 in 1 : vector<8x123xbf16>, vector<8x5xbf16> -> vector<8x128xbf16>
    %c20_233 = arith.constant 20 : index
    %c0_234 = arith.constant 0 : index
    %595 = vector.load %arg4[%c20_233, %c0_234] : memref<24x128xbf16, #tpu.memory_space<vmem>>, vector<1x128xbf16>
    %596 = vector.broadcast %595 : vector<1x128xbf16> to vector<8x128xbf16>
    %597 = arith.mulf %594, %596 : vector<8x128xbf16>
    %598 = vector.extract_strided_slice %567 {offsets = [0, 35], sizes = [8, 93], strides = [1, 1]} : vector<8x128xbf16> to vector<8x93xbf16>
    %599 = vector.extract_strided_slice %567 {offsets = [0, 0], sizes = [8, 35], strides = [1, 1]} : vector<8x128xbf16> to vector<8x35xbf16>
    %600 = tpu.concatenate %598, %599 in 1 : vector<8x93xbf16>, vector<8x35xbf16> -> vector<8x128xbf16>
    %c21_235 = arith.constant 21 : index
    %c0_236 = arith.constant 0 : index
    %601 = vector.load %arg4[%c21_235, %c0_236] : memref<24x128xbf16, #tpu.memory_space<vmem>>, vector<1x128xbf16>
    %602 = vector.broadcast %601 : vector<1x128xbf16> to vector<8x128xbf16>
    %603 = arith.mulf %600, %602 : vector<8x128xbf16>
    %604 = vector.extract_strided_slice %567 {offsets = [0, 40], sizes = [8, 88], strides = [1, 1]} : vector<8x128xbf16> to vector<8x88xbf16>
    %605 = vector.extract_strided_slice %567 {offsets = [0, 0], sizes = [8, 40], strides = [1, 1]} : vector<8x128xbf16> to vector<8x40xbf16>
    %606 = tpu.concatenate %604, %605 in 1 : vector<8x88xbf16>, vector<8x40xbf16> -> vector<8x128xbf16>
    %c22_237 = arith.constant 22 : index
    %c0_238 = arith.constant 0 : index
    %607 = vector.load %arg4[%c22_237, %c0_238] : memref<24x128xbf16, #tpu.memory_space<vmem>>, vector<1x128xbf16>
    %608 = vector.broadcast %607 : vector<1x128xbf16> to vector<8x128xbf16>
    %609 = arith.mulf %606, %608 : vector<8x128xbf16>
    %610 = vector.extract_strided_slice %567 {offsets = [0, 45], sizes = [8, 83], strides = [1, 1]} : vector<8x128xbf16> to vector<8x83xbf16>
    %611 = vector.extract_strided_slice %567 {offsets = [0, 0], sizes = [8, 45], strides = [1, 1]} : vector<8x128xbf16> to vector<8x45xbf16>
    %612 = tpu.concatenate %610, %611 in 1 : vector<8x83xbf16>, vector<8x45xbf16> -> vector<8x128xbf16>
    %c23_239 = arith.constant 23 : index
    %c0_240 = arith.constant 0 : index
    %613 = vector.load %arg4[%c23_239, %c0_240] : memref<24x128xbf16, #tpu.memory_space<vmem>>, vector<1x128xbf16>
    %614 = vector.broadcast %613 : vector<1x128xbf16> to vector<8x128xbf16>
    %615 = arith.mulf %612, %614 : vector<8x128xbf16>
    %616 = tpu.concatenate %573, %579, %585, %591, %567, %597, %603, %609, %615, %1 in 0 : vector<8x128xbf16>, vector<8x128xbf16>, vector<8x128xbf16>, vector<8x128xbf16>, vector<8x128xbf16>, vector<8x128xbf16>, vector<8x128xbf16>, vector<8x128xbf16>, vector<8x128xbf16>, vector<1x128xbf16> -> vector<73x128xbf16>
    %c18_241 = arith.constant 18 : index
    %c0_242 = arith.constant 0 : index
    %c0_243 = arith.constant 0 : index
    %617 = vector.load %arg2[%c18_241, %c0_242, %c0_243] : memref<20x32x128xbf16, #tpu.memory_space<vmem>>, vector<1x8x73xbf16>
    %618 = vector.shape_cast %617 : vector<1x8x73xbf16> to vector<8x73xbf16>
    %cst_244 = arith.constant dense<0.000000e+00> : vector<8x128xf32>
    %619 = tpu.matmul %618, %616, %cst_244 {dimension_numbers = #tpu.dot_dimension_numbers<[1], [0], [0], [1], [0, 0, 1, 1], [], []>} : vector<8x73xbf16>, vector<73x128xbf16>, vector<8x128xf32> -> vector<8x128xf32>
    %620 = arith.truncf %619 : vector<8x128xf32> to vector<8x128xbf16>
    %c24_245 = arith.constant 24 : index
    %c0_246 = arith.constant 0 : index
    %621 = vector.load %arg8[%c24_245, %c0_246] : memref<32x128xbf16, #tpu.memory_space<vmem>>, vector<8x128xbf16>
    tpu.vector_store %arg8[%c24_245, %c0_246], %620 {strides = array<i32>} : memref<32x128xbf16, #tpu.memory_space<vmem>>, vector<8x128xbf16>,
    %c0_247 = arith.constant 0 : index
    %c0_248 = arith.constant 0 : index
    %622 = vector.load %arg8[%c0_247, %c0_248] : memref<32x128xbf16, #tpu.memory_space<vmem>>, vector<32x128xbf16>
    %623 = tpu.concatenate %622, %1 in 0 : vector<32x128xbf16>, vector<1x128xbf16> -> vector<33x128xbf16>
    %c19_249 = arith.constant 19 : index
    %c0_250 = arith.constant 0 : index
    %c0_251 = arith.constant 0 : index
    %624 = vector.load %arg2[%c19_249, %c0_250, %c0_251] : memref<20x32x128xbf16, #tpu.memory_space<vmem>>, vector<1x32x33xbf16>
    %625 = vector.shape_cast %624 : vector<1x32x33xbf16> to vector<32x33xbf16>
    %cst_252 = arith.constant dense<0.000000e+00> : vector<32x128xf32>
    %626 = tpu.matmul %625, %623, %cst_252 {dimension_numbers = #tpu.dot_dimension_numbers<[1], [0], [0], [1], [0, 0, 1, 1], [], []>} : vector<32x33xbf16>, vector<33x128xbf16>, vector<32x128xf32> -> vector<32x128xf32>
    %cst_253 = arith.constant 1.000000e-01 : f32
    %627 = vector.broadcast %cst_253 : f32 to vector<32x128xf32>
    %628 = arith.mulf %627, %626 : vector<32x128xf32>
    %629 = arith.maximumf %626, %628 : vector<32x128xf32>
    %c0_254 = arith.constant 0 : index
    %c0_255 = arith.constant 0 : index
    %c0_256 = arith.constant 0 : index
    %630 = vector.load %arg6[%c0_254, %c0_255, %c0_256] : memref<1x32x128xf32, #tpu.memory_space<vmem>>, vector<1x32x128xf32>
    %631 = vector.shape_cast %630 : vector<1x32x128xf32> to vector<32x128xf32>
    %632 = vector.shape_cast %629 : vector<32x128xf32> to vector<1x32x128xf32>
    tpu.vector_store %arg6[%c0_254, %c0_255, %c0_256], %632 {strides = array<i32>} : memref<1x32x128xf32, #tpu.memory_space<vmem>>, vector<1x32x128xf32>,
    return
  }
  func.func @transform_0(%arg0: i32) -> (i32, i32, i32) {
    %c0_i32 = arith.constant 0 : i32
    %c0_i32_0 = arith.constant 0 : i32
    %c0_i32_1 = arith.constant 0 : i32
    return %arg0, %c0_i32, %c0_i32_0 : i32, i32, i32
  }
  func.func @transform_1(%arg0: i32) -> (i32, i32, i32) {
    %c0_i32 = arith.constant 0 : i32
    %c0_i32_0 = arith.constant 0 : i32
    %c0_i32_1 = arith.constant 0 : i32
    %c0_i32_2 = arith.constant 0 : i32
    return %c0_i32, %c0_i32_0, %c0_i32_1 : i32, i32, i32
  }
  func.func @transform_2(%arg0: i32) -> (i32, i32) {
    %c0_i32 = arith.constant 0 : i32
    %c0_i32_0 = arith.constant 0 : i32
    %c0_i32_1 = arith.constant 0 : i32
    return %c0_i32, %c0_i32_0 : i32, i32
  }
  func.func @transform_3(%arg0: i32) -> (i32, i32) {
    %c0_i32 = arith.constant 0 : i32
    %c0_i32_0 = arith.constant 0 : i32
    %c0_i32_1 = arith.constant 0 : i32
    return %c0_i32, %c0_i32_0 : i32, i32
  }
  func.func @transform_4(%arg0: i32) -> (i32, i32) {
    %c0_i32 = arith.constant 0 : i32
    %c0_i32_0 = arith.constant 0 : i32
    %c0_i32_1 = arith.constant 0 : i32
    return %c0_i32, %c0_i32_0 : i32, i32
  }
  func.func @transform_5(%arg0: i32) -> (i32, i32, i32) {
    %c0_i32 = arith.constant 0 : i32
    %c0_i32_0 = arith.constant 0 : i32
    %c0_i32_1 = arith.constant 0 : i32
    return %arg0, %c0_i32, %c0_i32_0 : i32, i32, i32
  }
}

</mosaic_0001>

<bundles_post_ra>
// kernel: down_hdc_forward.1
= control target key start
LH: loop header
LB: loop body
LE: loop exit
PB: predicated region body
PF: predicated region fallthrough
CT: control target
= control target key end

     0   :  { %s6482_s18 = smov 0   ;;  %s9121_s0 = inlined_call_operand.vmem [shape: bf16[2,16,512], index: 0, kind: input, shape index: {}]   ;;  %s9122_s1 = inlined_call_operand.vmem [shape: bf16[20,32,128], index: 1, kind: input, shape index: {}]   ;;  %s9123_s2 = inlined_call_operand.vmem [shape: bf16[24,512], index: 2, kind: input, shape index: {}]   ;;  %s9124_s3 = inlined_call_operand.vmem [shape: bf16[24,128], index: 3, kind: input, shape index: {}]   ;;  %s9125_s4 = inlined_call_operand.vmem [shape: bf16[512,128], index: 4, kind: input, shape index: {}]   ;;  %s9126_s5 = inlined_call_operand.vmem [shape: f32[2,32,128], index: 5, kind: output, shape index: {}]  }
   0x1 LB: > { %s5779_s19 = sadd.s32 4294967295, %s6408_s18   ;;  %p5783_p0 = scmp.ge.s32.totalorder %s6408_s18, 1  ;;  %s6408_s18 = sphi %s6482_s18, %s15_s18  }
   0x2   : > { %p187_p1 = scmp.lt.s32.totalorder %s6408_s18, 3 }
   0x4   : > { %p188_p2 = pnand %p5783_p0, %p187_p1 }
   0x6   : > { %191 = sbr.rel (%p188_p2) target bundleno = 4570 (0x11da), region = 40 }
   0xd   : > { %p215_p3 = scmp.lt.s32.totalorder %s5779_s19, 1  ;;  %vm272_vm0 = vcmask 1040384   ;;  %v9127_v0 = vmov 0   ;;  %vm265_vm1 = vcmask 138240   ;;  %v6267_v7 = vld [vmem:[%s9122_s1] sm:$0xff]   ;;  %s6411_s26 = smov 16   ;;  %v446_v34 = vlaneseq }
   0xe   : > { %310 = vmatprep.mubr.bf16.mxu0 %v9127_v0  ;;  %363 = vmatprep.mubr.bf16.mxu1 %v9127_v0  ;;  %v274_v1 = vsel %vm272_vm0, 65535, %v9127_v0  ;;  %s6412_s27 = smov 17   ;;  %s6413_s28 = smov 127   ;;  %v6292_v28 = vld [vmem:[%s9122_s1 + $0x8] sm:$0xff]   ;;  %v431_v29 = vld [vmem:[%s9123_s2] sm:$0x11] }
   0xf   : > { %s9303_s19 = smov (!%p215_p3, %s5779_s19), 1  ;;  %v6501_v4 = vand.u32 1065369472, %v274_v1  ;;  %s6414_s29 = smov 1   ;;  %v432_v30 = vld [vmem:[%s9123_s2 + $0x8] sm:$0x11]  ;;  %v5798_v33 = vcombine.low %v431_v29, %v431_v29  ;;  %v5799_v43 = vcombine.high %v431_v29, %v431_v29 }
  0x10   : > { %s9170_s20 = sshll.u32 %s9303_s19, 5  ;;  %s6415_s30 = smov 112   ;;  %v1087_v31 = vld [vmem:[%s9123_s2] sm:$0x11]  ;;  %v1088_v32 = vld [vmem:[%s9123_s2 + $0x8] sm:$0x11]  ;;  %v5801_v35 = vcombine.high %v432_v30, %v432_v30  ;;  %v6595_v44 = vcombine.low %v432_v30, %v432_v30 }
  0x11   : > { %s219_s23 = scalar_lea.vmem %s9121_s0, %s9170_s20  ;;  %9171 = vst [vmem:[#allocation4_spill] sm:$0xff] %v6501_v4  ;;  %s6416_s6 = smov 15   ;;  %v5817_v36 = vcombine.low %v1087_v31, %v1087_v31  ;;  %v5820_v37 = vcombine.high %v1088_v32, %v1088_v32  ;;  %v6593_v40 = vshrl.u32 %v446_v34, 7  ;;  %v495_v41 = vshrl.u32 %v5798_v33, 16  ;;  %v663_v63 = vld [vmem:[%s9123_s2] sm:$0x44] }
  0x12   : > { %v6261_v2 = vld [vmem:[%s219_s23 + $0x4] ss:$16 sps:$4 sm:$0xff]   ;;  %v6263_v3 = vld [vmem:[%s219_s23 + $0xc] ss:$16 sps:$4 sm:$0xff]   ;;  %v6265_v5 = vld [vmem:[%s219_s23] ss:$16 sps:$4 sm:$0xff]   ;;  %v5818_v45 = vcombine.high %v1087_v31, %v1087_v31  ;;  %v5819_v50 = vcombine.low %v1088_v32, %v1088_v32  ;;  %v444_v61 = vpack.i.b16 %v5798_v33, %v5798_v33  ;;  %v458_v34 = vpack.i.b16 %v6595_v44, %v6595_v44 }
  0x13   : > { %278 = vmatprep.subr.bf16.mxu0 %v6261_v2  ;;  %v6266_v6 = vld [vmem:[%s219_s23 + $0x8] ss:$16 sps:$4 sm:$0xff]   ;;  %331 = vmatprep.subr.bf16.mxu1 %v6263_v3  ;;  %s6417_s7 = smov 113   ;;  %s6418_s10 = smov 111   ;;  %v516_v42 = vshrl.u32 %v5801_v35, 16  ;;  %v1100_v46 = vshrl.u32 %v5817_v36, 16  ;;  %v6604_v52 = vpack.i.b16 %v495_v41, %v495_v41  ;;  %v465_v3 = vpack.i.b16 %v5801_v35, %v5801_v35 }
  0x14   : > { %279 = vmatpush1.bf16.msra.mxu0 %v6265_v5  ;;  %332 = vmatpush1.bf16.msra.mxu1 %v6266_v6  ;;  %v1124_v47 = vshrl.u32 %v5820_v37, 16  ;;  %v6602_v51 = vsub.s32 0, %v6593_v40  ;;  %v502_v54 = vshrl.u32 %v5799_v43, 16  ;;  %v509_v55 = vshrl.u32 %v6595_v44, 16  ;;  %v547_v1 = vld [vmem:[%s9123_s2] sm:$0x22] }
  0x15   : > { %280 = vmatprep.subr.bf16.mxu0 %v6501_v4  ;;  %333 = vmatprep.subr.bf16.mxu1 %v6501_v4  ;;  %v6606_v53 = vpack.i.b16 %v516_v42, %v516_v42  ;;  %v1108_v56 = vshrl.u32 %v5818_v45, 16  ;;  %v1101_v57 = vpack.i.b16 %v1100_v46, %v1100_v46  ;;  %v1116_v62 = vshrl.u32 %v5819_v50, 16  ;;  %v548_v5 = vld [vmem:[%s9123_s2 + $0x8] sm:$0x22]  ;;  %v779_v33 = vld [vmem:[%s9123_s2] sm:$0x88] }
  0x16   : > { %v1125_v58 = vpack.i.b16 %v1124_v47, %v1124_v47  ;;  %vm483_vm2 = vcmask 130048   ;;  %v6678_v36 = vsub.s32 2, %v6593_v40  ;;  %v1135_v41 = vld [vmem:[%s9123_s2] sm:$0x88]  ;;  %v6741_v2 = vsub.s32 3, %v6593_v40  ;;  %s6420_s24 = smov 125  }
  0x17   : > { %vm907_vm3 = vcmask 1043456   ;;  %vm651_vm4 = vcmask 1039360   ;;  %vm599_vm5 = vcmask 7168   ;;  %vm535_vm6 = vcmask 121856   ;;  %s6421_s25 = smov 48   ;;  %s6425_s8 = smov 3  }
  0x18   : > { %281 = vmatpush1.bf16.msra.mxu0 %v6501_v4  ;;  %334 = vmatpush1.bf16.msra.mxu1 %v6501_v4  ;;  %vm767_vm7 = vcmask 916480   ;;  %vm715_vm8 = vcmask 924672   ;;  %vm986_vm9 = vcmask 1044480   ;;  %vm831_vm10 = vcmask 908288   ;;  %s6426_s9 = smov 77   ;;  %s6429_s22 = smov 85  }
  0x19   : > { %vm982_vm11 = vcmask 596992   ;;  %vm1217_vm12 = vcmask 203776   ;;  %vm1395_vm13 = vcmask 392192   ;;  %vm1331_vm14 = vcmask 416768   ;;  %s6430_s23 = smov 53   ;;  %s6431_s11 = smov 5  }
  0x1a   : > { %vm1563_vm15 = vcmask 1022976   ;;  %vm1511_vm0 = vcmask 23552   ;;  %s6432_s12 = smov 75   ;;  %s6437_s15 = smov 120  }
  0x1b   : > { %5794 = vmatmul.mubr.msk.bf16.vlgmr.msra.gmra.mrb[0].mxu0 %vm265_vm1, %v6267_v7  ;;  %5796 = vmatmul.mubr.msk.bf16.vlgmr.msra.gmra.mrb[0].mxu1 %vm265_vm1, %v6267_v7  ;;  %v6626_v7 = vpack.i.b16 %v502_v54, %v502_v54  ;;  %s6441_s13 = smov 104   ;;  %s6443_s14 = smov 107  }
  0x1c   : > { %320 = vmatprep.mubr.bf16.mxu0 %v9127_v0  ;;  %373 = vmatprep.mubr.bf16.mxu1 %v9127_v0  ;;  %s6445_s16 = smov 7   ;;  %s6446_s17 = smov 119  }
  0x1d   : > { %s6447_s21 = smov 121  }
  0x23   : > { %5795 = vmatmul.mubr.msk.bf16.gmra.mrb[4].mxu0 %vm265_vm1, %v6292_v28  ;;  %5797 = vmatmul.mubr.msk.bf16.gmra.mrb[4].mxu1 %vm265_vm1, %v6292_v28  ;;  %v6659_v28 = vcombine.low %v548_v5, %v548_v5 }
  0x24   : > { %1029 = vmatprep.mubr.bf16.mxu0 %v9127_v0  ;;  %1070 = vmatprep.mubr.bf16.mxu1 %v9127_v0 }
  0xee   : > { %v312_v8 = vpop.f32.mrb[0].mxu0  ;;  %v365_v9 = vpop.f32.mrb[0].mxu1 }
  0xef   : > { %v386_v10 = vmax.f32 %v365_v9, 0.0  ;;  %v314_v11 = vpop.f32.mrb[1].mxu0  ;;  %v367_v12 = vpop.f32.mrb[1].mxu1  ;;  %v384_v16 = vmax.f32 %v312_v8, 0.0  ;;  %v6628_v8 = vpack.i.b16 %v509_v55, %v509_v55  ;;  %v1109_v9 = vpack.i.b16 %v1108_v56, %v1108_v56 }
  0xf0   : > { %v387_v13 = vmax.f32 %v367_v12, 0.0  ;;  %v316_v14 = vpop.f32.mrb[2].mxu0  ;;  %v369_v15 = vpop.f32.mrb[2].mxu1  ;;  %v385_v21 = vmax.f32 %v314_v11, 0.0  ;;  %v6634_v11 = vrot.slane %v1125_v58, %v6602_v51  ;;  %v6636_v12 = vcombine.low %v663_v63, %v663_v63 }
  0xf1   : > { %v388_v17 = vmax.f32 %v316_v14, 0.0  ;;  %v390_v18 = vmax.f32 %v369_v15, 0.0  ;;  %v318_v19 = vpop.f32.mrb[3].mxu0  ;;  %v371_v20 = vpop.f32.mrb[3].mxu1  ;;  %v664_v14 = vld [vmem:[%s9123_s2 + $0x8] sm:$0x44]  ;;  %v6666_v31 = vrot.slane %v1109_v9, %v6602_v51  ;;  %v6701_v56 = vcombine.low %v779_v33, %v779_v33 }
  0xf2   : > { %v389_v22 = vmax.f32 %v318_v19, 0.0  ;;  %v391_v23 = vmax.f32 %v371_v20, 0.0  ;;  %9175 = vst [vmem:[#allocation8_spill] sm:$0xff] %v6634_v11  ;;  %v6650_v19 = vcombine.high %v663_v63, %v663_v63  ;;  %v6652_v20 = vcombine.high %v548_v5, %v548_v5 }
  0xf3   : > { %v6514_v24 = vpack.c.bf16 %v388_v17, %v384_v16  ;;  %v6516_v25 = vpack.c.bf16 %v390_v18, %v386_v10  ;;  %v6631_v10 = vrot.slane %v1101_v57, %v6602_v51  ;;  %v6648_v17 = vrot.slane %v444_v61, %v6602_v51  ;;  %9176 = vst [vmem:[#allocation9_spill] sm:$0xff] %v6666_v31  ;;  %v780_v57 = vld [vmem:[%s9123_s2 + $0x8] sm:$0x88] }
  0xf4   : > { %v6518_v26 = vpack.c.bf16 %v389_v22, %v385_v21  ;;  %v6520_v27 = vpack.c.bf16 %v391_v23, %v387_v13  ;;  %v6638_v13 = vcombine.low %v547_v1, %v547_v1  ;;  %v1117_v18 = vpack.i.b16 %v1116_v62, %v1116_v62 }
  0xf5   : > { %9172 = vst [vmem:[#allocation5_spill] sm:$0xff] %v6514_v24  ;;  %9173 = vst [vmem:[#allocation6_spill] sm:$0xff] %v6516_v25  ;;  %481 = vrot.lane.b32.xlu1 %v6516_v25, %s6411_s26  ;;  %477 = vrot.lane.b32.xlu0 %v6514_v24, %s6411_s26  ;;  %v6655_v21 = vrot.slane %v465_v3, %v6602_v51  ;;  %v451_v22 = vpack.i.b16 %v5799_v43, %v5799_v43  ;;  %v632_v46 = vshrl.u32 %v6652_v20, 16 }
  0xf6   : > { %9174 = vst [vmem:[#allocation7_spill] sm:$0xff] %v6631_v10  ;;  %v6657_v23 = vcombine.high %v547_v1, %v547_v1  ;;  %v6668_v32 = vcombine.low %v664_v14, %v664_v14  ;;  %v676_v35 = vpack.i.b16 %v6636_v12, %v6636_v12  ;;  %v611_v37 = vshrl.u32 %v6638_v13, 16 }
  0xf7   : > { %v6689_v45 = vrot.slane %v1117_v18, %v6602_v51  ;;  %v683_v44 = vpack.i.b16 %v6650_v19, %v6650_v19  ;;  %v6694_v47 = vcombine.high %v664_v14, %v664_v14  ;;  %v6697_v50 = vrot.slane %v451_v22, %v6602_v51 }
  0xf8   : > { %v618_v54 = vshrl.u32 %v6657_v23, 16  ;;  %v625_v55 = vshrl.u32 %v6659_v28, 16  ;;  %v690_v58 = vpack.i.b16 %v6668_v32, %v6668_v32  ;;  %v6708_v61 = vcombine.high %v779_v33, %v779_v33 }
  0xf9   : > { %414 = vrot.lane.b32.xlu1 %v6514_v24, %s6412_s27  ;;  %643 = vrot.lane.b32.xlu0 %v6514_v24, %s6413_s28  ;;  %9177 = vst [vmem:[#allocation10_spill] sm:$0xff] %v6689_v45  ;;  %v5821_v62 = vcombine.low %v1135_v41, %v1135_v41  ;;  %v5822_v63 = vcombine.high %v1135_v41, %v1135_v41  ;;  %v6717_v5 = vsub.s32 1, %v6593_v40 }
  0xfa   : > { %v6711_v1 = vrot.slane %v458_v34, %v6602_v51  ;;  %v6714_v3 = vrot.slane %v676_v35, %v6678_v36  ;;  %v6719_v9 = vpack.i.b16 %v611_v37, %v611_v37  ;;  %v6726_v22 = vrot.slane %v683_v44, %v6678_v36  ;;  %v1136_v44 = vld [vmem:[%s9123_s2 + $0x8] sm:$0x88] }
  0xfb   : > { %v6728_v33 = vpack.i.b16 %v632_v46, %v632_v46  ;;  %v697_v34 = vpack.i.b16 %v6694_v47, %v6694_v47  ;;  %v6732_v41 = vcombine.low %v780_v57, %v780_v57  ;;  %v6734_v35 = vpack.i.b16 %v618_v54, %v618_v54 }
  0xfc   : > { %v6736_v0 = vpack.i.b16 %v625_v55, %v625_v55  ;;  %v792_v37 = vpack.i.b16 %v6701_v56, %v6701_v56  ;;  %v6747_v46 = vrot.slane %v690_v58, %v6678_v36  ;;  %v799_v30 = vpack.i.b16 %v6708_v61, %v6708_v61 }
  0xfd   : > { %418 = vrot.lane.b32.xlu1 %v6516_v25, %s6412_s27  ;;  %647 = vrot.lane.b32.xlu0 %v6516_v25, %s6413_s28  ;;  %v1148_v54 = vpack.i.b16 %v5821_v62, %v5821_v62  ;;  %v1155_v29 = vpack.i.b16 %v5822_v63, %v5822_v63  ;;  %v560_v40 = vpack.i.b16 %v6638_v13, %v6638_v13 }
  0xfe   : > { %v581_v6 = vpack.i.b16 %v6652_v20, %v6652_v20  ;;  %v6757_v4 = vcombine.high %v780_v57, %v780_v57  ;;  %v6764_v63 = vrot.slane %v697_v34, %v6678_v36  ;;  %v806_v55 = vpack.i.b16 %v6732_v41, %v6732_v41 }
  0xff   : > { %v5823_v31 = vcombine.low %v1136_v44, %v1136_v44  ;;  %v6777_v10 = vrot.slane %v792_v37, %v6741_v2  ;;  %v9179_v34 = vrot.slane %v6606_v53, %v6602_v51  ;;  %v6790_v11 = vrot.slane %v1155_v29, %v6741_v2 }
 0x100   : > { %v6793_v20 = vrot.slane %v560_v40, %v6717_v5  ;;  %v6796_v37 = vrot.slane %v581_v6, %v6717_v5  ;;  %v813_v57 = vpack.i.b16 %v6757_v4, %v6757_v4  ;;  %v5824_v53 = vcombine.high %v1136_v44, %v1136_v44 }
 0x101   : > { %593 = vrot.lane.b32.xlu1 %v6514_v24, %s6414_s29  ;;  %759 = vrot.lane.b32.xlu0 %v6514_v24, %s6415_s30  ;;  %9181 = vst [vmem:[#allocation13_spill] sm:$0xff] %v6790_v11  ;;  %v1162_v29 = vpack.i.b16 %v5823_v31, %v5823_v31  ;;  %v727_v40 = vshrl.u32 %v6636_v12, 16  ;;  %v9184_v12 = vrot.slane %v6626_v7, %v6602_v51 }
 0x105   : > { %597 = vrot.lane.b32.xlu1 %v6516_v25, %s6414_s29  ;;  %763 = vrot.lane.b32.xlu0 %v6516_v25, %s6415_s30 }
 0x109   : > { %529 = vrot.lane.b32.xlu1 %v6514_v24, %s6416_s6  ;;  %707 = vrot.lane.b32.xlu0 %v6514_v24, %s6417_s7 }
 0x10d   : > { %533 = vrot.lane.b32.xlu1 %v6516_v25, %s6416_s6  ;;  %475 = vrot.lane.b32.xlu0 %v6520_v27, %s6411_s26 }
 0x111   : > { %409 = vrot.lane.b32.xlu0 %v6520_v27, %s6412_s27  ;;  %479 = vrot.lane.b32.xlu1 %v6518_v26, %s6411_s26 }
 0x115   : > { %416 = vrot.lane.b32.xlu0 %v6518_v26, %s6412_s27  ;;  %645 = vrot.lane.b32.xlu1 %v6518_v26, %s6413_s28  ;;  %s6422_s27 = smov 80  }
 0x119   : > { %591 = vrot.lane.b32.xlu0 %v6520_v27, %s6414_s29  ;;  %649 = vrot.lane.b32.xlu1 %v6520_v27, %s6413_s28 }
 0x11d   : > { %595 = vrot.lane.b32.xlu0 %v6518_v26, %s6414_s29  ;;  %761 = vrot.lane.b32.xlu1 %v6518_v26, %s6415_s30 }
 0x121   : > { %527 = vrot.lane.b32.xlu0 %v6520_v27, %s6416_s6  ;;  %765 = vrot.lane.b32.xlu1 %v6520_v27, %s6415_s30 }
 0x125   : > { %531 = vrot.lane.b32.xlu0 %v6518_v26, %s6416_s6  ;;  %709 = vrot.lane.b32.xlu1 %v6518_v26, %s6417_s7  ;;  %s6423_s6 = smov 51  }
 0x129   : > { %711 = vrot.lane.b32.xlu0 %v6516_v25, %s6417_s7  ;;  %713 = vrot.lane.b32.xlu1 %v6520_v27, %s6417_s7  ;;  %s6424_s7 = smov 83  }
 0x12d   : > { %823 = vrot.lane.b32.xlu0 %v6514_v24, %s6418_s10  ;;  %825 = vrot.lane.b32.xlu1 %v6518_v26, %s6418_s10  ;;  %v6784_v24 = vrot.slane %v799_v30, %v6741_v2 }
 0x131   : > { %827 = vrot.lane.b32.xlu0 %v6516_v25, %s6418_s10  ;;  %829 = vrot.lane.b32.xlu1 %v6520_v27, %s6418_s10  ;;  %v6787_v25 = vrot.slane %v1148_v54, %v6741_v2  ;;  %s6427_s10 = smov 45  }
 0x133   : > { %9180 = vst [vmem:[#allocation12_spill] sm:$0xff] %v6787_v25  ;;  %v6805_v25 = vrot.slane %v806_v55, %v6741_v2 }
 0x135   : > { %9182 = vst [vmem:[#allocation14_spill] sm:$0xff] %v6805_v25 }
 0x167   : > { %v6589_v38 = vpop.permute.xlu1 %481  ;;  %v6591_v39 = vpop.permute.xlu0 %477 }
 0x16b   : > { %v6597_v48 = vpop.permute.xlu1 %414  ;;  %v6599_v49 = vpop.permute.xlu0 %643 }
 0x16f   : > { %v6609_v59 = vpop.permute.xlu1 %418  ;;  %v6611_v60 = vpop.permute.xlu0 %647 }
 0x173   : > { %v6643_v15 = vpop.permute.xlu1 %593  ;;  %v6645_v16 = vpop.permute.xlu0 %759 }
 0x177   : > { %v6684_v42 = vpop.permute.xlu1 %597  ;;  %v6686_v43 = vpop.permute.xlu0 %763 }
 0x17b   : > { %v6721_v14 = vpop.permute.xlu1 %529  ;;  %v6723_v18 = vpop.permute.xlu0 %707 }
 0x17f   : > { %v6759_v45 = vpop.permute.xlu1 %533  ;;  %v476_v58 = vpop.permute.xlu0 %475 }
 0x180   : > { %v6770_v13 = vsel %vm483_vm2, %v6589_v38, %v476_v58  ;;  %v6802_v30 = vsel %vm483_vm2, %v476_v58, %v6591_v39 }
 0x181   : > { %9178 = vst [vmem:[#allocation11_spill] sm:$0xff] %v6770_v13  ;;  %v526_v62 = vmul.bf16 %v9179_v34, %v6770_v13 }
 0x183   : > { %v410_v34 = vpop.permute.xlu0 %409  ;;  %v480_v54 = vpop.permute.xlu1 %479  ;;  %v882_v11 = vrot.slane %v526_v62, 4  ;;  %v9185_v62 = vrot.slane %v6628_v8, %v6602_v51  ;;  %v574_v8 = vpack.i.b16 %v6659_v28, %v6659_v28 }
 0x184   : > { %v423_v6 = vsel %vm265_vm1, %v6609_v59, %v410_v34  ;;  %v6812_v13 = vsel %vm483_vm2, %v6591_v39, %v480_v54  ;;  %v6816_v44 = vsel %vm483_vm2, %v480_v54, %v6589_v38  ;;  %v429_v58 = vsel %vm265_vm1, %v410_v34, %v6597_v48 }
 0x185   : > { %9183 = vst [vmem:[#allocation15_spill] sm:$0xff] %v6816_v44  ;;  %v474_v55 = vmul.bf16 %v6655_v21, %v423_v6  ;;  %v524_v31 = vmul.bf16 %v9184_v12, %v6812_v13  ;;  %v525_v39 = vmul.bf16 %v9185_v62, %v6816_v44  ;;  %v9186_v38 = vrot.slane %v6604_v52, %v6602_v51 }
 0x186   : > { %v6834_v34 = vrot.slane %v813_v57, %v6741_v2  ;;  %v1169_v21 = vpack.i.b16 %v5824_v53, %v5824_v53  ;;  %v567_v12 = vpack.i.b16 %v6657_v23, %v6657_v23  ;;  %v734_v62 = vshrl.u32 %v6650_v19, 16 }
 0x187   : > { %v523_v54 = vmul.bf16 %v9186_v38, %v6802_v30  ;;  %v417_v6 = vpop.permute.xlu0 %416  ;;  %v646_v25 = vpop.permute.xlu1 %645  ;;  %v922_v7 = vsel %vm907_vm3, %v474_v55, %v882_v11  ;;  %v471_v44 = vmul.bf16 %v6648_v17, %v429_v58  ;;  %v741_v53 = vshrl.u32 %v6668_v32, 16 }
 0x188   : > { %v421_v52 = vsel %vm265_vm1, %v6597_v48, %v417_v6  ;;  %v422_v57 = vsel %vm265_vm1, %v417_v6, %v6609_v59  ;;  %1038 = vmatprep.subr.bf16.mxu1 %v922_v7  ;;  %v880_v11 = vrot.slane %v524_v31, 4  ;;  %v881_v55 = vrot.slane %v525_v39, 4 }
 0x189   : > { %v472_v23 = vmul.bf16 %v6697_v50, %v421_v52  ;;  %v473_v38 = vmul.bf16 %v6711_v1, %v422_v57  ;;  %v879_v28 = vrot.slane %v523_v54, 4  ;;  %v653_v19 = vsel %vm651_vm4, %v646_v25, %v6611_v60 }
 0x18a   : > { %v748_v17 = vshrl.u32 %v6694_v47, 16  ;;  %v843_v48 = vshrl.u32 %v6701_v56, 16  ;;  %v6856_v31 = vpack.i.b16 %v727_v40, %v727_v40  ;;  %v850_v50 = vshrl.u32 %v6708_v61, 16 }
 0x18b   : > { %v592_v58 = vpop.permute.xlu0 %591  ;;  %v650_v59 = vpop.permute.xlu1 %649  ;;  %v914_v6 = vsel %vm907_vm3, %v472_v23, %v880_v11  ;;  %v918_v32 = vsel %vm907_vm3, %v473_v38, %v881_v55  ;;  %v910_v1 = vsel %vm907_vm3, %v471_v44, %v879_v28  ;;  %v6861_v39 = vrot.slane %v1162_v29, %v6741_v2 }
 0x18c   : > { %997 = vmatprep.subr.bf16.mxu0 %v914_v6  ;;  %1039 = vmatpush1.bf16.msra.mxu1 %v918_v32  ;;  %v6864_v47 = vrot.slane %v1169_v21, %v6741_v2  ;;  %v6419_v56 = vmov 65535   ;;  %v652_v40 = vsel %vm651_vm4, %v6599_v49, %v646_v25  ;;  %v704_v7 = vmul.bf16 %v6726_v22, %v653_v19 }
 0x18d   : > { %v6867_v54 = vsel %vm907_vm3, 4294967295, %v6419_v56  ;;  %998 = vmatpush1.bf16.msra.mxu0 %v910_v1  ;;  %v6872_v61 = vpack.i.b16 %v734_v62, %v734_v62  ;;  %v6874_v52 = vpack.i.b16 %v741_v53, %v741_v53  ;;  %v6877_v29 = vrot.slane %v567_v12, %v6717_v5 }
 0x18e   : > { %v6879_v44 = vpack.i.b16 %v748_v17, %v748_v17  ;;  %v6881_v21 = vpack.i.b16 %v843_v48, %v843_v48  ;;  %v857_v57 = vshrl.u32 %v6732_v41, 16  ;;  %v6885_v25 = vrot.slane %v574_v8, %v6717_v5 }
 0x18f   : > { %v596_v11 = vpop.permute.xlu0 %595  ;;  %v762_v55 = vpop.permute.xlu1 %761  ;;  %v733_v22 = vrot.slane %v6856_v31, %v6678_v36  ;;  %v6889_v62 = vpack.i.b16 %v850_v50, %v850_v50  ;;  %v864_v53 = vshrl.u32 %v6757_v4, 16  ;;  %v703_v12 = vmul.bf16 %v6714_v3, %v652_v40  ;;  %v9197_v31 = vld [vmem:[#allocation7_spill] sm:$0xff] }
 0x190   : > { %v602_v23 = vsel %vm599_vm5, %v6684_v42, %v592_v58  ;;  %v609_v41 = vsel %vm599_vm5, %v592_v58, %v6643_v15  ;;  %v661_v38 = vsel %vm651_vm4, %v650_v59, %v6599_v49  ;;  %v896_v8 = vrot.slane %v704_v7, 4 }
 0x191   : > { %v654_v28 = vsel %vm651_vm4, %v6611_v60, %v650_v59  ;;  %v740_v19 = vrot.slane %v6872_v61, %v6678_v36  ;;  %v747_v4 = vrot.slane %v6874_v52, %v6678_v36  ;;  %v600_v3 = vsel %vm599_vm5, %v6643_v15, %v596_v11 }
 0x192   : > { %v754_v17 = vrot.slane %v6879_v44, %v6678_v36  ;;  %v849_v49 = vrot.slane %v6881_v21, %v6741_v2  ;;  %v6911_v48 = vpack.i.b16 %v857_v57, %v857_v57  ;;  %v9187_v60 = vrot.slane %v6719_v9, %v6717_v5 }
 0x193   : > { %v9188_v59 = vrot.slane %v6728_v33, %v6717_v5  ;;  %v706_v32 = vmul.bf16 %v6764_v63, %v661_v38  ;;  %v601_v15 = vsel %vm599_vm5, %v596_v11, %v6684_v42  ;;  %v528_v50 = vpop.permute.xlu0 %527  ;;  %v766_v1 = vpop.permute.xlu1 %765  ;;  %v6922_v56 = vrot.slane %v703_v12, 4 }
 0x194   : > { %v639_v58 = vmul.bf16 %v9187_v60, %v609_v41  ;;  %v705_v40 = vmul.bf16 %v6747_v46, %v654_v28  ;;  %v856_v9 = vrot.slane %v6889_v62, %v6741_v2  ;;  %v6927_v7 = vpack.i.b16 %v864_v53, %v864_v53 }
 0x195   : > { %v642_v6 = vmul.bf16 %v9188_v59, %v602_v23  ;;  %v9189_v33 = vrot.slane %v6734_v35, %v6717_v5  ;;  %v538_v63 = vsel %vm535_vm6, %v6759_v45, %v528_v50  ;;  %v545_v42 = vsel %vm535_vm6, %v528_v50, %v6721_v14 }
 0x196   : > { %v946_v44 = vsel %vm907_vm3, %v6518_v26, %v896_v8  ;;  %v9190_v46 = vrot.slane %v6736_v0, %v6717_v5  ;;  %v6943_v11 = vsel %vm767_vm7, %v6645_v16, %v762_v55  ;;  %v590_v35 = vmul.bf16 %v6796_v37, %v538_v63 }
 0x197   : > { %v640_v61 = vmul.bf16 %v9189_v33, %v600_v3  ;;  %v6948_v53 = vsel %vm767_vm7, %v766_v1, %v6645_v16  ;;  %v887_v12 = vrot.slane %v639_v58, 4  ;;  %v890_v23 = vrot.slane %v642_v6, 4  ;;  %v532_v8 = vpop.permute.xlu0 %531  ;;  %v710_v0 = vpop.permute.xlu1 %709 }
 0x198   : > { %v641_v57 = vmul.bf16 %v9190_v46, %v601_v15  ;;  %v898_v41 = vrot.slane %v706_v32, 4  ;;  %v6952_v38 = vsel %vm767_vm7, %v762_v55, %v6686_v43  ;;  %v897_v28 = vrot.slane %v705_v40, 4 }
 0x199   : > { %v587_v3 = vmul.bf16 %v6793_v20, %v545_v42  ;;  %v536_v60 = vsel %vm535_vm6, %v6721_v14, %v532_v8  ;;  %v537_v37 = vsel %vm535_vm6, %v532_v8, %v6759_v45  ;;  %v888_v16 = vrot.slane %v640_v61, 4  ;;  %v9191_v42 = vld [vmem:[#allocation14_spill] sm:$0xff] }
 0x19a   : > { %v819_v58 = vmul.bf16 %v6777_v10, %v6943_v11  ;;  %v822_v59 = vmul.bf16 %v6834_v34, %v6948_v53  ;;  %v588_v55 = vmul.bf16 %v6877_v29, %v536_v60  ;;  %v889_v6 = vrot.slane %v641_v57, 4  ;;  %v9196_v60 = vld [vmem:[#allocation5_spill] sm:$0xff] }
 0x19b   : > { %v820_v32 = vmul.bf16 %v6784_v24, %v6952_v38  ;;  %v589_v20 = vmul.bf16 %v6885_v25, %v537_v37  ;;  %v938_v14 = vsel %vm907_vm3, %v590_v35, %v890_v23  ;;  %v6970_v45 = vsel %vm767_vm7, %v6686_v43, %v766_v1  ;;  %v712_v15 = vpop.permute.xlu0 %711  ;;  %v714_v34 = vpop.permute.xlu1 %713 }
 0x19c   : > { %v716_v10 = vsel %vm715_vm8, %v6723_v18, %v710_v0  ;;  %1040 = vmatprep.subr.bf16.mxu1 %v938_v14  ;;  %v930_v29 = vsel %vm907_vm3, %v588_v55, %v888_v16  ;;  %v954_v50 = vsel %vm907_vm3, %v6520_v27, %v898_v41  ;;  %v717_v24 = vsel %vm715_vm8, %v710_v0, %v712_v15  ;;  %v9198_v16 = vld [vmem:[#allocation9_spill] sm:$0xff]  ;;  %v9202_v14 = vld [vmem:[#allocation12_spill] sm:$0xff] }
 0x19d   : > { %v725_v25 = vsel %vm715_vm8, %v714_v34, %v6723_v18  ;;  %999 = vmatprep.subr.bf16.mxu0 %v930_v29  ;;  %v934_v43 = vsel %vm907_vm3, %v589_v20, %v889_v6  ;;  %v926_v1 = vsel %vm907_vm3, %v587_v3, %v887_v12  ;;  %v906_v40 = vrot.slane %v822_v59, 4  ;;  %v9194_v12 = vld [vmem:[#allocation8_spill] sm:$0xff] }
 0x19e   : > { %v756_v33 = vmul.bf16 %v740_v19, %v717_v24  ;;  %v718_v61 = vsel %vm715_vm8, %v712_v15, %v714_v34  ;;  %v758_v63 = vmul.bf16 %v754_v17, %v725_v25  ;;  %1041 = vmatpush1.bf16.msra.mxu1 %v934_v43  ;;  %1000 = vmatpush1.bf16.msra.mxu0 %v926_v1  ;;  %v6991_v35 = vsel %vm986_vm9, %v6867_v54, 0  ;;  %v9193_v19 = vld [vmem:[#allocation11_spill] sm:$0xff]  ;;  %v9195_v54 = vld [vmem:[#allocation6_spill] sm:$0xff] }
 0x19f   : > { %v821_v46 = vmul.bf16 %v9191_v42, %v6970_v45  ;;  %1042 = vmatprep.subr.bf16.mxu1 %v954_v50  ;;  %1001 = vmatprep.subr.bf16.mxu0 %v946_v44  ;;  %v863_v18 = vrot.slane %v6911_v48, %v6741_v2  ;;  %v870_v57 = vrot.slane %v6927_v7, %v6741_v2  ;;  %v904_v23 = vrot.slane %v820_v32, 4  ;;  %v824_v8 = vpop.permute.xlu0 %823  ;;  %v826_v44 = vpop.permute.xlu1 %825 }
 0x1a0   : > { %9192 = vst [vmem:[#allocation14_spill] sm:$0xff] %v6991_v35  ;;  %v1134_v17 = vmul.bf16 %v9194_v12, %v9193_v19  ;;  %v755_v41 = vmul.bf16 %v733_v22, %v716_v10  ;;  %v970_v0 = vsel %vm907_vm3, %v758_v63, %v906_v40  ;;  %v757_v48 = vmul.bf16 %v747_v4, %v718_v61  ;;  %v9199_v4 = vld [vmem:[#allocation13_spill] sm:$0xff] }
 0x1a1   : > { %v832_v7 = vsel %vm831_vm10, %v824_v8, %v826_v44  ;;  %v950_v3 = vsel %vm907_vm3, %v9195_v54, %v897_v28  ;;  %v942_v37 = vsel %vm907_vm3, %v9196_v60, %v6922_v56  ;;  %v1131_v22 = vmul.bf16 %v9197_v31, %v6802_v30  ;;  %v375_v31 = vpop.f32.mrb[4].mxu1 }
 0x1a2   : > { %v1132_v59 = vmul.bf16 %v9198_v16, %v6812_v13  ;;  %v903_v55 = vrot.slane %v819_v58, 4  ;;  %1043 = vmatpush1.bf16.msra.mxu1 %v950_v3  ;;  %1002 = vmatpush1.bf16.msra.mxu0 %v942_v37  ;;  %v962_v52 = vsel %vm907_vm3, %v756_v33, %v904_v23  ;;  %v1176_v6 = vmul.bf16 %v9199_v4, %v6952_v38  ;;  %v9200_v13 = vld [vmem:[#allocation15_spill] sm:$0xff]  ;;  %v9201_v58 = vld [vmem:[#allocation10_spill] sm:$0xff]  ;;  %v322_v37 = vpop.f32.mrb[4].mxu0 }
 0x1a3   : > { %v905_v32 = vrot.slane %v821_v46, 4  ;;  %v1178_v28 = vmul.bf16 %v6864_v47, %v6948_v53  ;;  %v871_v56 = vmul.bf16 %v849_v49, %v832_v7  ;;  %1044 = vmatprep.subr.bf16.mxu1 %v970_v0  ;;  %1003 = vmatprep.subr.bf16.mxu0 %v962_v52  ;;  %v1186_v30 = vrot.slane %v1134_v17, 4  ;;  %v828_v15 = vpop.permute.xlu0 %827  ;;  %v830_v34 = vpop.permute.xlu1 %829  ;;  %v5814_v17 = vld [vmem:[%s9122_s1 + $0x10] sm:$0xf] }
 0x1a4   : > { %v1133_v20 = vmul.bf16 %v9201_v58, %v9200_v13  ;;  %v1175_v10 = vmul.bf16 %v9202_v14, %v6943_v11  ;;  %v958_v38 = vsel %vm907_vm3, %v755_v41, %v903_v55  ;;  %v833_v29 = vsel %vm831_vm10, %v826_v44, %v828_v15  ;;  %v324_v16 = vpop.f32.mrb[5].mxu0  ;;  %v377_v55 = vpop.f32.mrb[5].mxu1 }
 0x1a5   : > { %v834_v47 = vsel %vm831_vm10, %v828_v15, %v830_v34  ;;  %v841_v21 = vsel %vm831_vm10, %v830_v34, %v824_v8  ;;  %v966_v49 = vsel %vm907_vm3, %v757_v48, %v905_v32  ;;  %v1184_v53 = vrot.slane %v1132_v59, 4  ;;  %v326_v4 = vpop.f32.mrb[6].mxu0  ;;  %v379_v32 = vpop.f32.mrb[6].mxu1 }
 0x1a6   : > { %v872_v50 = vmul.bf16 %v856_v9, %v833_v29  ;;  %v873_v24 = vmul.bf16 %v863_v18, %v834_v47  ;;  %v874_v25 = vmul.bf16 %v870_v57, %v841_v21  ;;  %1045 = vmatpush1.bf16.msra.mxu1 %v966_v49  ;;  %1004 = vmatpush1.bf16.msra.mxu0 %v958_v38  ;;  %v1192_v11 = vrot.slane %v1176_v6, 4  ;;  %v381_v13 = vpop.f32.mrb[7].mxu1 }
 0x1a7   : > { %v1177_v43 = vmul.bf16 %v6861_v39, %v6970_v45  ;;  %v1194_v1 = vrot.slane %v1178_v28, 4  ;;  %v973_v40 = vsel %vm907_vm3, %v871_v56, 1065369472  ;;  %v1183_v46 = vrot.slane %v1131_v22, 4  ;;  %v328_v56 = vpop.f32.mrb[7].mxu0 }
 0x1a8   : > { %v977_v33 = vsel %vm907_vm3, %v873_v24, 1065369472  ;;  %v975_v61 = vsel %vm907_vm3, %v872_v50, 1065369472  ;;  %v979_v63 = vsel %vm907_vm3, %v874_v25, 1065369472  ;;  %v989_v57 = vand.u32 %v6991_v35, %v973_v40 }
 0x1a9   : > { %v991_v62 = vand.u32 %v6991_v35, %v975_v61  ;;  %v995_v9 = vand.u32 %v6991_v35, %v979_v63  ;;  %v993_v42 = vand.u32 %v6991_v35, %v977_v33  ;;  %v1185_v18 = vrot.slane %v1133_v20, 4 }
 0x1aa   : > { %v1191_v39 = vrot.slane %v1175_v10, 4  ;;  %v1193_v45 = vrot.slane %v1177_v43, 4  ;;  %v1199_v19 = vsel %vm907_vm3, %v1184_v53, %v6518_v26  ;;  %v1205_v12 = vsel %vm907_vm3, %v1186_v30, %v6520_v27 }
 0x1ab   : > { %1005 = vmatprep.subr.bf16.mxu0 %v991_v62  ;;  %1046 = vmatprep.subr.bf16.mxu1 %v995_v9  ;;  %v1210_v23 = vsel %vm907_vm3, %v1192_v11, 1065369472  ;;  %v1214_v41 = vsel %vm907_vm3, %v1194_v1, 1065369472  ;;  %v1196_v8 = vsel %vm907_vm3, %v1183_v46, %v9196_v60  ;;  %v1202_v44 = vsel %vm907_vm3, %v1185_v18, %v9195_v54  ;;  %v5825_v60 = vld [vmem:[%s9122_s1 + $0x20] sm:$0xf] }
 0x1ac   : > { %1006 = vmatpush1.bf16.msra.mxu0 %v989_v57  ;;  %1047 = vmatpush1.bf16.msra.mxu1 %v993_v42  ;;  %v1208_v26 = vsel %vm907_vm3, %v1191_v39, 1065369472  ;;  %v1212_v27 = vsel %vm907_vm3, %v1193_v45, 1065369472  ;;  %v1223_v0 = vand.u32 %v1210_v23, %v6991_v35  ;;  %v1227_v48 = vand.u32 %v1214_v41, %v6991_v35 }
 0x1ad   : > { %1229 = vmatprep.subr.bf16.mxu0 %v1199_v19  ;;  %1270 = vmatprep.subr.bf16.mxu1 %v1205_v12  ;;  %v1221_v7 = vand.u32 %v1208_v26, %v6991_v35  ;;  %v1225_v54 = vand.u32 %v1212_v27, %v6991_v35  ;;  %v9203_v3 = vmov 0   ;;  %v392_v22 = vmax.f32 %v322_v37, 0.0  ;;  %v1343_v27 = vld [vmem:[%s9123_s2 + $0x10] sm:$0x11] }
 0x1ae   : > { %v394_v59 = vmax.f32 %v375_v31, 0.0  ;;  %v393_v52 = vmax.f32 %v324_v16, 0.0  ;;  %v395_v6 = vmax.f32 %v377_v55, 0.0  ;;  %v396_v28 = vmax.f32 %v326_v4, 0.0 }
 0x1af   : > { %5815 = vmatmul.mubr.msk.bf16.vlgmr.msra.gmra.mrb[8].mxu0 %vm982_vm11, %v5814_v17  ;;  %5816 = vmatmul.mubr.msk.bf16.vlgmr.msra.gmra.mrb[8].mxu1 %vm982_vm11, %v5814_v17  ;;  %v398_v30 = vmax.f32 %v379_v32, 0.0  ;;  %v397_v58 = vmax.f32 %v328_v56, 0.0  ;;  %v399_v20 = vmax.f32 %v381_v13, 0.0  ;;  %v7186_v37 = vcombine.high %v1343_v27, %v1343_v27  ;;  %v1460_v32 = vld [vmem:[%s9123_s2 + $0x18] sm:$0x22] }
 0x1b0   : > { %1230 = vmatpush1.bf16.msra.mxu0 %v1196_v8  ;;  %1271 = vmatpush1.bf16.msra.mxu1 %v1202_v44  ;;  %v7072_v14 = vpack.c.bf16 %v396_v28, %v392_v22  ;;  %vm1447_vm6 = vcmask 367616   ;;  %vm1679_vm8 = vcmask 654336   ;;  %vm1627_vm9 = vcmask 678912  }
 0x1b1   : > { %1231 = vmatprep.subr.bf16.mxu0 %v1223_v0  ;;  %1272 = vmatprep.subr.bf16.mxu1 %v1227_v48  ;;  %v7074_v10 = vpack.c.bf16 %v398_v30, %v394_v59  ;;  %v7076_v15 = vpack.c.bf16 %v397_v58, %v393_v52  ;;  %v7078_v34 = vpack.c.bf16 %v399_v20, %v395_v6  ;;  %v1344_v0 = vld [vmem:[%s9123_s2 + $0x18] sm:$0x11]  ;;  %v1414_v52 = vshrl.u32 %v7186_v37, 16  ;;  %v1459_v6 = vld [vmem:[%s9123_s2 + $0x10] sm:$0x22] }
 0x1b2   : > { %1261 = vmatprep.mubr.bf16.mxu0 %v9203_v3  ;;  %1302 = vmatprep.mubr.bf16.mxu1 %v9203_v3  ;;  %9204 = vst [vmem:[#allocation11_spill] sm:$0xff] %v7072_v14  ;;  %v7188_v31 = vcombine.low %v1344_v0, %v1344_v0  ;;  %v1575_v58 = vld [vmem:[%s9123_s2 + $0x10] sm:$0x44]  ;;  %v1576_v20 = vld [vmem:[%s9123_s2 + $0x18] sm:$0x44]  ;;  %vm1743_vm10 = vcmask 629760  }
 0x1b3   : > { %9205 = vst [vmem:[#allocation8_spill] sm:$0xff] %v7074_v10  ;;  %9206 = vst [vmem:[#allocation6_spill] sm:$0xff] %v7076_v15 }
 0x1b4   : > { %1232 = vmatpush1.bf16.msra.mxu0 %v1221_v7  ;;  %1273 = vmatpush1.bf16.msra.mxu1 %v1225_v54  ;;  %9207 = vst [vmem:[#allocation5_spill] sm:$0xff] %v7078_v34  ;;  %v5828_v54 = vcombine.low %v1343_v27, %v1343_v27  ;;  %v1421_v4 = vshrl.u32 %v7188_v31, 16 }
 0x1b6   : > { %v1407_v59 = vshrl.u32 %v5828_v54, 16 }
 0x1b7   : > { %5826 = vmatmul.mubr.msk.bf16.vlgmr.msra.gmra.mrb[12].mxu0 %vm1217_vm12, %v5825_v60  ;;  %5827 = vmatmul.mubr.msk.bf16.vlgmr.msra.gmra.mrb[12].mxu1 %vm1217_vm12, %v5825_v60  ;;  %v5831_v60 = vcombine.high %v1344_v0, %v1344_v0 }
 0x1b8   : > { %1936 = vmatprep.mubr.bf16.mxu0 %v9203_v3  ;;  %1977 = vmatprep.mubr.bf16.mxu1 %v9203_v3  ;;  %v7206_v30 = vpack.i.b16 %v1407_v59, %v1407_v59 }
 0x1b9   : > { %v1428_v55 = vshrl.u32 %v5831_v60, 16 }
 0x1bb   : > { %v7208_v13 = vpack.i.b16 %v1428_v55, %v1428_v55 }
 0x282   : > { %v1031_v38 = vpop.f32.mrb[8].mxu0  ;;  %v1072_v29 = vpop.f32.mrb[8].mxu1 }
 0x283   : > { %v1079_v47 = vpack.c.bf16 %v1031_v38, %v1031_v38  ;;  %v1033_v21 = vpop.f32.mrb[9].mxu0  ;;  %v1081_v49 = vpack.c.bf16 %v1072_v29, %v1072_v29  ;;  %v1074_v53 = vpop.f32.mrb[9].mxu1  ;;  %v7216_v38 = vpack.i.b16 %v1414_v52, %v1414_v52  ;;  %v7218_v29 = vcombine.low %v1459_v6, %v1459_v6 }
 0x284   : > { %v1080_v50 = vpack.c.bf16 %v1033_v21, %v1033_v21  ;;  %v1035_v24 = vpop.f32.mrb[10].mxu0  ;;  %v1082_v25 = vpack.c.bf16 %v1074_v53, %v1074_v53  ;;  %v1076_v11 = vpop.f32.mrb[10].mxu1  ;;  %v7225_v53 = vcombine.low %v1575_v58, %v1575_v58  ;;  %v1363_v52 = vpack.i.b16 %v7186_v37, %v7186_v37 }
 0x285   : > { %1083 = vst [vmem:[#allocation2] sm:$0xf] %v1079_v47  ;;  %1085 = vst [vmem:[#allocation2 + $0x10] sm:$0xf] %v1081_v49  ;;  %v1036_v43 = vpop.f32.mrb[11].mxu0  ;;  %v1077_v1 = vpop.f32.mrb[11].mxu1  ;;  %v7220_v47 = vcombine.high %v1460_v32, %v1460_v32  ;;  %v7223_v49 = vpack.i.b16 %v1421_v4, %v1421_v4  ;;  %v1370_v4 = vpack.i.b16 %v7188_v31, %v7188_v31 }
 0x286   : > { %1084 = vst [vmem:[#allocation2 + $0x8] sm:$0xf] %v1080_v50  ;;  %1086 = vst [vmem:[#allocation2 + $0x18] sm:$0xf] %v1082_v25  ;;  %v7227_v50 = vcombine.high %v1575_v58, %v1575_v58  ;;  %v1691_v24 = vld [vmem:[%s9123_s2 + $0x10] sm:$0x88]  ;;  %v1588_v0 = vpack.i.b16 %v7225_v53, %v7225_v53 }
 0x287   : > { %v7310_v3 = vrot.slane %v1370_v4, %v6602_v51  ;;  %v1639_v4 = vshrl.u32 %v7225_v53, 16 }
 0x28a   : > { %v1263_v40 = vpop.f32.mrb[12].mxu0  ;;  %v1304_v33 = vpop.f32.mrb[12].mxu1 }
 0x28b   : > { %v1311_v61 = vmax.f32 %v1263_v40, 0.0  ;;  %v1265_v63 = vpop.f32.mrb[13].mxu0  ;;  %v1313_v62 = vmax.f32 %v1304_v33, 0.0  ;;  %v1306_v9 = vpop.f32.mrb[13].mxu1  ;;  %v7241_v33 = vcombine.low %v1576_v20, %v1576_v20 }
 0x28c   : > { %v1267_v42 = vpop.f32.mrb[14].mxu0  ;;  %v1308_v46 = vpop.f32.mrb[14].mxu1  ;;  %v1314_v19 = vmax.f32 %v1306_v9, 0.0  ;;  %v1312_v12 = vmax.f32 %v1265_v63, 0.0  ;;  %v1356_v63 = vpack.i.b16 %v5828_v54, %v5828_v54  ;;  %v7245_v9 = vcombine.high %v1576_v20, %v1576_v20 }
 0x28d   : > { %v7080_v18 = vpack.c.bf16 %v1311_v61, %v1311_v61  ;;  %v1268_v57 = vpop.f32.mrb[15].mxu0  ;;  %v1309_v39 = vpop.f32.mrb[15].mxu1  ;;  %v7082_v45 = vpack.c.bf16 %v1313_v62, %v1313_v62  ;;  %v7243_v61 = vcombine.high %v1459_v6, %v1459_v6  ;;  %v1377_v62 = vpack.i.b16 %v5831_v60, %v5831_v60 }
 0x28e   : > { %v7112_v17 = vpack.c.bf16 %v1314_v19, %v1314_v19  ;;  %v7118_v23 = vpack.c.bf16 %v1312_v12, %v1312_v12  ;;  %v7247_v42 = vcombine.low %v1460_v32, %v1460_v32  ;;  %v1523_v57 = vshrl.u32 %v7218_v29, 16  ;;  %v1692_v12 = vld [vmem:[%s9123_s2 + $0x18] sm:$0x88] }
 0x28f   : > { %9208 = vst [vmem:[#allocation7_spill] sm:$0xff] %v7080_v18  ;;  %9209 = vst [vmem:[#allocation9_spill] sm:$0xff] %v7082_v45  ;;  %1555 = vrot.lane.b32.xlu0 %v7080_v18, %s6420_s24  ;;  %1389 = vrot.lane.b32.xlu1 %v7080_v18, %s6421_s25  ;;  %v1544_v39 = vshrl.u32 %v7220_v47, 16  ;;  %v7253_v19 = vcombine.low %v1691_v24, %v1691_v24  ;;  %v1595_v54 = vpack.i.b16 %v7227_v50, %v7227_v50 }
 0x290   : > { %9210 = vst [vmem:[#allocation13_spill] sm:$0xff] %v7112_v17  ;;  %v7264_v60 = vcombine.high %v1691_v24, %v1691_v24  ;;  %v1602_v6 = vpack.i.b16 %v7241_v33, %v7241_v33  ;;  %v1530_v32 = vshrl.u32 %v7243_v61, 16  ;;  %v1609_v58 = vpack.i.b16 %v7245_v9, %v7245_v9 }
 0x291   : > { %v1537_v20 = vshrl.u32 %v7247_v42, 16  ;;  %v7280_v24 = vcombine.low %v1692_v12, %v1692_v12  ;;  %v7282_v25 = vcombine.high %v1692_v12, %v1692_v12  ;;  %v7285_v37 = vrot.slane %v1356_v63, %v6602_v51 }
 0x292   : > { %v7287_v21 = vpack.i.b16 %v1523_v57, %v1523_v57  ;;  %v7289_v31 = vpack.i.b16 %v1544_v39, %v1544_v39  ;;  %v1704_v1 = vpack.i.b16 %v7253_v19, %v7253_v19  ;;  %v7294_v27 = vrot.slane %v1377_v62, %v6602_v51 }
 0x293   : > { %1559 = vrot.lane.b32.xlu0 %v7082_v45, %s6420_s24  ;;  %1393 = vrot.lane.b32.xlu1 %v7082_v45, %s6421_s25  ;;  %v7297_v46 = vrot.slane %v1588_v0, %v6678_v36  ;;  %v7300_v12 = vrot.slane %v1595_v54, %v6678_v36  ;;  %v1711_v63 = vpack.i.b16 %v7264_v60, %v7264_v60 }
 0x294   : > { %v7307_v39 = vrot.slane %v1363_v52, %v6602_v51  ;;  %v7313_v62 = vrot.slane %v1602_v6, %v6678_v36  ;;  %v7315_v0 = vpack.i.b16 %v1530_v32, %v1530_v32  ;;  %v7318_v54 = vrot.slane %v1609_v58, %v6678_v36 }
 0x295   : > { %v1725_v52 = vpack.i.b16 %v7282_v25, %v7282_v25  ;;  %v7331_v32 = vrot.slane %v1704_v1, %v6741_v2  ;;  %v1472_v58 = vpack.i.b16 %v7218_v29, %v7218_v29  ;;  %v1479_v29 = vpack.i.b16 %v7243_v61, %v7243_v61 }
 0x296   : > { %v1653_v61 = vshrl.u32 %v7241_v33, 16  ;;  %v9218_v1 = vrot.slane %v7208_v13, %v6602_v51 }
 0x297   : > { %1671 = vrot.lane.b32.xlu0 %v7080_v18, %s6422_s27  ;;  %1325 = vrot.lane.b32.xlu1 %v7080_v18, %s6423_s6  ;;  %9214 = vst [vmem:[#allocation16_spill] sm:$0xff] %v7331_v32  ;;  %v7385_v32 = vpack.i.b16 %v1639_v4, %v1639_v4  ;;  %v9220_v4 = vrot.slane %v7216_v38, %v6602_v51  ;;  %v1755_v38 = vshrl.u32 %v7253_v19, 16 }
 0x29b   : > { %1675 = vrot.lane.b32.xlu0 %v7082_v45, %s6422_s27  ;;  %1329 = vrot.lane.b32.xlu1 %v7082_v45, %s6423_s6 }
 0x29f   : > { %1619 = vrot.lane.b32.xlu0 %v7080_v18, %s6424_s7  ;;  %1505 = vrot.lane.b32.xlu1 %v7080_v18, %s6425_s8 }
 0x2a3   : > { %1623 = vrot.lane.b32.xlu0 %v7082_v45, %s6424_s7  ;;  %1509 = vrot.lane.b32.xlu1 %v7082_v45, %s6425_s8 }
 0x2a7   : > { %1735 = vrot.lane.b32.xlu0 %v7080_v18, %s6426_s9  ;;  %1441 = vrot.lane.b32.xlu1 %v7080_v18, %s6427_s10  ;;  %v1646_v18 = vshrl.u32 %v7227_v50, 16  ;;  %v7363_v50 = vrot.slane %v1725_v52, %v6741_v2  ;;  %v1660_v52 = vshrl.u32 %v7245_v9, 16 }
 0x2ab   : > { %1387 = vrot.lane.b32.xlu0 %v7112_v17, %s6421_s25  ;;  %1445 = vrot.lane.b32.xlu1 %v7082_v45, %s6427_s10 }
 0x2af   : > { %2012 = vrot.lane.b32.xlu1 %v7072_v14, %s6414_s29  ;;  %1391 = vrot.lane.b32.xlu0 %v7118_v23, %s6421_s25 }
 0x2b3   : > { %2016 = vrot.lane.b32.xlu1 %v7074_v10, %s6414_s29  ;;  %1320 = vrot.lane.b32.xlu0 %v7112_v17, %s6423_s6 }
 0x2b7   : > { %1557 = vrot.lane.b32.xlu1 %v7118_v23, %s6420_s24  ;;  %1327 = vrot.lane.b32.xlu0 %v7118_v23, %s6423_s6 }
 0x2bb   : > { %1561 = vrot.lane.b32.xlu1 %v7112_v17, %s6420_s24  ;;  %1503 = vrot.lane.b32.xlu0 %v7112_v17, %s6425_s8 }
 0x2bf   : > { %1673 = vrot.lane.b32.xlu1 %v7118_v23, %s6422_s27  ;;  %1507 = vrot.lane.b32.xlu0 %v7118_v23, %s6425_s8 }
 0x2c3   : > { %1677 = vrot.lane.b32.xlu1 %v7112_v17, %s6422_s27  ;;  %1439 = vrot.lane.b32.xlu0 %v7112_v17, %s6427_s10 }
 0x2c7   : > { %1621 = vrot.lane.b32.xlu1 %v7118_v23, %s6424_s7  ;;  %1443 = vrot.lane.b32.xlu0 %v7118_v23, %s6427_s10 }
 0x2cb   : > { %1625 = vrot.lane.b32.xlu1 %v7112_v17, %s6424_s7  ;;  %1739 = vrot.lane.b32.xlu0 %v7082_v45, %s6426_s9 }
 0x2cf   : > { %1737 = vrot.lane.b32.xlu1 %v7118_v23, %s6426_s9  ;;  %2007 = vrot.lane.b32.xlu0 %v7078_v34, %s6414_s29 }
 0x2d3   : > { %1741 = vrot.lane.b32.xlu1 %v7112_v17, %s6426_s9  ;;  %2014 = vrot.lane.b32.xlu0 %v7076_v15, %s6414_s29 }
 0x2d7   : > { %2078 = vrot.lane.b32.xlu1 %v7076_v15, %s6413_s28  ;;  %2076 = vrot.lane.b32.xlu0 %v7072_v14, %s6413_s28  ;;  %v1718_v14 = vpack.i.b16 %v7280_v24, %v7280_v24  ;;  %v1493_v15 = vpack.i.b16 %v7220_v47, %v7220_v47  ;;  %v7355_v47 = vld [vmem:[%s9123_s2] sm:$0x22] }
 0x2d8   : > { %v5847_v13 = vcombine.low %v7355_v47, %v7355_v47 }
 0x2d9   : > { %v7383_v45 = vrot.slane %v1493_v15, %v6717_v5 }
 0x2db   : > { %2082 = vrot.lane.b32.xlu1 %v7078_v34, %s6413_s28  ;;  %2080 = vrot.lane.b32.xlu0 %v7074_v10, %s6413_s28  ;;  %v7320_v10 = vpack.i.b16 %v1537_v20, %v1537_v20  ;;  %v7338_v34 = vrot.slane %v1711_v63, %v6741_v2  ;;  %v1486_v63 = vpack.i.b16 %v7247_v42, %v7247_v42  ;;  %v7369_v42 = vld [vmem:[%s9123_s2 + $0x8] sm:$0x22] }
 0x2dc   : > { %v5850_v15 = vcombine.high %v7369_v42, %v7369_v42 }
 0x2dd   : > { %9215 = vst [vmem:[#allocation17_spill] sm:$0xff] %v7338_v34  ;;  %v7397_v9 = vrot.slane %v1486_v63, %v6717_v5  ;;  %v9221_v63 = vrot.slane %v7223_v49, %v6602_v51 }
 0x301   : > { %v7168_v41 = vpop.permute.xlu0 %1555  ;;  %v7170_v8 = vpop.permute.xlu1 %1389 }
 0x305   : > { %v7172_v44 = vpop.permute.xlu0 %1559  ;;  %v7174_v26 = vpop.permute.xlu1 %1393 }
 0x309   : > { %v7182_v48 = vpop.permute.xlu0 %1671  ;;  %v7184_v7 = vpop.permute.xlu1 %1325 }
 0x30d   : > { %v7190_v22 = vpop.permute.xlu0 %1675  ;;  %v7192_v16 = vpop.permute.xlu1 %1329 }
 0x311   : > { %v7202_v28 = vpop.permute.xlu0 %1619  ;;  %v7204_v56 = vpop.permute.xlu1 %1505 }
 0x312   : > { %9211 = vst [vmem:[#allocation15_spill] sm:$0xff] %v7202_v28  ;;  %v7391_v28 = vpack.i.b16 %v1646_v18, %v1646_v18 }
 0x315   : > { %v7233_v11 = vpop.permute.xlu0 %1623  ;;  %v7235_v43 = vpop.permute.xlu1 %1509 }
 0x316   : > { %9212 = vst [vmem:[#allocation10_spill] sm:$0xff] %v7233_v11  ;;  %v7414_v11 = vpack.i.b16 %v1660_v52, %v1660_v52 }
 0x319   : > { %v7266_v59 = vpop.permute.xlu0 %1735  ;;  %v7268_v55 = vpop.permute.xlu1 %1441 }
 0x31a   : > { %9213 = vst [vmem:[#allocation12_spill] sm:$0xff] %v7266_v59 }
 0x31d   : > { %v1388_v40 = vpop.permute.xlu0 %1387  ;;  %v7304_v57 = vpop.permute.xlu1 %1445 }
 0x31e   : > { %v1398_v20 = vsel %vm1395_vm13, %v7174_v26, %v1388_v40 }
 0x31f   : > { %v1438_v59 = vmul.bf16 %v9218_v1, %v1398_v20 }
 0x321   : > { %v7343_v35 = vpop.permute.xlu1 %2012  ;;  %v1392_v6 = vpop.permute.xlu0 %1391 }
 0x322   : > { %9216 = vst [vmem:[#allocation18_spill] sm:$0xff] %v7343_v35  ;;  %v7360_v35 = vrot.slane %v1718_v14, %v6741_v2  ;;  %v1396_v53 = vsel %vm1395_vm13, %v7170_v8, %v1392_v6  ;;  %v7377_v14 = vrot.slane %v1472_v58, %v6717_v5  ;;  %v1397_v33 = vsel %vm1395_vm13, %v1392_v6, %v7174_v26 }
 0x323   : > { %v7394_v58 = vrot.slane %v1479_v29, %v6717_v5  ;;  %v1405_v26 = vsel %vm1395_vm13, %v1388_v40, %v7170_v8  ;;  %v1436_v6 = vmul.bf16 %v9220_v4, %v1396_v53  ;;  %v1794_v29 = vrot.slane %v1438_v59, 4 }
 0x324   : > { %9217 = vst [vmem:[#allocation19_spill] sm:$0xff] %v7360_v35  ;;  %v1437_v17 = vmul.bf16 %v9221_v63, %v1397_v33  ;;  %v1762_v40 = vshrl.u32 %v7264_v60, 16  ;;  %v2041_v53 = vshrl.u32 %v5847_v13, 16  ;;  %v2065_v33 = vshrl.u32 %v5850_v15, 16 }
 0x325   : > { %v7389_v20 = vpop.permute.xlu1 %2016  ;;  %v1321_v1 = vpop.permute.xlu0 %1320  ;;  %v1792_v52 = vrot.slane %v1436_v6, 4  ;;  %v5848_v60 = vcombine.high %v7355_v47, %v7355_v47  ;;  %v1776_v6 = vshrl.u32 %v7282_v25, 16  ;;  %v5849_v25 = vcombine.low %v7369_v42, %v7369_v42 }
 0x326   : > { %9219 = vst [vmem:[#allocation20_spill] sm:$0xff] %v7389_v20  ;;  %v1334_v18 = vsel %vm1331_vm14, %v7192_v16, %v1321_v1  ;;  %v7408_v20 = vpack.i.b16 %v1653_v61, %v1653_v61  ;;  %v1341_v8 = vsel %vm1331_vm14, %v1321_v1, %v7184_v7  ;;  %v9222_v61 = vrot.slane %v7206_v30, %v6602_v51 }
 0x327   : > { %v1386_v35 = vmul.bf16 %v7294_v27, %v1334_v18  ;;  %v1769_v27 = vshrl.u32 %v7280_v24, 16  ;;  %v1793_v30 = vrot.slane %v1437_v17, 4  ;;  %v1383_v13 = vmul.bf16 %v7285_v37, %v1341_v8 }
 0x328   : > { %v1435_v59 = vmul.bf16 %v9222_v61, %v1405_v26  ;;  %v7434_v24 = vpack.i.b16 %v1755_v38, %v1755_v38  ;;  %v7436_v15 = vpack.i.b16 %v1762_v40, %v1762_v40  ;;  %v1652_v18 = vrot.slane %v7391_v28, %v6678_v36 }
 0x329   : > { %v1558_v4 = vpop.permute.xlu1 %1557  ;;  %v1328_v34 = vpop.permute.xlu0 %1327  ;;  %v1833_v49 = vsel %vm907_vm3, %v1386_v35, %v1794_v29  ;;  %v2049_v29 = vshrl.u32 %v5848_v60, 16  ;;  %v1659_v8 = vrot.slane %v7408_v20, %v6678_v36  ;;  %v2066_v38 = vpack.i.b16 %v2065_v33, %v2065_v33 }
 0x32a   : > { %v1332_v1 = vsel %vm1331_vm14, %v7184_v7, %v1328_v34  ;;  %v1333_v19 = vsel %vm1331_vm14, %v1328_v34, %v7192_v16  ;;  %1945 = vmatprep.subr.bf16.mxu1 %v1833_v49  ;;  %v2042_v7 = vpack.i.b16 %v2041_v53, %v2041_v53  ;;  %v1791_v34 = vrot.slane %v1435_v59, 4 }
 0x32b   : > { %v1384_v26 = vmul.bf16 %v7307_v39, %v1332_v1  ;;  %v1385_v35 = vmul.bf16 %v7310_v3, %v1333_v19  ;;  %v1565_v16 = vsel %vm1563_vm15, %v1558_v4, %v7172_v44  ;;  %v1645_v3 = vrot.slane %v7385_v32, %v6678_v36 }
 0x32c   : > { %v1821_v63 = vsel %vm907_vm3, %v1383_v13, %v1791_v34  ;;  %v7452_v40 = vpack.i.b16 %v1769_v27, %v1769_v27  ;;  %v1616_v53 = vmul.bf16 %v7300_v12, %v1565_v16  ;;  %v1666_v59 = vrot.slane %v7414_v11, %v6678_v36  ;;  %v7479_v13 = vld [vmem:[%s9123_s2] sm:$0x44] }
 0x32d   : > { %v1562_v47 = vpop.permute.xlu1 %1561  ;;  %v1504_v17 = vpop.permute.xlu0 %1503  ;;  %v1825_v37 = vsel %vm907_vm3, %v1384_v26, %v1792_v52  ;;  %v1829_v39 = vsel %vm907_vm3, %v1385_v35, %v1793_v30  ;;  %v7459_v42 = vpack.i.b16 %v1776_v6, %v1776_v6  ;;  %v1761_v33 = vrot.slane %v7434_v24, %v6741_v2 }
 0x32e   : > { %1904 = vmatprep.subr.bf16.mxu0 %v1825_v37  ;;  %1946 = vmatpush1.bf16.msra.mxu1 %v1829_v39  ;;  %v1514_v61 = vsel %vm1511_vm0, %v7235_v43, %v1504_v17  ;;  %v1566_v49 = vsel %vm1563_vm15, %v7172_v44, %v1562_v47  ;;  %v1768_v12 = vrot.slane %v7436_v15, %v6741_v2  ;;  %v7474_v44 = vshrl.u32 %v5849_v25, 16 }
 0x32f   : > { %1905 = vmatpush1.bf16.msra.mxu0 %v1821_v63  ;;  %v7468_v27 = vrot.slane %v2042_v7, %v6717_v5  ;;  %v1573_v19 = vsel %vm1563_vm15, %v1562_v47, %v7168_v41  ;;  %v2050_v30 = vpack.i.b16 %v2049_v29, %v2049_v29  ;;  %v1564_v26 = vsel %vm1563_vm15, %v7168_v41, %v1558_v4 }
 0x330   : > { %v9223_v35 = vrot.slane %v7289_v31, %v6717_v5  ;;  %v7487_v6 = vrot.slane %v2066_v38, %v6717_v5  ;;  %v1775_v34 = vrot.slane %v7452_v40, %v6741_v2  ;;  %v1808_v16 = vrot.slane %v1616_v53, 4 }
 0x331   : > { %v1674_v52 = vpop.permute.xlu1 %1673  ;;  %v1508_v1 = vpop.permute.xlu0 %1507  ;;  %v1617_v47 = vmul.bf16 %v7313_v62, %v1566_v49  ;;  %v1782_v39 = vrot.slane %v7459_v42, %v6741_v2  ;;  %v1618_v41 = vmul.bf16 %v7318_v54, %v1573_v19  ;;  %v1521_v31 = vsel %vm1511_vm0, %v1504_v17, %v7204_v56 }
 0x332   : > { %v1512_v60 = vsel %vm1511_vm0, %v7204_v56, %v1508_v1  ;;  %v1554_v7 = vmul.bf16 %v9223_v35, %v1514_v61  ;;  %v1513_v37 = vsel %vm1511_vm0, %v1508_v1, %v7235_v43  ;;  %v9224_v4 = vrot.slane %v7315_v0, %v6717_v5 }
 0x333   : > { %v7504_v62 = vcombine.low %v7479_v13, %v7479_v13  ;;  %v1615_v43 = vmul.bf16 %v7297_v46, %v1564_v26  ;;  %v7510_v54 = vrot.slane %v2050_v30, %v6717_v5  ;;  %v2058_v56 = vpack.i.b16 %v7474_v44, %v7474_v44 }
 0x334   : > { %v1552_v25 = vmul.bf16 %v9224_v4, %v1512_v60  ;;  %v1802_v17 = vrot.slane %v1554_v7, 4  ;;  %v9225_v0 = vrot.slane %v7320_v10, %v6717_v5  ;;  %v1809_v46 = vrot.slane %v1617_v47, 4 }
 0x335   : > { %v1678_v29 = vpop.permute.xlu1 %1677  ;;  %v1440_v63 = vpop.permute.xlu0 %1439  ;;  %v9226_v1 = vrot.slane %v7287_v21, %v6717_v5  ;;  %v1857_v30 = vsel %vm907_vm3, %v7118_v23, %v1808_v16  ;;  %v1810_v26 = vrot.slane %v1618_v41, 4  ;;  %v1681_v10 = vsel %vm1679_vm8, %v1674_v52, %v7190_v22 }
 0x336   : > { %v1450_v38 = vsel %vm1447_vm6, %v7304_v57, %v1440_v63  ;;  %v1553_v53 = vmul.bf16 %v9225_v0, %v1513_v37  ;;  %v1457_v61 = vsel %vm1447_vm6, %v1440_v63, %v7268_v55  ;;  %v1689_v60 = vsel %vm1679_vm8, %v1678_v29, %v7182_v48 }
 0x337   : > { %v1502_v49 = vmul.bf16 %v7383_v45, %v1450_v38  ;;  %v1551_v19 = vmul.bf16 %v9226_v1, %v1521_v31  ;;  %v1800_v35 = vrot.slane %v1552_v25, 4  ;;  %v1682_v47 = vsel %vm1679_vm8, %v7190_v22, %v1678_v29  ;;  %v9227_v29 = vld [vmem:[#allocation17_spill] sm:$0xff]  ;;  %v9228_v38 = vld [vmem:[#allocation10_spill] sm:$0xff]  ;;  %v9231_v1 = vld [vmem:[#allocation15_spill] sm:$0xff] }
 0x338   : > { %v1499_v21 = vmul.bf16 %v7377_v14, %v1457_v61  ;;  %v1801_v16 = vrot.slane %v1553_v53, 4  ;;  %v1734_v41 = vmul.bf16 %v7363_v50, %v1689_v60  ;;  %v1680_v22 = vsel %vm1679_vm8, %v7182_v48, %v1674_v52  ;;  %v2095_v48 = vld [vmem:[%s9123_s2 + $0x8] sm:$0x44] }
 0x339   : > { %v1622_v7 = vpop.permute.xlu1 %1621  ;;  %v1444_v37 = vpop.permute.xlu0 %1443  ;;  %v1849_v45 = vsel %vm907_vm3, %v1502_v49, %v1802_v17  ;;  %v1799_v63 = vrot.slane %v1551_v19, 4  ;;  %v1732_v14 = vmul.bf16 %v9227_v29, %v1681_v10  ;;  %v9229_v17 = vld [vmem:[#allocation19_spill] sm:$0xff]  ;;  %v1807_v52 = vrot.slane %v1615_v43, 4  ;;  %v9236_v29 = vld [vmem:[#allocation20_spill] sm:$0xff] }
 0x33a   : > { %v1448_v31 = vsel %vm1447_vm6, %v7268_v55, %v1444_v37  ;;  %v1449_v23 = vsel %vm1447_vm6, %v1444_v37, %v7304_v57  ;;  %1947 = vmatprep.subr.bf16.mxu1 %v1849_v45  ;;  %v1629_v55 = vsel %vm1627_vm9, %v1622_v7, %v9228_v38  ;;  %v1733_v0 = vmul.bf16 %v9229_v17, %v1682_v47  ;;  %v9232_v37 = vld [vmem:[#allocation16_spill] sm:$0xff] }
 0x33b   : > { %v1500_v4 = vmul.bf16 %v7394_v58, %v1448_v31  ;;  %v1501_v25 = vmul.bf16 %v7397_v9, %v1449_v23  ;;  %v9230_v58 = vld [vmem:[#allocation13_spill] sm:$0xff]  ;;  %v1837_v60 = vsel %vm907_vm3, %v1499_v21, %v1799_v63  ;;  %v1818_v10 = vrot.slane %v1734_v41, 4  ;;  %v9234_v41 = vld [vmem:[#allocation12_spill] sm:$0xff] }
 0x33c   : > { %v1865_v9 = vsel %vm907_vm3, %v9230_v58, %v1810_v26  ;;  %v1668_v26 = vmul.bf16 %v1652_v18, %v1629_v55  ;;  %v1731_v45 = vmul.bf16 %v9232_v37, %v1680_v22  ;;  %v5854_v47 = vcombine.high %v2095_v48, %v2095_v48  ;;  %v9237_v58 = vld [vmem:[#allocation18_spill] sm:$0xff] }
 0x33d   : > { %v1626_v57 = vpop.permute.xlu1 %1625  ;;  %v1740_v61 = vpop.permute.xlu0 %1739  ;;  %v1841_v53 = vsel %vm907_vm3, %v1500_v4, %v1800_v35  ;;  %v1845_v50 = vsel %vm907_vm3, %v1501_v25, %v1801_v16  ;;  %v1628_v35 = vsel %vm1627_vm9, %v9231_v1, %v1622_v7  ;;  %v5852_v21 = vcombine.high %v7479_v13, %v7479_v13  ;;  %v9233_v16 = vld [vmem:[#allocation9_spill] sm:$0xff]  ;;  %v9235_v25 = vld [vmem:[#allocation7_spill] sm:$0xff] }
 0x33e   : > { %v1630_v49 = vsel %vm1627_vm9, %v9228_v38, %v1626_v57  ;;  %v1637_v19 = vsel %vm1627_vm9, %v1626_v57, %v9231_v1  ;;  %1906 = vmatprep.subr.bf16.mxu0 %v1841_v53  ;;  %1948 = vmatpush1.bf16.msra.mxu1 %v1845_v50  ;;  %v5853_v31 = vcombine.low %v2095_v48, %v2095_v48  ;;  %v1816_v23 = vrot.slane %v1732_v14, 4 }
 0x33f   : > { %v1670_v43 = vmul.bf16 %v1666_v59, %v1637_v19  ;;  %1907 = vmatpush1.bf16.msra.mxu0 %v1837_v60  ;;  %1949 = vmatprep.subr.bf16.mxu1 %v1865_v9  ;;  %v1669_v28 = vmul.bf16 %v1659_v8, %v1630_v49  ;;  %v1861_v11 = vsel %vm907_vm3, %v9233_v16, %v1809_v46  ;;  %v1817_v8 = vrot.slane %v1733_v0, 4  ;;  %v9245_v16 = vld [vmem:[#allocation5_spill] sm:$0xff] }
 0x340   : > { %1908 = vmatprep.subr.bf16.mxu0 %v1857_v30  ;;  %v1667_v30 = vmul.bf16 %v1645_v3, %v1628_v35  ;;  %v1853_v20 = vsel %vm907_vm3, %v9235_v25, %v1807_v52  ;;  %v1873_v32 = vsel %vm907_vm3, %v1668_v26, %v1816_v23  ;;  %v1815_v3 = vrot.slane %v1731_v45, 4  ;;  %v9241_v52 = vld [vmem:[#allocation14_spill] sm:$0xff] }
 0x341   : > { %v1738_v18 = vpop.permute.xlu1 %1737  ;;  %v2008_v7 = vpop.permute.xlu0 %2007  ;;  %v1881_v59 = vsel %vm907_vm3, %v1670_v43, %v1818_v10  ;;  %v7594_v22 = vrot.slane %v2058_v56, %v6717_v5  ;;  %v2107_v24 = vpack.i.b16 %v7504_v62, %v7504_v62  ;;  %v1877_v38 = vsel %vm907_vm3, %v1669_v28, %v1817_v8 }
 0x342   : > { %v1744_v13 = vsel %vm1743_vm10, %v9234_v41, %v1738_v18  ;;  %v1745_v4 = vsel %vm1743_vm10, %v1738_v18, %v1740_v61  ;;  %1950 = vmatpush1.bf16.msra.mxu1 %v1861_v11  ;;  %v7600_v15 = vsel %vm599_vm5, %v9236_v29, %v2008_v7  ;;  %v2114_v55 = vpack.i.b16 %v5852_v21, %v5852_v21 }
 0x343   : > { %v1783_v46 = vmul.bf16 %v1761_v33, %v1744_v13  ;;  %v1784_v63 = vmul.bf16 %v1768_v12, %v1745_v4  ;;  %1909 = vmatpush1.bf16.msra.mxu0 %v1853_v20  ;;  %1951 = vmatprep.subr.bf16.mxu1 %v1881_v59  ;;  %v2128_v33 = vpack.i.b16 %v5854_v47, %v5854_v47  ;;  %v9246_v11 = vrot.slane %v9245_v16, 4  ;;  %v9251_v20 = vld [vmem:[#allocation8_spill] sm:$0xff] }
 0x344   : > { %1910 = vmatprep.subr.bf16.mxu0 %v1873_v32  ;;  %v2121_v17 = vpack.i.b16 %v5853_v31, %v5853_v31  ;;  %v1869_v56 = vsel %vm907_vm3, %v1667_v30, %v1815_v3  ;;  %v7621_v9 = vsel %vm599_vm5, %v2008_v7, %v9237_v58  ;;  %v2075_v48 = vmul.bf16 %v7487_v6, %v7600_v15  ;;  %v9243_v31 = vld [vmem:[#allocation6_spill] sm:$0xff]  ;;  %v9247_v30 = vld [vmem:[#allocation11_spill] sm:$0xff] }
 0x345   : > { %v1742_v12 = vpop.permute.xlu1 %1741  ;;  %v2015_v14 = vpop.permute.xlu0 %2014  ;;  %v1886_v62 = vsel %vm907_vm3, %v1784_v63, 1065369472  ;;  %v1884_v57 = vsel %vm907_vm3, %v1783_v46, 1065369472  ;;  %9239 = vst [vmem:[#allocation10_spill] sm:$0xff] %v7621_v9  ;;  %v2133_v35 = vrot.slane %v2128_v33, %v6678_v36  ;;  %v2072_v26 = vmul.bf16 %v7468_v27, %v7621_v9 }
 0x346   : > { %v1746_v0 = vsel %vm1743_vm10, %v1740_v61, %v1742_v12  ;;  %v1753_v44 = vsel %vm1743_vm10, %v1742_v12, %v9234_v41  ;;  %1952 = vmatpush1.bf16.msra.mxu1 %v1877_v38  ;;  %v7617_v61 = vsel %vm599_vm5, %v9237_v58, %v2015_v14  ;;  %v1898_v49 = vand.u32 %v1886_v62, %v9241_v52  ;;  %v5844_v27 = vld [vmem:[%s9122_s1 + $0x30] sm:$0xf] }
 0x347   : > { %v1785_v53 = vmul.bf16 %v1775_v34, %v1746_v0  ;;  %v1786_v50 = vmul.bf16 %v1782_v39, %v1753_v44  ;;  %9238 = vst [vmem:[#allocation17_spill] sm:$0xff] %v7617_v61  ;;  %1911 = vmatpush1.bf16.msra.mxu0 %v1869_v56  ;;  %v2073_v40 = vmul.bf16 %v7510_v54, %v7617_v61  ;;  %v9244_v23 = vrot.slane %v9243_v31, 4  ;;  %v5855_v44 = vld [vmem:[%s9122_s1 + $0x40] sm:$0xf] }
 0x348   : > { %v2112_v34 = vrot.slane %v2107_v24, %v6678_v36  ;;  %v7631_v39 = vsel %vm599_vm5, %v2015_v14, %v9236_v29  ;;  %v1896_v6 = vand.u32 %v1884_v57, %v9241_v52  ;;  %1912 = vmatprep.subr.bf16.mxu0 %v1898_v49  ;;  %v2119_v37 = vrot.slane %v2114_v55, %v6678_v36 }
 0x349   : > { %v1888_v42 = vsel %vm907_vm3, %v1785_v53, 1065369472  ;;  %9240 = vst [vmem:[#allocation19_spill] sm:$0xff] %v7631_v39  ;;  %v2079_v1 = vpop.permute.xlu1 %2078  ;;  %v2077_v19 = vpop.permute.xlu0 %2076  ;;  %v1890_v60 = vsel %vm907_vm3, %v1786_v50, 1065369472  ;;  %v2126_v45 = vrot.slane %v2121_v17, %v6678_v36  ;;  %v2074_v47 = vmul.bf16 %v7594_v22, %v7631_v39 }
 0x34a   : > { %v7636_v10 = vsel %vm651_vm4, %v2077_v19, %v2079_v1  ;;  %v1902_v54 = vand.u32 %v1890_v60, %v9241_v52  ;;  %v1900_v43 = vand.u32 %v1888_v42, %v9241_v52  ;;  %v2148_v28 = vsel %vm907_vm3, %v2073_v40, %v9244_v23 }
 0x34b   : > { %9242 = vst [vmem:[#allocation13_spill] sm:$0xff] %v7636_v10  ;;  %v2134_v21 = vmul.bf16 %v2112_v34, %v7636_v10  ;;  %1913 = vmatpush1.bf16.msra.mxu0 %v1896_v6  ;;  %v2156_v59 = vsel %vm907_vm3, %v2075_v48, %v9246_v11  ;;  %v2138_v41 = vrot.slane %v9247_v30, 4  ;;  %v2140_v8 = vrot.slane %v9251_v20, 4 }
 0x34c   : > { %1953 = vmatprep.subr.bf16.mxu1 %v1902_v54  ;;  %2179 = vmatprep.subr.bf16.mxu0 %v2148_v28  ;;  %v9252_v12 = vmov 0   ;;  %vm3616_vm5 = vcmask 39936  }
 0x34d   : > { %1954 = vmatpush1.bf16.msra.mxu1 %v1900_v43  ;;  %v2083_v18 = vpop.permute.xlu1 %2082  ;;  %v2081_v7 = vpop.permute.xlu0 %2080  ;;  %v2144_v32 = vsel %vm907_vm3, %v2072_v26, %v2138_v41  ;;  %v2159_v3 = vsel %vm907_vm3, %v2134_v21, 1065369472  ;;  %v2152_v24 = vsel %vm907_vm3, %v2074_v47, %v2140_v8 }
 0x34e   : > { %v7660_v13 = vsel %vm651_vm4, %v2083_v18, %v2077_v19  ;;  %v7663_v4 = vsel %vm651_vm4, %v2079_v1, %v2081_v7  ;;  %v7666_v25 = vsel %vm651_vm4, %v2081_v7, %v2083_v18  ;;  %2220 = vmatprep.subr.bf16.mxu1 %v2156_v59  ;;  %5845 = vmatmul.mubr.msk.bf16.vlgmr.msra.gmra.mrb[16].mxu0 %vm982_vm11, %v5844_v27  ;;  %vm3668_vm4 = vcmask 1006592  }
 0x34f   : > { %9248 = vst [vmem:[#allocation15_spill] sm:$0xff] %v7660_v13  ;;  %9249 = vst [vmem:[#allocation16_spill] sm:$0xff] %v7663_v4  ;;  %v2137_v46 = vmul.bf16 %v2133_v35, %v7660_v13  ;;  %v2135_v63 = vmul.bf16 %v2119_v37, %v7663_v4  ;;  %v2136_v22 = vmul.bf16 %v2126_v45, %v7666_v25  ;;  %2180 = vmatpush1.bf16.msra.mxu0 %v2144_v32 }
 0x350   : > { %9250 = vst [vmem:[#allocation9_spill] sm:$0xff] %v7666_v25  ;;  %5846 = vmatmul.mubr.msk.bf16.vlgmr.msra.gmra.mrb[16].mxu1 %vm982_vm11, %v5844_v27  ;;  %2211 = vmatprep.mubr.bf16.mxu0 %v9252_v12  ;;  %v2171_v17 = vand.u32 %v2159_v3, %v9241_v52 }
 0x351   : > { %2221 = vmatpush1.bf16.msra.mxu1 %v2152_v24  ;;  %v2161_v33 = vsel %vm907_vm3, %v2135_v63, 1065369472  ;;  %v2165_v29 = vsel %vm907_vm3, %v2137_v46, 1065369472  ;;  %v2163_v14 = vsel %vm907_vm3, %v2136_v22, 1065369472  ;;  %2252 = vmatprep.mubr.bf16.mxu1 %v9252_v12 }
 0x352   : > { %v2173_v38 = vand.u32 %v2161_v33, %v9241_v52  ;;  %v2177_v55 = vand.u32 %v2165_v29, %v9241_v52  ;;  %v2175_v0 = vand.u32 %v2163_v14, %v9241_v52  ;;  %v2928_v46 = vld [vmem:[%s9123_s2] sm:$0x22]  ;;  %v2929_v63 = vld [vmem:[%s9123_s2 + $0x8] sm:$0x22]  ;;  %v2976_v14 = vld [vmem:[%s9123_s2] sm:$0x44] }
 0x353   : > { %v5877_v32 = vcombine.low %v2928_v46, %v2928_v46  ;;  %v5880_v24 = vcombine.high %v2929_v63, %v2929_v63  ;;  %v5878_v33 = vcombine.high %v2928_v46, %v2928_v46  ;;  %v5879_v29 = vcombine.low %v2929_v63, %v2929_v63 }
 0x354   : > { %2181 = vmatprep.subr.bf16.mxu0 %v2173_v38  ;;  %2222 = vmatprep.subr.bf16.mxu1 %v2177_v55  ;;  %v2291_v38 = vld [vmem:[%s9123_s2 + $0x10] sm:$0x11]  ;;  %v2292_v55 = vld [vmem:[%s9123_s2 + $0x18] sm:$0x11] }
 0x355   : > { %2182 = vmatpush1.bf16.msra.mxu0 %v2171_v17  ;;  %2223 = vmatpush1.bf16.msra.mxu1 %v2175_v0  ;;  %v2977_v17 = vld [vmem:[%s9123_s2 + $0x8] sm:$0x44]  ;;  %v2941_v0 = vshrl.u32 %v5877_v32, 16  ;;  %v2403_v32 = vld [vmem:[%s9123_s2 + $0x10] sm:$0x22] }
 0x358   : > { %5856 = vmatmul.mubr.msk.bf16.vlgmr.msra.gmra.mrb[20].mxu0 %vm1217_vm12, %v5855_v44  ;;  %5857 = vmatmul.mubr.msk.bf16.vlgmr.msra.gmra.mrb[20].mxu1 %vm1217_vm12, %v5855_v44 }
 0x359   : > { %2870 = vmatprep.mubr.bf16.mxu0 %v9252_v12  ;;  %2911 = vmatprep.mubr.bf16.mxu1 %v9252_v12 }
 0x421   : > { %v1938_v56 = vpop.f32.mrb[16].mxu0 }
 0x422   : > { %v1986_v62 = vpack.c.bf16 %v1938_v56, %v1938_v56  ;;  %v1940_v57 = vpop.f32.mrb[17].mxu0 }
 0x423   : > { %v1979_v53 = vpop.f32.mrb[16].mxu1  ;;  %v1987_v50 = vpack.c.bf16 %v1940_v57, %v1940_v57  ;;  %v1942_v58 = vpop.f32.mrb[18].mxu0  ;;  %v5881_v57 = vcombine.low %v2976_v14, %v2976_v14 }
 0x424   : > { %v1988_v48 = vpack.c.bf16 %v1979_v53, %v1979_v53  ;;  %v1981_v40 = vpop.f32.mrb[17].mxu1  ;;  %v1994_v34 = vrot.slane %v1986_v62, 4  ;;  %v1943_v42 = vpop.f32.mrb[19].mxu0  ;;  %v2965_v62 = vshrl.u32 %v5880_v24, 16  ;;  %v7791_v53 = vcombine.low %v2291_v38, %v2291_v38  ;;  %v2404_v24 = vld [vmem:[%s9123_s2 + $0x18] sm:$0x22] }
 0x425   : > { %v1989_v49 = vpack.c.bf16 %v1981_v40, %v1981_v40  ;;  %v1983_v1 = vpop.f32.mrb[18].mxu1  ;;  %v1995_v19 = vrot.slane %v1987_v50, 4  ;;  %v7793_v50 = vcombine.high %v2292_v55, %v2292_v55  ;;  %v2949_v58 = vshrl.u32 %v5878_v33, 16 }
 0x426   : > { %v1996_v60 = vrot.slane %v1988_v48, 4  ;;  %v1984_v6 = vpop.f32.mrb[19].mxu1  ;;  %2002 = vst [vmem:[#allocation2] sm:$0xf0] %v1994_v34  ;;  %v2957_v48 = vshrl.u32 %v5879_v29, 16  ;;  %v5884_v40 = vcombine.high %v2977_v17, %v2977_v17  ;;  %v5882_v34 = vcombine.high %v2976_v14, %v2976_v14 }
 0x427   : > { %v1997_v54 = vrot.slane %v1989_v49, 4  ;;  %2003 = vst [vmem:[#allocation2 + $0x8] sm:$0xf0] %v1995_v19  ;;  %v7795_v42 = vcombine.high %v2291_v38, %v2291_v38  ;;  %v2942_v49 = vpack.i.b16 %v2941_v0, %v2941_v0  ;;  %v5883_v1 = vcombine.low %v2977_v17, %v2977_v17 }
 0x428   : > { %2004 = vst [vmem:[#allocation2 + $0x10] sm:$0xf0] %v1996_v60  ;;  %v7801_v6 = vcombine.low %v2292_v55, %v2292_v55 }
 0x429   : > { %2005 = vst [vmem:[#allocation2 + $0x18] sm:$0xf0] %v1997_v54  ;;  %v2966_v54 = vpack.i.b16 %v2965_v62, %v2965_v62 }
 0x42a   : > { %v2367_v63 = vshrl.u32 %v7801_v6, 16  ;;  %v2318_v9 = vpack.i.b16 %v7801_v6, %v7801_v6 }
 0x42b   : > { %v2213_v35 = vpop.f32.mrb[20].mxu0  ;;  %v2254_v37 = vpop.f32.mrb[20].mxu1  ;;  %v7824_v33 = vrot.slane %v2966_v54, %v6717_v5 }
 0x42c   : > { %v2261_v26 = vmax.f32 %v2213_v35, 0.0  ;;  %v2215_v43 = vpop.f32.mrb[21].mxu0  ;;  %v2263_v45 = vmax.f32 %v2254_v37, 0.0  ;;  %v2256_v21 = vpop.f32.mrb[21].mxu1  ;;  %v2989_v35 = vpack.i.b16 %v5881_v57, %v5881_v57  ;;  %v2950_v37 = vpack.i.b16 %v2949_v58, %v2949_v58 }
 0x42d   : > { %v2217_v47 = vpop.f32.mrb[22].mxu0  ;;  %v2258_v27 = vpop.f32.mrb[22].mxu1  ;;  %v2264_v11 = vmax.f32 %v2256_v21, 0.0  ;;  %v2262_v59 = vmax.f32 %v2215_v43, 0.0  ;;  %v2374_v43 = vshrl.u32 %v7793_v50, 16  ;;  %v2996_v21 = vpack.i.b16 %v5882_v34, %v5882_v34 }
 0x42e   : > { %v7693_v23 = vpack.c.bf16 %v2261_v26, %v2261_v26  ;;  %v2218_v28 = vpop.f32.mrb[23].mxu0  ;;  %v2259_v18 = vpop.f32.mrb[23].mxu1  ;;  %v7695_v7 = vpack.c.bf16 %v2263_v45, %v2263_v45  ;;  %v2353_v26 = vshrl.u32 %v7791_v53, 16  ;;  %v2958_v45 = vpack.i.b16 %v2957_v48, %v2957_v48  ;;  %v2515_v27 = vld [vmem:[%s9123_s2 + $0x10] sm:$0x44] }
 0x42f   : > { %v7717_v41 = vpack.c.bf16 %v2264_v11, %v2264_v11  ;;  %v7723_v8 = vpack.c.bf16 %v2262_v59, %v2262_v59  ;;  %v3010_v47 = vpack.i.b16 %v5884_v40, %v5884_v40  ;;  %v2360_v28 = vshrl.u32 %v7795_v42, 16  ;;  %v2516_v48 = vld [vmem:[%s9123_s2 + $0x18] sm:$0x44] }
 0x430   : > { %9253 = vst [vmem:[#allocation12_spill] sm:$0xff] %v7693_v23  ;;  %9254 = vst [vmem:[#allocation7_spill] sm:$0xff] %v7695_v7  ;;  %2497 = vrot.lane.b32.xlu0 %v7693_v23, %s6420_s24  ;;  %2337 = vrot.lane.b32.xlu1 %v7693_v23, %s6421_s25  ;;  %v7810_v18 = vrot.slane %v2942_v49, %v6717_v5  ;;  %v3003_v11 = vpack.i.b16 %v5883_v1, %v5883_v1 }
 0x431   : > { %v7827_v29 = vrot.slane %v2989_v35, %v6678_v36  ;;  %v7829_v14 = vpack.i.b16 %v2353_v26, %v2353_v26  ;;  %v2375_v38 = vpack.i.b16 %v2374_v43, %v2374_v43  ;;  %v7832_v55 = vrot.slane %v2950_v37, %v6717_v5 }
 0x432   : > { %9255 = vst [vmem:[#allocation20_spill] sm:$0xff] %v7810_v18  ;;  %v7835_v17 = vrot.slane %v2958_v45, %v6717_v5  ;;  %v7838_v0 = vrot.slane %v3010_v47, %v6678_v36  ;;  %v7840_v62 = vcombine.low %v2515_v27, %v2515_v27  ;;  %v7843_v57 = vrot.slane %v2996_v21, %v6678_v36 }
 0x433   : > { %9256 = vst [vmem:[#allocation18_spill] sm:$0xff] %v7827_v29  ;;  %9257 = vst [vmem:[#allocation21_spill] sm:$0xff] %v7832_v55  ;;  %v7845_v58 = vpack.i.b16 %v2360_v28, %v2360_v28  ;;  %v7850_v40 = vcombine.low %v2403_v32, %v2403_v32  ;;  %v7852_v34 = vcombine.high %v2404_v24, %v2404_v24  ;;  %v2627_v28 = vld [vmem:[%s9123_s2 + $0x10] sm:$0x88] }
 0x434   : > { %2501 = vrot.lane.b32.xlu0 %v7695_v7, %s6420_s24  ;;  %2341 = vrot.lane.b32.xlu1 %v7695_v7, %s6421_s25  ;;  %9258 = vst [vmem:[#allocation22_spill] sm:$0xff] %v7835_v17  ;;  %9259 = vst [vmem:[#allocation23_spill] sm:$0xff] %v7838_v0  ;;  %v7857_v1 = vrot.slane %v3003_v11, %v6678_v36  ;;  %v7863_v26 = vpack.i.b16 %v2367_v63, %v2367_v63 }
 0x435   : > { %9260 = vst [vmem:[#allocation24_spill] sm:$0xff] %v7843_v57  ;;  %v7865_v43 = vcombine.high %v2403_v32, %v2403_v32  ;;  %v2380_v45 = vrot.slane %v2375_v38, %v6602_v51  ;;  %v2304_v47 = vpack.i.b16 %v7791_v53, %v7791_v53  ;;  %v7872_v21 = vcombine.high %v2515_v27, %v2515_v27 }
 0x436   : > { %9261 = vst [vmem:[#allocation25_spill] sm:$0xff] %v7857_v1  ;;  %v2325_v11 = vpack.i.b16 %v7793_v50, %v7793_v50  ;;  %v2528_v63 = vpack.i.b16 %v7840_v62, %v7840_v62  ;;  %v7881_v32 = vcombine.low %v2516_v48, %v2516_v48  ;;  %v7883_v49 = vcombine.high %v2516_v48, %v2516_v48 }
 0x437   : > { %v2366_v38 = vrot.slane %v7845_v58, %v6602_v51  ;;  %v2465_v53 = vshrl.u32 %v7850_v40, 16  ;;  %v2486_v27 = vshrl.u32 %v7852_v34, 16  ;;  %v7889_v37 = vcombine.low %v2404_v24, %v2404_v24 }
 0x438   : > { %2609 = vrot.lane.b32.xlu0 %v7693_v23, %s6422_s27  ;;  %2275 = vrot.lane.b32.xlu1 %v7693_v23, %s6423_s6  ;;  %v2373_v50 = vrot.slane %v7863_v26, %v6602_v51  ;;  %v7895_v30 = vcombine.low %v2627_v28, %v2627_v28  ;;  %v7897_v16 = vcombine.high %v2627_v28, %v2627_v28  ;;  %v2472_v48 = vshrl.u32 %v7865_v43, 16  ;;  %v2628_v26 = vld [vmem:[%s9123_s2 + $0x18] sm:$0x88] }
 0x439   : > { %v7901_v58 = vrot.slane %v2304_v47, %v6602_v51  ;;  %v2535_v31 = vpack.i.b16 %v7872_v21, %v7872_v21  ;;  %v2311_v24 = vpack.i.b16 %v7795_v42, %v7795_v42  ;;  %v2330_v28 = vrot.slane %v2325_v11, %v6602_v51 }
 0x43a   : > { %v7914_v18 = vrot.slane %v2528_v63, %v6678_v36  ;;  %v2542_v47 = vpack.i.b16 %v7881_v32, %v7881_v32  ;;  %v2549_v52 = vpack.i.b16 %v7883_v49, %v7883_v49  ;;  %v7922_v1 = vpack.i.b16 %v2465_v53, %v2465_v53 }
 0x43b   : > { %v7924_v6 = vpack.i.b16 %v2486_v27, %v2486_v27  ;;  %v2479_v25 = vshrl.u32 %v7889_v37, 16  ;;  %v2640_v63 = vpack.i.b16 %v7895_v30, %v7895_v30  ;;  %v2647_v10 = vpack.i.b16 %v7897_v16, %v7897_v16 }
 0x43c   : > { %2613 = vrot.lane.b32.xlu0 %v7695_v7, %s6422_s27  ;;  %2279 = vrot.lane.b32.xlu1 %v7695_v7, %s6423_s6  ;;  %v7933_v17 = vpack.i.b16 %v2472_v48, %v2472_v48  ;;  %v7935_v39 = vcombine.low %v2628_v26, %v2628_v26  ;;  %v7938_v53 = vrot.slane %v2535_v31, %v6678_v36 }
 0x43d   : > { %v2316_v27 = vrot.slane %v2311_v24, %v6602_v51  ;;  %v2323_v57 = vrot.slane %v2318_v9, %v6602_v51  ;;  %v7942_v4 = vcombine.high %v2628_v26, %v2628_v26  ;;  %v7950_v48 = vrot.slane %v2549_v52, %v6678_v36 }
 0x43e   : > { %v7958_v26 = vpack.i.b16 %v2479_v25, %v2479_v25  ;;  %v7966_v52 = vrot.slane %v2647_v10, %v6741_v2  ;;  %v2416_v55 = vpack.i.b16 %v7850_v40, %v7850_v40  ;;  %v2598_v40 = vshrl.u32 %v7883_v49, 16 }
 0x440   : > { %2559 = vrot.lane.b32.xlu0 %v7693_v23, %s6424_s7  ;;  %2449 = vrot.lane.b32.xlu1 %v7693_v23, %s6425_s8 }
 0x444   : > { %2335 = vrot.lane.b32.xlu0 %v7717_v41, %s6421_s25  ;;  %2453 = vrot.lane.b32.xlu1 %v7695_v7, %s6425_s8 }
 0x448   : > { %2387 = vrot.lane.b32.xlu1 %v7693_v23, %s6427_s10  ;;  %2339 = vrot.lane.b32.xlu0 %v7723_v8, %s6421_s25 }
 0x44c   : > { %2391 = vrot.lane.b32.xlu1 %v7695_v7, %s6427_s10  ;;  %2270 = vrot.lane.b32.xlu0 %v7717_v41, %s6423_s6 }
 0x450   : > { %2499 = vrot.lane.b32.xlu1 %v7723_v8, %s6420_s24  ;;  %2277 = vrot.lane.b32.xlu0 %v7723_v8, %s6423_s6  ;;  %s6428_s6 = smov 123  }
 0x454   : > { %2503 = vrot.lane.b32.xlu1 %v7717_v41, %s6420_s24  ;;  %2447 = vrot.lane.b32.xlu0 %v7717_v41, %s6425_s8 }
 0x458   : > { %2611 = vrot.lane.b32.xlu1 %v7723_v8, %s6422_s27  ;;  %2451 = vrot.lane.b32.xlu0 %v7723_v8, %s6425_s8 }
 0x45c   : > { %2615 = vrot.lane.b32.xlu1 %v7717_v41, %s6422_s27  ;;  %2385 = vrot.lane.b32.xlu0 %v7717_v41, %s6427_s10 }
 0x460   : > { %2561 = vrot.lane.b32.xlu1 %v7723_v8, %s6424_s7  ;;  %2389 = vrot.lane.b32.xlu0 %v7723_v8, %s6427_s10 }
 0x464   : > { %2565 = vrot.lane.b32.xlu1 %v7717_v41, %s6424_s7  ;;  %2563 = vrot.lane.b32.xlu0 %v7695_v7, %s6424_s7 }
 0x468   : > { %2673 = vrot.lane.b32.xlu1 %v7723_v8, %s6426_s9  ;;  %2671 = vrot.lane.b32.xlu0 %v7693_v23, %s6426_s9  ;;  %v7947_v23 = vrot.slane %v2542_v47, %v6678_v36  ;;  %v7963_v47 = vrot.slane %v2640_v63, %v6741_v2  ;;  %v2661_v63 = vpack.i.b16 %v7942_v4, %v7942_v4 }
 0x46a   : > { %9262 = vst [vmem:[#allocation26_spill] sm:$0xff] %v7963_v47 }
 0x46c   : > { %2677 = vrot.lane.b32.xlu1 %v7717_v41, %s6426_s9  ;;  %2675 = vrot.lane.b32.xlu0 %v7695_v7, %s6426_s9  ;;  %s6442_s9 = smov 101  }
 0x4a2   : > { %v7771_v3 = vpop.permute.xlu0 %2497  ;;  %v7773_v22 = vpop.permute.xlu1 %2337 }
 0x4a6   : > { %v7787_v44 = vpop.permute.xlu0 %2501  ;;  %v7789_v56 = vpop.permute.xlu1 %2341 }
 0x4aa   : > { %v7797_v19 = vpop.permute.xlu0 %2609  ;;  %v7799_v60 = vpop.permute.xlu1 %2275 }
 0x4ae   : > { %v7812_v59 = vpop.permute.xlu0 %2613  ;;  %v7814_v46 = vpop.permute.xlu1 %2279 }
 0x4b2   : > { %v7859_v54 = vpop.permute.xlu0 %2559  ;;  %v7861_v35 = vpop.permute.xlu1 %2449 }
 0x4b6   : > { %v2336_v12 = vpop.permute.xlu0 %2335  ;;  %v7891_v20 = vpop.permute.xlu1 %2453 }
 0x4b7   : > { %v2345_v42 = vsel %vm1395_vm13, %v7789_v56, %v2336_v12  ;;  %v2351_v24 = vsel %vm1395_vm13, %v2336_v12, %v7773_v22  ;;  %v2577_v12 = vshrl.u32 %v7840_v62, 16  ;;  %v2591_v62 = vshrl.u32 %v7881_v32, 16 }
 0x4b8   : > { %v2384_v0 = vmul.bf16 %v2380_v45, %v2345_v42 }
 0x4b9   : > { %v8002_v49 = vpack.i.b16 %v2577_v12, %v2577_v12  ;;  %v8024_v12 = vpack.i.b16 %v2591_v62, %v2591_v62  ;;  %v2703_v62 = vshrl.u32 %v7935_v39, 16 }
 0x4ba   : > { %v7927_v29 = vpop.permute.xlu1 %2387  ;;  %v2340_v11 = vpop.permute.xlu0 %2339  ;;  %v2728_v7 = vrot.slane %v2384_v0, 4 }
 0x4bb   : > { %v2343_v13 = vsel %vm1395_vm13, %v7773_v22, %v2340_v11  ;;  %v2344_v31 = vsel %vm1395_vm13, %v2340_v11, %v7789_v56  ;;  %v2654_v11 = vpack.i.b16 %v7935_v39, %v7935_v39  ;;  %v9263_v22 = vrot.slane %v7829_v14, %v6602_v51 }
 0x4bc   : > { %v2382_v25 = vmul.bf16 %v2366_v38, %v2343_v13  ;;  %v2383_v47 = vmul.bf16 %v2373_v50, %v2344_v31  ;;  %v2437_v13 = vpack.i.b16 %v7852_v34, %v7852_v34  ;;  %v2584_v31 = vshrl.u32 %v7872_v21, 16 }
 0x4bd   : > { %v2381_v0 = vmul.bf16 %v9263_v22, %v2351_v24  ;;  %v2423_v21 = vpack.i.b16 %v7865_v43, %v7865_v43  ;;  %v8018_v43 = vpack.i.b16 %v2598_v40, %v2598_v40 }
 0x4be   : > { %v7960_v45 = vpop.permute.xlu1 %2391  ;;  %v2271_v42 = vpop.permute.xlu0 %2270  ;;  %v2727_v14 = vrot.slane %v2383_v47, 4 }
 0x4bf   : > { %v2283_v9 = vsel %vm1331_vm14, %v7814_v46, %v2271_v42  ;;  %v2289_v56 = vsel %vm1331_vm14, %v2271_v42, %v7799_v60 }
 0x4c0   : > { %v2334_v10 = vmul.bf16 %v2330_v28, %v2283_v9  ;;  %v2726_v9 = vrot.slane %v2382_v25, 4  ;;  %v2331_v24 = vmul.bf16 %v7901_v58, %v2289_v56  ;;  %v8016_v56 = vrot.slane %v2416_v55, %v6717_v5 }
 0x4c1   : > { %v2583_v55 = vrot.slane %v8002_v49, %v6678_v36 }
 0x4c2   : > { %v2500_v38 = vpop.permute.xlu1 %2499  ;;  %v2278_v50 = vpop.permute.xlu0 %2277  ;;  %v2767_v28 = vsel %vm907_vm3, %v2334_v10, %v2728_v7  ;;  %v8000_v7 = vrot.slane %v2654_v11, %v6741_v2  ;;  %v2442_v10 = vrot.slane %v2437_v13, %v6717_v5 }
 0x4c3   : > { %v2281_v42 = vsel %vm1331_vm14, %v7799_v60, %v2278_v50  ;;  %v2282_v34 = vsel %vm1331_vm14, %v2278_v50, %v7814_v46  ;;  %2879 = vmatprep.subr.bf16.mxu1 %v2767_v28  ;;  %v2430_v60 = vpack.i.b16 %v7889_v37, %v7889_v37  ;;  %v2725_v46 = vrot.slane %v2381_v0, 4 }
 0x4c4   : > { %v2332_v22 = vmul.bf16 %v2316_v27, %v2281_v42  ;;  %v2333_v61 = vmul.bf16 %v2323_v57, %v2282_v34  ;;  %v2506_v32 = vsel %vm1563_vm15, %v2500_v38, %v7787_v44  ;;  %v8013_v27 = vrot.slane %v2661_v63, %v6741_v2 }
 0x4c5   : > { %v8020_v37 = vpack.i.b16 %v2584_v31, %v2584_v31  ;;  %v2755_v11 = vsel %vm907_vm3, %v2331_v24, %v2725_v46  ;;  %v2556_v0 = vmul.bf16 %v7938_v53, %v2506_v32  ;;  %v2428_v50 = vrot.slane %v2423_v21, %v6717_v5 }
 0x4c6   : > { %v2504_v47 = vpop.permute.xlu1 %2503  ;;  %v2448_v25 = vpop.permute.xlu0 %2447  ;;  %v2759_v58 = vsel %vm907_vm3, %v2332_v22, %v2726_v9  ;;  %v2763_v57 = vsel %vm907_vm3, %v2333_v61, %v2727_v14  ;;  %v2689_v61 = vshrl.u32 %v7895_v30, 16  ;;  %v2435_v31 = vrot.slane %v2430_v60, %v6717_v5 }
 0x4c7   : > { %2838 = vmatprep.subr.bf16.mxu0 %v2759_v58  ;;  %2880 = vmatpush1.bf16.msra.mxu1 %v2763_v57  ;;  %v2457_v63 = vsel %vm1511_vm0, %v7891_v20, %v2448_v25  ;;  %v2513_v28 = vsel %vm1563_vm15, %v2504_v47, %v7771_v3  ;;  %v2710_v30 = vshrl.u32 %v7942_v4, 16  ;;  %v2696_v53 = vshrl.u32 %v7897_v16, 16 }
 0x4c8   : > { %2839 = vmatpush1.bf16.msra.mxu0 %v2755_v11  ;;  %v2463_v9 = vsel %vm1511_vm0, %v2448_v25, %v7861_v35  ;;  %v2604_v42 = vrot.slane %v8018_v43, %v6678_v36  ;;  %v2590_v34 = vrot.slane %v8020_v37, %v6678_v36  ;;  %v9264_v14 = vrot.slane %v7924_v6, %v6717_v5 }
 0x4c9   : > { %v2597_v16 = vrot.slane %v8024_v12, %v6678_v36  ;;  %v8052_v22 = vpack.i.b16 %v2689_v61, %v2689_v61  ;;  %v2505_v21 = vsel %vm1563_vm15, %v7771_v3, %v2500_v38  ;;  %v2742_v60 = vrot.slane %v2556_v0, 4 }
 0x4ca   : > { %v2612_v40 = vpop.permute.xlu1 %2611  ;;  %v2452_v13 = vpop.permute.xlu0 %2451  ;;  %v2496_v24 = vmul.bf16 %v9264_v14, %v2457_v63  ;;  %v2558_v46 = vmul.bf16 %v7950_v48, %v2513_v28  ;;  %v2507_v6 = vsel %vm1563_vm15, %v7787_v44, %v2504_v47  ;;  %v8064_v57 = vpack.i.b16 %v2710_v30, %v2710_v30 }
 0x4cb   : > { %v2455_v4 = vsel %vm1511_vm0, %v7861_v35, %v2452_v13  ;;  %v2456_v39 = vsel %vm1511_vm0, %v2452_v13, %v7891_v20  ;;  %v9265_v35 = vrot.slane %v7922_v1, %v6717_v5  ;;  %v8066_v37 = vpack.i.b16 %v2696_v53, %v2696_v53 }
 0x4cc   : > { %v9266_v3 = vrot.slane %v7933_v17, %v6717_v5  ;;  %v8075_v38 = vpack.i.b16 %v2703_v62, %v2703_v62  ;;  %v2555_v1 = vmul.bf16 %v7914_v18, %v2505_v21  ;;  %v2736_v47 = vrot.slane %v2496_v24, 4 }
 0x4cd   : > { %v2493_v32 = vmul.bf16 %v9265_v35, %v2463_v9  ;;  %v9267_v11 = vrot.slane %v7958_v26, %v6717_v5  ;;  %v2557_v63 = vmul.bf16 %v7947_v23, %v2507_v6  ;;  %v2744_v17 = vrot.slane %v2558_v46, 4 }
 0x4ce   : > { %v2616_v25 = vpop.permute.xlu1 %2615  ;;  %v2386_v58 = vpop.permute.xlu0 %2385  ;;  %v2494_v48 = vmul.bf16 %v9266_v3, %v2455_v4  ;;  %v2791_v13 = vsel %vm907_vm3, %v7723_v8, %v2742_v60  ;;  %v2618_v53 = vsel %vm1679_vm8, %v2612_v40, %v7812_v59  ;;  %v2617_v46 = vsel %vm1679_vm8, %v7797_v19, %v2612_v40  ;;  %v9268_v3 = vld [vmem:[#allocation17_spill] sm:$0xff] }
 0x4cf   : > { %v2395_v20 = vsel %vm1447_vm6, %v7960_v45, %v2386_v58  ;;  %v2401_v44 = vsel %vm1447_vm6, %v2386_v58, %v7927_v29  ;;  %v2495_v61 = vmul.bf16 %v9267_v11, %v2456_v39  ;;  %v2625_v28 = vsel %vm1679_vm8, %v2616_v25, %v7797_v19  ;;  %v9271_v11 = vld [vmem:[#allocation7_spill] sm:$0xff] }
 0x4d0   : > { %v2446_v0 = vmul.bf16 %v2442_v10, %v2395_v20  ;;  %v2733_v30 = vrot.slane %v2493_v32, 4  ;;  %v2443_v18 = vmul.bf16 %v8016_v56, %v2401_v44  ;;  %v2734_v10 = vrot.slane %v2494_v48, 4  ;;  %v9269_v48 = vld [vmem:[#allocation21_spill] sm:$0xff]  ;;  %v9270_v44 = vld [vmem:[#allocation26_spill] sm:$0xff] }
 0x4d1   : > { %v2619_v23 = vsel %vm1679_vm8, %v7812_v59, %v2616_v25  ;;  %v2735_v24 = vrot.slane %v2495_v61, 4  ;;  %v2670_v4 = vmul.bf16 %v8013_v27, %v2625_v28  ;;  %v2743_v60 = vrot.slane %v2557_v63, 4 }
 0x4d2   : > { %v2562_v9 = vpop.permute.xlu1 %2561  ;;  %v2390_v62 = vpop.permute.xlu0 %2389  ;;  %v2783_v26 = vsel %vm907_vm3, %v2446_v0, %v2736_v47  ;;  %v2668_v39 = vmul.bf16 %v7966_v52, %v2618_v53  ;;  %v2799_v59 = vsel %vm907_vm3, %v7717_v41, %v2744_v17  ;;  %v2771_v27 = vsel %vm907_vm3, %v2443_v18, %v2733_v30  ;;  %v9275_v53 = vld [vmem:[#allocation16_spill] sm:$0xff] }
 0x4d3   : > { %v2393_v14 = vsel %vm1447_vm6, %v7927_v29, %v2390_v62  ;;  %v2394_v8 = vsel %vm1447_vm6, %v2390_v62, %v7960_v45  ;;  %2881 = vmatprep.subr.bf16.mxu1 %v2783_v26  ;;  %v2669_v29 = vmul.bf16 %v8000_v7, %v2619_v23  ;;  %v2752_v41 = vrot.slane %v2670_v4, 4  ;;  %v9276_v18 = vld [vmem:[#allocation24_spill] sm:$0xff]  ;;  %v9278_v23 = vld [vmem:[#allocation22_spill] sm:$0xff] }
 0x4d4   : > { %v2444_v21 = vmul.bf16 %v2428_v50, %v2393_v14  ;;  %v2445_v56 = vmul.bf16 %v2435_v31, %v2394_v8  ;;  %v2741_v50 = vrot.slane %v2555_v1, 4  ;;  %v2567_v7 = vsel %vm1627_vm9, %v7859_v54, %v2562_v9 }
 0x4d5   : > { %v2975_v58 = vmul.bf16 %v7824_v33, %v7600_v15  ;;  %v2973_v20 = vmul.bf16 %v9269_v48, %v9268_v3  ;;  %v2667_v1 = vmul.bf16 %v9270_v44, %v2617_v46  ;;  %v2695_v47 = vrot.slane %v8052_v22, %v6741_v2  ;;  %v9272_v22 = vld [vmem:[#allocation12_spill] sm:$0xff]  ;;  %v9279_v46 = vld [vmem:[#allocation13_spill] sm:$0xff] }
 0x4d6   : > { %v2566_v6 = vpop.permute.xlu1 %2565  ;;  %v2564_v35 = vpop.permute.xlu0 %2563  ;;  %v2775_v45 = vsel %vm907_vm3, %v2444_v21, %v2734_v10  ;;  %v2779_v32 = vsel %vm907_vm3, %v2445_v56, %v2735_v24  ;;  %v2795_v61 = vsel %vm907_vm3, %v9271_v11, %v2743_v60  ;;  %v2605_v33 = vmul.bf16 %v2583_v55, %v2567_v7  ;;  %v9273_v55 = vld [vmem:[#allocation15_spill] sm:$0xff]  ;;  %v9284_v48 = vld [vmem:[#allocation20_spill] sm:$0xff] }
 0x4d7   : > { %v2575_v31 = vsel %vm1627_vm9, %v2566_v6, %v7859_v54  ;;  %v2568_v19 = vsel %vm1627_vm9, %v2562_v9, %v2564_v35  ;;  %v2569_v52 = vsel %vm1627_vm9, %v2564_v35, %v2566_v6  ;;  %2840 = vmatprep.subr.bf16.mxu0 %v2775_v45  ;;  %2882 = vmatpush1.bf16.msra.mxu1 %v2779_v32  ;;  %v2750_v54 = vrot.slane %v2668_v39, 4  ;;  %v9277_v10 = vld [vmem:[#allocation19_spill] sm:$0xff]  ;;  %v9280_v39 = vld [vmem:[#allocation18_spill] sm:$0xff]  ;;  %v9281_v32 = vld [vmem:[#allocation9_spill] sm:$0xff] }
 0x4d8   : > { %v2608_v40 = vmul.bf16 %v2604_v42, %v2575_v31  ;;  %v2606_v25 = vmul.bf16 %v2590_v34, %v2568_v19  ;;  %2841 = vmatpush1.bf16.msra.mxu0 %v2771_v27  ;;  %2883 = vmatprep.subr.bf16.mxu1 %v2799_v59  ;;  %v2607_v43 = vmul.bf16 %v2597_v16, %v2569_v52  ;;  %v2751_v16 = vrot.slane %v2669_v29, 4  ;;  %v9282_v27 = vld [vmem:[#allocation25_spill] sm:$0xff] }
 0x4d9   : > { %2842 = vmatprep.subr.bf16.mxu0 %v2791_v13  ;;  %v2787_v63 = vsel %vm907_vm3, %v9272_v22, %v2741_v50  ;;  %v2716_v12 = vrot.slane %v8064_v57, %v6741_v2  ;;  %v2702_v28 = vrot.slane %v8066_v37, %v6741_v2  ;;  %v2709_v49 = vrot.slane %v8075_v38, %v6741_v2  ;;  %v9274_v13 = vld [vmem:[#allocation23_spill] sm:$0xff] }
 0x4da   : > { %v2674_v42 = vpop.permute.xlu1 %2673  ;;  %v2672_v34 = vpop.permute.xlu0 %2671  ;;  %v2815_v15 = vsel %vm907_vm3, %v2608_v40, %v2752_v41  ;;  %v2807_v17 = vsel %vm907_vm3, %v2606_v25, %v2750_v54  ;;  %v3019_v30 = vmul.bf16 %v9274_v13, %v9273_v55  ;;  %v3017_v9 = vmul.bf16 %v9276_v18, %v9275_v53  ;;  %v9283_v40 = vld [vmem:[#allocation14_spill] sm:$0xff] }
 0x4db   : > { %v2679_v0 = vsel %vm1743_vm10, %v2672_v34, %v2674_v42  ;;  %2884 = vmatpush1.bf16.msra.mxu1 %v2795_v61  ;;  %v2749_v62 = vrot.slane %v2667_v1, 4  ;;  %v3027_v57 = vrot.slane %v2975_v58, 4  ;;  %v2974_v14 = vmul.bf16 %v9278_v23, %v9277_v10  ;;  %v9288_v61 = vld [vmem:[#allocation5_spill] sm:$0xff] }
 0x4dc   : > { %2843 = vmatpush1.bf16.msra.mxu0 %v2787_v63  ;;  %2885 = vmatprep.subr.bf16.mxu1 %v2815_v15  ;;  %v2717_v26 = vmul.bf16 %v2695_v47, %v2679_v0  ;;  %v3025_v8 = vrot.slane %v2973_v20, 4  ;;  %v2811_v37 = vsel %vm907_vm3, %v2607_v43, %v2751_v16  ;;  %v3016_v59 = vmul.bf16 %v9280_v39, %v9279_v46  ;;  %v9285_v20 = vld [vmem:[#allocation10_spill] sm:$0xff]  ;;  %v9289_v63 = vld [vmem:[#allocation11_spill] sm:$0xff]  ;;  %v9290_v16 = vld [vmem:[#allocation8_spill] sm:$0xff] }
 0x4dd   : > { %2844 = vmatprep.subr.bf16.mxu0 %v2807_v17  ;;  %v2803_v60 = vsel %vm907_vm3, %v2605_v33, %v2749_v62  ;;  %v3035_v45 = vrot.slane %v3019_v30, 4  ;;  %v3018_v50 = vmul.bf16 %v9282_v27, %v9281_v32  ;;  %v3033_v31 = vrot.slane %v3017_v9, 4  ;;  %v5874_v33 = vld [vmem:[%s9122_s1 + $0x50] sm:$0xf]  ;;  %v5885_v9 = vld [vmem:[%s9122_s1 + $0x60] sm:$0xf] }
 0x4de   : > { %v2678_v24 = vpop.permute.xlu1 %2677  ;;  %v2676_v4 = vpop.permute.xlu0 %2675  ;;  %v2818_v19 = vsel %vm907_vm3, %v2717_v26, 1065369472  ;;  %v9286_v44 = vmul.bf16 %v9284_v48, %v9285_v20  ;;  %v3026_v47 = vrot.slane %v2974_v14, 4  ;;  %v3032_v43 = vrot.slane %v3016_v59, 4 }
 0x4df   : > { %v2687_v38 = vsel %vm1743_vm10, %v2678_v24, %v2672_v34  ;;  %v2680_v21 = vsel %vm1743_vm10, %v2674_v42, %v2676_v4  ;;  %v2681_v56 = vsel %vm1743_vm10, %v2676_v4, %v2678_v24  ;;  %2886 = vmatpush1.bf16.msra.mxu1 %v2811_v37  ;;  %v2830_v54 = vand.u32 %v2818_v19, %v9283_v40  ;;  %v9287_v34 = vld [vmem:[#allocation6_spill] sm:$0xff] }
 0x4e0   : > { %v2720_v29 = vmul.bf16 %v2716_v12, %v2687_v38  ;;  %v2718_v6 = vmul.bf16 %v2702_v28, %v2680_v21  ;;  %v2719_v35 = vmul.bf16 %v2709_v49, %v2681_v56  ;;  %2845 = vmatpush1.bf16.msra.mxu0 %v2803_v60  ;;  %v3024_v1 = vrot.slane %v9286_v44, 4 }
 0x4e1   : > { %v3034_v42 = vrot.slane %v3018_v50, 4  ;;  %v3042_v11 = vsel %vm907_vm3, %v3025_v8, %v9287_v34  ;;  %v3050_v15 = vsel %vm907_vm3, %v3027_v57, %v9288_v61  ;;  %v3055_v0 = vsel %vm907_vm3, %v3033_v31, 1065369472 }
 0x4e2   : > { %v2824_v52 = vsel %vm907_vm3, %v2720_v29, 1065369472  ;;  %v2820_v41 = vsel %vm907_vm3, %v2718_v6, 1065369472  ;;  %v2822_v7 = vsel %vm907_vm3, %v2719_v35, 1065369472  ;;  %v3038_v12 = vsel %vm907_vm3, %v3024_v1, %v9289_v63 }
 0x4e3   : > { %v2834_v25 = vand.u32 %v2822_v7, %v9283_v40  ;;  %v2832_v58 = vand.u32 %v2820_v41, %v9283_v40  ;;  %v2836_v3 = vand.u32 %v2824_v52, %v9283_v40  ;;  %v3059_v22 = vsel %vm907_vm3, %v3035_v45, 1065369472  ;;  %v3186_v7 = vld [vmem:[%s9123_s2 + $0x8] sm:$0x11] }
 0x4e4   : > { %v3046_v17 = vsel %vm907_vm3, %v3026_v47, %v9290_v16  ;;  %v3053_v28 = vsel %vm907_vm3, %v3032_v43, 1065369472  ;;  %v3057_v49 = vsel %vm907_vm3, %v3034_v42, 1065369472  ;;  %v3067_v55 = vand.u32 %v3055_v0, %v9283_v40  ;;  %v3251_v47 = vld [vmem:[%s9123_s2] sm:$0x88] }
 0x4e5   : > { %2846 = vmatprep.subr.bf16.mxu0 %v2832_v58  ;;  %2887 = vmatprep.subr.bf16.mxu1 %v2836_v3  ;;  %v3071_v13 = vand.u32 %v3059_v22, %v9283_v40  ;;  %v3065_v30 = vand.u32 %v3053_v28, %v9283_v40  ;;  %v3069_v53 = vand.u32 %v3057_v49, %v9283_v40  ;;  %v9291_v18 = vmov 0   ;;  %v3252_v42 = vld [vmem:[%s9123_s2 + $0x8] sm:$0x88] }
 0x4e6   : > { %2847 = vmatpush1.bf16.msra.mxu0 %v2830_v54  ;;  %2888 = vmatpush1.bf16.msra.mxu1 %v2834_v25  ;;  %v3185_v25 = vld [vmem:[%s9123_s2] sm:$0x11]  ;;  %v5891_v58 = vcombine.high %v3186_v7, %v3186_v7  ;;  %v5890_v20 = vcombine.low %v3186_v7, %v3186_v7  ;;  %v5895_v0 = vcombine.high %v3252_v42, %v3252_v42  ;;  %vm3732_vm14 = vcmask 433152  }
 0x4e7   : > { %3073 = vmatprep.subr.bf16.mxu0 %v3042_v11  ;;  %3114 = vmatprep.subr.bf16.mxu1 %v3050_v15  ;;  %v5888_v3 = vcombine.low %v3185_v25, %v3185_v25  ;;  %v5889_v48 = vcombine.high %v3185_v25, %v3185_v25  ;;  %v5892_v11 = vcombine.low %v3251_v47, %v3251_v47  ;;  %vm3846_vm15 = vcmask 351232  }
 0x4e8   : > { %v3222_v44 = vshrl.u32 %v5891_v58, 16  ;;  %v3214_v43 = vshrl.u32 %v5890_v20, 16  ;;  %v5893_v16 = vcombine.high %v3251_v47, %v3251_v47  ;;  %vm4481_vm0 = vcmask 269312  }
 0x4e9   : > { %5875 = vmatmul.mubr.msk.bf16.vlgmr.msra.gmra.mrb[24].mxu0 %vm982_vm11, %v5874_v33  ;;  %5876 = vmatmul.mubr.msk.bf16.vlgmr.msra.gmra.mrb[24].mxu1 %vm982_vm11, %v5874_v33  ;;  %v3198_v1 = vshrl.u32 %v5888_v3, 16  ;;  %v3206_v54 = vshrl.u32 %v5889_v48, 16  ;;  %v3264_v28 = vpack.i.b16 %v5892_v11, %v5892_v11 }
 0x4ea   : > { %3074 = vmatpush1.bf16.msra.mxu0 %v3038_v12  ;;  %3115 = vmatpush1.bf16.msra.mxu1 %v3046_v17  ;;  %v3223_v34 = vpack.i.b16 %v3222_v44, %v3222_v44  ;;  %v3215_v63 = vpack.i.b16 %v3214_v43, %v3214_v43  ;;  %v5894_v17 = vcombine.low %v3252_v42, %v3252_v42 }
 0x4eb   : > { %3075 = vmatprep.subr.bf16.mxu0 %v3067_v55  ;;  %3116 = vmatprep.subr.bf16.mxu1 %v3071_v13  ;;  %v3199_v33 = vpack.i.b16 %v3198_v1, %v3198_v1  ;;  %v3207_v22 = vpack.i.b16 %v3206_v54, %v3206_v54 }
 0x4ec   : > { %3105 = vmatprep.mubr.bf16.mxu0 %v9291_v18  ;;  %3146 = vmatprep.mubr.bf16.mxu1 %v9291_v18  ;;  %v3228_v12 = vrot.slane %v3223_v34, %v6602_v51 }
 0x4ed   : > { %v3204_v49 = vrot.slane %v3199_v33, %v6602_v51 }
 0x4ee   : > { %3076 = vmatpush1.bf16.msra.mxu0 %v3065_v30  ;;  %3117 = vmatpush1.bf16.msra.mxu1 %v3069_v53  ;;  %v3285_v30 = vpack.i.b16 %v5895_v0, %v5895_v0 }
 0x4f1   : > { %5886 = vmatmul.mubr.msk.bf16.vlgmr.msra.gmra.mrb[28].mxu0 %vm1217_vm12, %v5885_v9  ;;  %5887 = vmatmul.mubr.msk.bf16.vlgmr.msra.gmra.mrb[28].mxu1 %vm1217_vm12, %v5885_v9 }
 0x4f2   : > { %3368 = vmatprep.mubr.bf16.mxu0 %v9291_v18  ;;  %3409 = vmatprep.mubr.bf16.mxu1 %v9291_v18 }
 0x5bc   : > { %v2872_v62 = vpop.f32.mrb[24].mxu0  ;;  %v2913_v26 = vpop.f32.mrb[24].mxu1 }
 0x5bd   : > { %v2920_v57 = vpack.c.bf16 %v2872_v62, %v2872_v62  ;;  %v2922_v10 = vpack.c.bf16 %v2913_v26, %v2913_v26  ;;  %v2874_v23 = vpop.f32.mrb[25].mxu0  ;;  %v2915_v14 = vpop.f32.mrb[25].mxu1  ;;  %v3212_v62 = vrot.slane %v3207_v22, %v6602_v51  ;;  %v3220_v26 = vrot.slane %v3215_v63, %v6602_v51 }
 0x5be   : > { %v2921_v8 = vpack.c.bf16 %v2874_v23, %v2874_v23  ;;  %v2923_v24 = vpack.c.bf16 %v2915_v14, %v2915_v14  ;;  %v2876_v4 = vpop.f32.mrb[26].mxu0  ;;  %v2917_v37 = vpop.f32.mrb[26].mxu1  ;;  %v3271_v23 = vpack.i.b16 %v5893_v16, %v5893_v16  ;;  %v3278_v14 = vpack.i.b16 %v5894_v17, %v5894_v17 }
 0x5bf   : > { %2924 = vst [vmem:[#allocation2 + $0x20] sm:$0xf] %v2920_v57  ;;  %2926 = vst [vmem:[#allocation2 + $0x30] sm:$0xf] %v2922_v10  ;;  %v2877_v38 = vpop.f32.mrb[27].mxu0  ;;  %v2918_v21 = vpop.f32.mrb[27].mxu1 }
 0x5c0   : > { %2925 = vst [vmem:[#allocation2 + $0x28] sm:$0xf] %v2921_v8  ;;  %2927 = vst [vmem:[#allocation2 + $0x38] sm:$0xf] %v2923_v24  ;;  %v3269_v8 = vrot.slane %v3264_v28, %v6741_v2 }
 0x5c4   : > { %v3107_v56 = vpop.f32.mrb[28].mxu0  ;;  %v3148_v60 = vpop.f32.mrb[28].mxu1 }
 0x5c5   : > { %v3155_v46 = vmax.f32 %v3107_v56, 0.0  ;;  %v3157_v39 = vmax.f32 %v3148_v60, 0.0  ;;  %v3109_v59 = vpop.f32.mrb[29].mxu0  ;;  %v3150_v29 = vpop.f32.mrb[29].mxu1  ;;  %v3290_v56 = vrot.slane %v3285_v30, %v6741_v2 }
 0x5c6   : > { %v3158_v6 = vmax.f32 %v3150_v29, 0.0  ;;  %v3111_v35 = vpop.f32.mrb[30].mxu0  ;;  %v3152_v45 = vpop.f32.mrb[30].mxu1  ;;  %v3156_v52 = vmax.f32 %v3109_v59, 0.0 }
 0x5c7   : > { %v8197_v32 = vpack.c.bf16 %v3155_v46, %v3155_v46  ;;  %v3112_v27 = vpop.f32.mrb[31].mxu0  ;;  %v3153_v50 = vpop.f32.mrb[31].mxu1  ;;  %v8199_v31 = vpack.c.bf16 %v3157_v39, %v3157_v39  ;;  %v3276_v35 = vrot.slane %v3271_v23, %v6741_v2  ;;  %v3283_v45 = vrot.slane %v3278_v14, %v6741_v2 }
 0x5c8   : > { %v3162_v19 = vpack.c.bf16 %v3158_v6, %v3158_v6  ;;  %v8208_v41 = vpack.c.bf16 %v3156_v52, %v3156_v52 }
 0x5c9   : > { %3233 = vrot.lane.b32.xlu0 %v8197_v32, %s6415_s30  ;;  %3169 = vrot.lane.b32.xlu1 %v8197_v32, %s6411_s26  ;;  %v3297_v24 = vrot.slane %v8199_v31, 4  ;;  %v3295_v27 = vrot.slane %v8197_v32, 4 }
 0x5ca   : > { %v3298_v53 = vrot.slane %v3162_v19, 4  ;;  %v3296_v4 = vrot.slane %v8208_v41, 4 }
 0x5cd   : > { %3164 = vrot.lane.b32.xlu0 %v3162_v19, %s6411_s26  ;;  %3173 = vrot.lane.b32.xlu1 %v8199_v31, %s6411_s26 }
 0x5d1   : > { %3235 = vrot.lane.b32.xlu1 %v8208_v41, %s6415_s30  ;;  %3171 = vrot.lane.b32.xlu0 %v8208_v41, %s6411_s26  ;;  %s6436_s26 = smov 8  }
 0x5d5   : > { %3239 = vrot.lane.b32.xlu1 %v3162_v19, %s6415_s30  ;;  %3237 = vrot.lane.b32.xlu0 %v8199_v31, %s6415_s30  ;;  %s6444_s30 = smov 9  }
 0x63b   : > { %v3234_v61 = vpop.permute.xlu0 %3233  ;;  %v3170_v15 = vpop.permute.xlu1 %3169 }
 0x63f   : > { %v3165_v55 = vpop.permute.xlu0 %3164  ;;  %v3174_v13 = vpop.permute.xlu1 %3173 }
 0x640   : > { %v3177_v9 = vsel %vm483_vm2, %v3174_v13, %v3165_v55  ;;  %v3183_v57 = vsel %vm483_vm2, %v3165_v55, %v3170_v15 }
 0x641   : > { %v3232_v10 = vmul.bf16 %v3228_v12, %v3177_v9  ;;  %v3229_v60 = vmul.bf16 %v3204_v49, %v3183_v57  ;;  %v3450_v57 = vld [vmem:[%s9123_s2 + $0x20] sm:$0x11] }
 0x643   : > { %v3236_v37 = vpop.permute.xlu1 %3235  ;;  %v3172_v38 = vpop.permute.xlu0 %3171  ;;  %v3313_v21 = vsel %vm907_vm3, %v3232_v10, %v3298_v53  ;;  %v3301_v3 = vsel %vm907_vm3, %v3229_v60, %v3295_v27  ;;  %v3451_v10 = vld [vmem:[%s9123_s2 + $0x28] sm:$0x11] }
 0x644   : > { %v3241_v46 = vsel %vm767_vm7, %v3234_v61, %v3236_v37  ;;  %v3175_v39 = vsel %vm483_vm2, %v3170_v15, %v3172_v38  ;;  %v3176_v59 = vsel %vm483_vm2, %v3172_v38, %v3174_v13  ;;  %3377 = vmatprep.subr.bf16.mxu1 %v3313_v21  ;;  %v8343_v21 = vcombine.low %v3451_v10, %v3451_v10 }
 0x645   : > { %v3230_v29 = vmul.bf16 %v3212_v62, %v3175_v39  ;;  %v3231_v6 = vmul.bf16 %v3220_v26, %v3176_v59  ;;  %v3291_v50 = vmul.bf16 %v3269_v8, %v3241_v46  ;;  %v5899_v8 = vcombine.low %v3450_v57, %v3450_v57  ;;  %v3680_v39 = vld [vmem:[%s9123_s2 + $0x20] sm:$0x44] }
 0x646   : > { %vm3438_vm2 = vcmask 695296  }
 0x647   : > { %v3240_v31 = vpop.permute.xlu1 %3239  ;;  %v3238_v19 = vpop.permute.xlu0 %3237  ;;  %v3305_v52 = vsel %vm907_vm3, %v3230_v29, %v3296_v4  ;;  %v3309_v41 = vsel %vm907_vm3, %v3231_v6, %v3297_v24  ;;  %v3316_v32 = vsel %vm907_vm3, %v3291_v50, 1065369472  ;;  %v5902_v24 = vcombine.high %v3451_v10, %v3451_v10 }
 0x648   : > { %v3249_v7 = vsel %vm767_vm7, %v3240_v31, %v3234_v61  ;;  %v3242_v25 = vsel %vm767_vm7, %v3236_v37, %v3238_v19  ;;  %v3243_v58 = vsel %vm767_vm7, %v3238_v19, %v3240_v31  ;;  %3336 = vmatprep.subr.bf16.mxu0 %v3305_v52  ;;  %3378 = vmatpush1.bf16.msra.mxu1 %v3309_v41  ;;  %v5896_v61 = vld [vmem:[%s9122_s1 + $0x70] sm:$0xf]  ;;  %v3526_v6 = vshrl.u32 %v8343_v21, 16  ;;  %v3681_v52 = vld [vmem:[%s9123_s2 + $0x28] sm:$0x44] }
 0x649   : > { %v3294_v48 = vmul.bf16 %v3290_v56, %v3249_v7  ;;  %v3292_v20 = vmul.bf16 %v3276_v35, %v3242_v25  ;;  %v3293_v44 = vmul.bf16 %v3283_v45, %v3243_v58  ;;  %3337 = vmatpush1.bf16.msra.mxu0 %v3301_v3  ;;  %v3328_v11 = vand.u32 %v3316_v32, %v9283_v40  ;;  %v3564_v35 = vld [vmem:[%s9123_s2 + $0x20] sm:$0x22]  ;;  %v3565_v45 = vld [vmem:[%s9123_s2 + $0x28] sm:$0x22] }
 0x64a   : > { %v8337_v4 = vcombine.high %v3450_v57, %v3450_v57  ;;  %v3512_v56 = vshrl.u32 %v5899_v8, 16  ;;  %v3533_v60 = vshrl.u32 %v5902_v24, 16  ;;  %v8362_v31 = vcombine.low %v3680_v39, %v3680_v39  ;;  %v3795_v57 = vld [vmem:[%s9123_s2 + $0x28] sm:$0x88] }
 0x64b   : > { %v3322_v1 = vsel %vm907_vm3, %v3294_v48, 1065369472  ;;  %v3318_v47 = vsel %vm907_vm3, %v3292_v20, 1065369472  ;;  %v3320_v54 = vsel %vm907_vm3, %v3293_v44, 1065369472  ;;  %v8369_v41 = vcombine.low %v3564_v35, %v3564_v35 }
 0x64c   : > { %v3332_v43 = vand.u32 %v3320_v54, %v9283_v40  ;;  %v3330_v42 = vand.u32 %v3318_v47, %v9283_v40  ;;  %v3334_v34 = vand.u32 %v3322_v1, %v9283_v40  ;;  %v3519_v46 = vshrl.u32 %v8337_v4, 16  ;;  %v3794_v47 = vld [vmem:[%s9123_s2 + $0x20] sm:$0x88] }
 0x64d   : > { %v8360_v27 = vpack.i.b16 %v3512_v56, %v3512_v56  ;;  %v3534_v50 = vpack.i.b16 %v3533_v60, %v3533_v60  ;;  %v8371_v7 = vcombine.high %v3565_v45, %v3565_v45  ;;  %v8377_v3 = vpack.i.b16 %v3526_v6, %v3526_v6 }
 0x64e   : > { %3338 = vmatprep.subr.bf16.mxu0 %v3330_v42  ;;  %3379 = vmatprep.subr.bf16.mxu1 %v3334_v34  ;;  %v8364_v19 = vpack.i.b16 %v3519_v46, %v3519_v46  ;;  %v8379_v48 = vcombine.high %v3564_v35, %v3564_v35  ;;  %v3463_v32 = vpack.i.b16 %v5899_v8, %v5899_v8  ;;  %vm3552_vm7 = vcmask 613376  }
 0x64f   : > { %3339 = vmatpush1.bf16.msra.mxu0 %v3328_v11  ;;  %3380 = vmatpush1.bf16.msra.mxu1 %v3332_v43  ;;  %v3539_v44 = vrot.slane %v3534_v50, %v6602_v51  ;;  %v8384_v1 = vcombine.high %v3680_v39, %v3680_v39  ;;  %v3484_v54 = vpack.i.b16 %v5902_v24, %v5902_v24 }
 0x650   : > { %v3693_v43 = vpack.i.b16 %v8362_v31, %v8362_v31  ;;  %v8391_v42 = vcombine.low %v3681_v52, %v3681_v52  ;;  %v8393_v34 = vcombine.high %v3681_v52, %v3681_v52  ;;  %v3525_v11 = vrot.slane %v8364_v19, %v6602_v51 }
 0x651   : > { %v3489_v10 = vrot.slane %v3484_v54, %v6602_v51  ;;  %v8445_v19 = vcombine.low %v3795_v57, %v3795_v57  ;;  %v3577_v40 = vpack.i.b16 %v8369_v41, %v8369_v41 }
 0x652   : > { %5897 = vmatmul.mubr.msk.bf16.vlgmr.msra.gmra.mrb[32].mxu0 %vm1217_vm12, %v5896_v61  ;;  %5898 = vmatmul.mubr.msk.bf16.vlgmr.msra.gmra.mrb[32].mxu1 %vm1217_vm12, %v5896_v61  ;;  %v3628_v61 = vshrl.u32 %v8369_v41, 16  ;;  %v8424_v8 = vrot.slane %v3693_v43, %v6678_v36  ;;  %v3707_v24 = vpack.i.b16 %v8391_v42, %v8391_v42  ;;  %v3714_v56 = vpack.i.b16 %v8393_v34, %v8393_v34 }
 0x653   : > { %4039 = vmatprep.mubr.bf16.mxu0 %v9291_v18  ;;  %4080 = vmatprep.mubr.bf16.mxu1 %v9291_v18  ;;  %v3765_v41 = vshrl.u32 %v8393_v34, 16 }
 0x654   : > { %v8432_v60 = vpack.i.b16 %v3628_v61, %v3628_v61  ;;  %v8457_v61 = vrot.slane %v3707_v24, %v6678_v36 }
 0x725   : > { %v3370_v15 = vpop.f32.mrb[32].mxu0  ;;  %v3411_v33 = vpop.f32.mrb[32].mxu1 }
 0x726   : > { %v3418_v0 = vmax.f32 %v3370_v15, 0.0  ;;  %v3372_v22 = vpop.f32.mrb[33].mxu0  ;;  %v3420_v63 = vmax.f32 %v3411_v33, 0.0  ;;  %v3413_v12 = vpop.f32.mrb[33].mxu1  ;;  %v3649_v15 = vshrl.u32 %v8371_v7, 16  ;;  %v8399_v33 = vcombine.low %v3565_v45, %v3565_v45 }
 0x727   : > { %v3374_v16 = vpop.f32.mrb[34].mxu0  ;;  %v3415_v17 = vpop.f32.mrb[34].mxu1  ;;  %v3421_v18 = vmax.f32 %v3413_v12, 0.0  ;;  %v3419_v30 = vmax.f32 %v3372_v22, 0.0  ;;  %v8405_v12 = vcombine.low %v3794_v47, %v3794_v47 }
 0x728   : > { %v8267_v28 = vpack.c.bf16 %v3418_v0, %v3418_v0  ;;  %v3375_v49 = vpop.f32.mrb[35].mxu0  ;;  %v3416_v55 = vpop.f32.mrb[35].mxu1  ;;  %v8269_v13 = vpack.c.bf16 %v3420_v63, %v3420_v63  ;;  %v3532_v63 = vrot.slane %v8377_v3, %v6602_v51  ;;  %v8407_v16 = vcombine.high %v3794_v47, %v3794_v47 }
 0x729   : > { %v8288_v53 = vpack.c.bf16 %v3421_v18, %v3421_v18  ;;  %v8294_v9 = vpack.c.bf16 %v3419_v30, %v3419_v30  ;;  %v3635_v17 = vshrl.u32 %v8379_v48, 16  ;;  %v8411_v49 = vrot.slane %v3463_v32, %v6602_v51 }
 0x72a   : > { %9292 = vst [vmem:[#allocation17_spill] sm:$0xff] %v8267_v28  ;;  %3660 = vrot.lane.b32.xlu0 %v8267_v28, %s6428_s6  ;;  %3496 = vrot.lane.b32.xlu1 %v8267_v28, %s6422_s27  ;;  %v3700_v55 = vpack.i.b16 %v8384_v1, %v8384_v1  ;;  %v3470_v18 = vpack.i.b16 %v8337_v4, %v8337_v4  ;;  %v3642_v46 = vshrl.u32 %v8399_v33, 16 }
 0x72b   : > { %v3477_v30 = vpack.i.b16 %v8343_v21, %v8343_v21  ;;  %v8434_v21 = vpack.i.b16 %v3649_v15, %v3649_v15  ;;  %v3807_v35 = vpack.i.b16 %v8405_v12, %v8405_v12  ;;  %v3814_v45 = vpack.i.b16 %v8407_v16, %v8407_v16 }
 0x72c   : > { %v8443_v50 = vpack.i.b16 %v3635_v17, %v3635_v17  ;;  %v8448_v52 = vrot.slane %v3700_v55, %v6678_v36  ;;  %v3475_v3 = vrot.slane %v3470_v18, %v6602_v51  ;;  %v8452_v47 = vcombine.high %v3795_v57, %v3795_v57 }
 0x72d   : > { %v3482_v32 = vrot.slane %v3477_v30, %v6602_v51  ;;  %v8460_v15 = vrot.slane %v3714_v56, %v6678_v36  ;;  %v8468_v30 = vpack.i.b16 %v3642_v46, %v3642_v46  ;;  %v8473_v24 = vrot.slane %v3807_v35, %v6741_v2 }
 0x72e   : > { %3664 = vrot.lane.b32.xlu0 %v8269_v13, %s6428_s6  ;;  %3500 = vrot.lane.b32.xlu1 %v8269_v13, %s6422_s27  ;;  %v8476_v56 = vrot.slane %v3814_v45, %v6741_v2  ;;  %v3828_v35 = vpack.i.b16 %v8452_v47, %v8452_v47 }
 0x732   : > { %3776 = vrot.lane.b32.xlu0 %v8267_v28, %s6421_s25  ;;  %3432 = vrot.lane.b32.xlu1 %v8267_v28, %s6429_s22 }
 0x736   : > { %3780 = vrot.lane.b32.xlu0 %v8269_v13, %s6421_s25  ;;  %3436 = vrot.lane.b32.xlu1 %v8269_v13, %s6429_s22 }
 0x73a   : > { %3724 = vrot.lane.b32.xlu0 %v8267_v28, %s6430_s23  ;;  %3610 = vrot.lane.b32.xlu1 %v8267_v28, %s6431_s11 }
 0x73e   : > { %3494 = vrot.lane.b32.xlu0 %v8288_v53, %s6422_s27  ;;  %3614 = vrot.lane.b32.xlu1 %v8269_v13, %s6431_s11 }
 0x742   : > { %3546 = vrot.lane.b32.xlu1 %v8267_v28, %s6432_s12  ;;  %3498 = vrot.lane.b32.xlu0 %v8294_v9, %s6422_s27  ;;  %s6433_s27 = smov 43  }
 0x746   : > { %3550 = vrot.lane.b32.xlu1 %v8269_v13, %s6432_s12  ;;  %3427 = vrot.lane.b32.xlu0 %v8288_v53, %s6429_s22 }
 0x74a   : > { %3662 = vrot.lane.b32.xlu1 %v8294_v9, %s6428_s6  ;;  %3434 = vrot.lane.b32.xlu0 %v8294_v9, %s6429_s22 }
 0x74e   : > { %3666 = vrot.lane.b32.xlu1 %v8288_v53, %s6428_s6  ;;  %3608 = vrot.lane.b32.xlu0 %v8288_v53, %s6431_s11 }
 0x752   : > { %3778 = vrot.lane.b32.xlu1 %v8294_v9, %s6421_s25  ;;  %3612 = vrot.lane.b32.xlu0 %v8294_v9, %s6431_s11 }
 0x756   : > { %3782 = vrot.lane.b32.xlu1 %v8288_v53, %s6421_s25  ;;  %3544 = vrot.lane.b32.xlu0 %v8288_v53, %s6432_s12  ;;  %s6440_s25 = smov 21  }
 0x75a   : > { %3726 = vrot.lane.b32.xlu1 %v8294_v9, %s6430_s23  ;;  %3548 = vrot.lane.b32.xlu0 %v8294_v9, %s6432_s12  ;;  %s6438_s12 = smov 27  }
 0x75e   : > { %3730 = vrot.lane.b32.xlu1 %v8288_v53, %s6430_s23  ;;  %3728 = vrot.lane.b32.xlu0 %v8269_v13, %s6430_s23  ;;  %s6448_s23 = smov 40  }
 0x762   : > { %3840 = vrot.lane.b32.xlu1 %v8294_v9, %s6433_s27  ;;  %3838 = vrot.lane.b32.xlu0 %v8267_v28, %s6433_s27 }
 0x766   : > { %3844 = vrot.lane.b32.xlu1 %v8288_v53, %s6433_s27  ;;  %3842 = vrot.lane.b32.xlu0 %v8269_v13, %s6433_s27  ;;  %s6439_s27 = smov 24  }
 0x79c   : > { %v8323_v62 = vpop.permute.xlu0 %3660  ;;  %v8325_v26 = vpop.permute.xlu1 %3496 }
 0x7a0   : > { %v8333_v23 = vpop.permute.xlu0 %3664  ;;  %v8335_v14 = vpop.permute.xlu1 %3500 }
 0x7a4   : > { %v8339_v37 = vpop.permute.xlu0 %3776  ;;  %v8341_v38 = vpop.permute.xlu1 %3432 }
 0x7a8   : > { %v8349_v59 = vpop.permute.xlu0 %3780  ;;  %v8351_v29 = vpop.permute.xlu1 %3436 }
 0x7ac   : > { %v8373_v25 = vpop.permute.xlu0 %3724  ;;  %v8375_v58 = vpop.permute.xlu1 %3610 }
 0x7b0   : > { %v3495_v0 = vpop.permute.xlu0 %3494  ;;  %v8401_v22 = vpop.permute.xlu1 %3614 }
 0x7b1   : > { %v3504_v4 = vsel %vm1679_vm8, %v8335_v14, %v3495_v0  ;;  %v3510_v46 = vsel %vm1679_vm8, %v3495_v0, %v8325_v26  ;;  %v9293_v0 = vrot.slane %v8360_v27, %v6602_v51 }
 0x7b2   : > { %v3543_v54 = vmul.bf16 %v3539_v44, %v3504_v4  ;;  %v3821_v4 = vpack.i.b16 %v8445_v19, %v8445_v19 }
 0x7b4   : > { %v8437_v39 = vpop.permute.xlu1 %3546  ;;  %v3499_v6 = vpop.permute.xlu0 %3498  ;;  %v3897_v18 = vrot.slane %v3543_v54, 4  ;;  %v3540_v54 = vmul.bf16 %v9293_v0, %v3510_v46  ;;  %v8510_v34 = vrot.slane %v3821_v4, %v6741_v2  ;;  %v8526_v4 = vrot.slane %v3577_v40, %v6717_v5 }
 0x7b5   : > { %v3502_v43 = vsel %vm1679_vm8, %v8325_v26, %v3499_v6  ;;  %v3503_v17 = vsel %vm1679_vm8, %v3499_v6, %v8335_v14  ;;  %v3598_v26 = vpack.i.b16 %v8371_v7, %v8371_v7 }
 0x7b6   : > { %v3541_v6 = vmul.bf16 %v3525_v11, %v3502_v43  ;;  %v3542_v20 = vmul.bf16 %v3532_v63, %v3503_v17  ;;  %v3744_v11 = vshrl.u32 %v8362_v31, 16  ;;  %v3751_v17 = vshrl.u32 %v8384_v1, 16 }
 0x7b7   : > { %v3758_v31 = vshrl.u32 %v8391_v42, 16 }
 0x7b8   : > { %v8470_v44 = vpop.permute.xlu1 %3550  ;;  %v3428_v57 = vpop.permute.xlu0 %3427  ;;  %v3896_v27 = vrot.slane %v3542_v20, 4  ;;  %v8512_v1 = vpack.i.b16 %v3744_v11, %v3744_v11 }
 0x7b9   : > { %v3441_v55 = vsel %vm3438_vm2, %v8351_v29, %v3428_v57  ;;  %v3448_v14 = vsel %vm3438_vm2, %v3428_v57, %v8341_v38  ;;  %v8534_v11 = vpack.i.b16 %v3758_v31, %v3758_v31  ;;  %v3872_v31 = vshrl.u32 %v8445_v19, 16 }
 0x7ba   : > { %v3493_v45 = vmul.bf16 %v3489_v10, %v3441_v55  ;;  %v3895_v55 = vrot.slane %v3541_v6, 4  ;;  %v3490_v46 = vmul.bf16 %v8411_v49, %v3448_v14  ;;  %v8523_v14 = vrot.slane %v3828_v35, %v6741_v2 }
 0x7bc   : > { %v3663_v63 = vpop.permute.xlu1 %3662  ;;  %v3435_v10 = vpop.permute.xlu0 %3434  ;;  %v3936_v43 = vsel %vm907_vm3, %v3493_v45, %v3897_v18  ;;  %v3894_v18 = vrot.slane %v3540_v54, 4  ;;  %v3603_v45 = vrot.slane %v3598_v26, %v6717_v5 }
 0x7bd   : > { %v3439_v57 = vsel %vm3438_vm2, %v8341_v38, %v3435_v10  ;;  %v3440_v7 = vsel %vm3438_vm2, %v3435_v10, %v8351_v29  ;;  %4048 = vmatprep.subr.bf16.mxu1 %v3936_v43  ;;  %v3584_v38 = vpack.i.b16 %v8379_v48, %v8379_v48  ;;  %v3591_v29 = vpack.i.b16 %v8399_v33, %v8399_v33 }
 0x7be   : > { %v3491_v0 = vmul.bf16 %v3475_v3, %v3439_v57  ;;  %v3492_v28 = vmul.bf16 %v3482_v32, %v3440_v7  ;;  %v3670_v20 = vsel %vm3668_vm4, %v3663_v63, %v8333_v23  ;;  %v8528_v48 = vpack.i.b16 %v3765_v41, %v3765_v41 }
 0x7bf   : > { %v8530_v33 = vpack.i.b16 %v3751_v17, %v3751_v17  ;;  %v3924_v6 = vsel %vm907_vm3, %v3490_v46, %v3894_v18  ;;  %v3721_v54 = vmul.bf16 %v8448_v52, %v3670_v20  ;;  %v8541_v40 = vrot.slane %v3584_v38, %v6717_v5 }
 0x7c0   : > { %v3667_v42 = vpop.permute.xlu1 %3666  ;;  %v3609_v49 = vpop.permute.xlu0 %3608  ;;  %v3928_v3 = vsel %vm907_vm3, %v3491_v0, %v3895_v55  ;;  %v3932_v32 = vsel %vm907_vm3, %v3492_v28, %v3896_v27  ;;  %v3858_v28 = vshrl.u32 %v8405_v12, 16  ;;  %v8544_v10 = vrot.slane %v3591_v29, %v6717_v5 }
 0x7c1   : > { %4007 = vmatprep.subr.bf16.mxu0 %v3928_v3  ;;  %4049 = vmatpush1.bf16.msra.mxu1 %v3932_v32  ;;  %v3619_v35 = vsel %vm3616_vm5, %v8401_v22, %v3609_v49  ;;  %v3678_v43 = vsel %vm3668_vm4, %v3667_v42, %v8323_v62  ;;  %v3750_v12 = vrot.slane %v8512_v1, %v6678_v36  ;;  %v3879_v52 = vshrl.u32 %v8452_v47, 16 }
 0x7c2   : > { %4008 = vmatpush1.bf16.msra.mxu0 %v3924_v6  ;;  %v3865_v17 = vshrl.u32 %v8407_v16, 16  ;;  %v3626_v55 = vsel %vm3616_vm5, %v3609_v49, %v8375_v58  ;;  %v3771_v57 = vrot.slane %v8528_v48, %v6678_v36  ;;  %v3757_v7 = vrot.slane %v8530_v33, %v6678_v36 }
 0x7c3   : > { %v9294_v27 = vrot.slane %v8434_v21, %v6717_v5  ;;  %v3764_v16 = vrot.slane %v8534_v11, %v6678_v36  ;;  %v8566_v0 = vpack.i.b16 %v3858_v28, %v3858_v28  ;;  %v3669_v38 = vsel %vm3668_vm4, %v8323_v62, %v3663_v63 }
 0x7c4   : > { %v3779_v26 = vpop.permute.xlu1 %3778  ;;  %v3613_v41 = vpop.permute.xlu0 %3612  ;;  %v3911_v29 = vrot.slane %v3721_v54, 4  ;;  %v3723_v18 = vmul.bf16 %v8460_v15, %v3678_v43  ;;  %v3671_v21 = vsel %vm3668_vm4, %v8333_v23, %v3667_v42  ;;  %v8578_v32 = vpack.i.b16 %v3879_v52, %v3879_v52 }
 0x7c5   : > { %v3659_v46 = vmul.bf16 %v9294_v27, %v3619_v35  ;;  %v3617_v47 = vsel %vm3616_vm5, %v8375_v58, %v3613_v41  ;;  %v3618_v19 = vsel %vm3616_vm5, %v3613_v41, %v8401_v22  ;;  %v9295_v58 = vrot.slane %v8432_v60, %v6717_v5 }
 0x7c6   : > { %v8580_v6 = vpack.i.b16 %v3865_v17, %v3865_v17  ;;  %v9296_v62 = vrot.slane %v8443_v50, %v6717_v5  ;;  %v8589_v63 = vpack.i.b16 %v3872_v31, %v3872_v31  ;;  %v3720_v60 = vmul.bf16 %v8424_v8, %v3669_v38 }
 0x7c7   : > { %v3656_v20 = vmul.bf16 %v9295_v58, %v3626_v55  ;;  %v3905_v42 = vrot.slane %v3659_v46, 4  ;;  %v9297_v28 = vrot.slane %v8468_v30, %v6717_v5  ;;  %v3722_v50 = vmul.bf16 %v8457_v61, %v3671_v21 }
 0x7c8   : > { %v3783_v49 = vpop.permute.xlu1 %3782  ;;  %v3545_v3 = vpop.permute.xlu0 %3544  ;;  %v3657_v15 = vmul.bf16 %v9296_v62, %v3617_v47  ;;  %v3913_v43 = vrot.slane %v3723_v18, 4  ;;  %v3960_v52 = vsel %vm907_vm3, %v8294_v9, %v3911_v29  ;;  %v3785_v8 = vsel %vm1395_vm13, %v3779_v26, %v8349_v59 }
 0x7c9   : > { %v3555_v22 = vsel %vm3552_vm7, %v8470_v44, %v3545_v3  ;;  %v3562_v23 = vsel %vm3552_vm7, %v3545_v3, %v8437_v39  ;;  %v3658_v54 = vmul.bf16 %v9297_v28, %v3618_v19  ;;  %v3792_v41 = vsel %vm1395_vm13, %v3783_v49, %v8339_v37 }
 0x7ca   : > { %v3607_v35 = vmul.bf16 %v3603_v45, %v3555_v22  ;;  %v3902_v17 = vrot.slane %v3656_v20, 4  ;;  %v3604_v55 = vmul.bf16 %v8526_v4, %v3562_v23  ;;  %v3903_v27 = vrot.slane %v3657_v15, 4 }
 0x7cb   : > { %v3786_v61 = vsel %vm1395_vm13, %v8349_v59, %v3783_v49  ;;  %v3904_v47 = vrot.slane %v3658_v54, 4  ;;  %v3837_v38 = vmul.bf16 %v8523_v14, %v3792_v41  ;;  %v3912_v18 = vrot.slane %v3722_v50, 4 }
 0x7cc   : > { %v3727_v31 = vpop.permute.xlu1 %3726  ;;  %v3549_v30 = vpop.permute.xlu0 %3548  ;;  %v3952_v45 = vsel %vm907_vm3, %v3607_v35, %v3905_v42  ;;  %v3784_v19 = vsel %vm1395_vm13, %v8339_v37, %v3779_v26  ;;  %v3835_v59 = vmul.bf16 %v8476_v56, %v3785_v8  ;;  %v3836_v21 = vmul.bf16 %v8510_v34, %v3786_v61 }
 0x7cd   : > { %v3553_v46 = vsel %vm3552_vm7, %v8437_v39, %v3549_v30  ;;  %v3554_v9 = vsel %vm3552_vm7, %v3549_v30, %v8470_v44  ;;  %4050 = vmatprep.subr.bf16.mxu1 %v3952_v45  ;;  %v3968_v39 = vsel %vm907_vm3, %v8288_v53, %v3913_v43  ;;  %v3921_v53 = vrot.slane %v3837_v38, 4  ;;  %v9299_v45 = vld [vmem:[#allocation14_spill] sm:$0xff] }
 0x7ce   : > { %v3605_v4 = vmul.bf16 %v8541_v40, %v3553_v46  ;;  %v3606_v29 = vmul.bf16 %v8544_v10, %v3554_v9  ;;  %v3940_v40 = vsel %vm907_vm3, %v3604_v55, %v3902_v17  ;;  %v3910_v10 = vrot.slane %v3720_v60, 4  ;;  %v6365_v9 = vld [vmem:[%s9125_s4 + $0x40] sm:$0xff]  }
 0x7cf   : > { %v3733_v34 = vsel %vm3732_vm14, %v8373_v25, %v3727_v31  ;;  %v3834_v62 = vmul.bf16 %v8473_v24, %v3784_v19  ;;  %v3864_v15 = vrot.slane %v8566_v0, %v6741_v2  ;;  %v3919_v22 = vrot.slane %v3835_v59, 4  ;;  %v9298_v0 = vld [vmem:[#allocation17_spill] sm:$0xff]  ;;  %v6369_v19 = vld [vmem:[%s9125_s4 + $0x48] sm:$0xff]  }
 0x7d0   : > { %v3731_v44 = vpop.permute.xlu1 %3730  ;;  %v3729_v58 = vpop.permute.xlu0 %3728  ;;  %v3944_v20 = vsel %vm907_vm3, %v3605_v4, %v3903_v27  ;;  %v3948_v14 = vsel %vm907_vm3, %v3606_v29, %v3904_v47  ;;  %v3772_v24 = vmul.bf16 %v3750_v12, %v3733_v34  ;;  %v3956_v60 = vsel %vm907_vm3, %v9298_v0, %v3910_v10  ;;  %v6366_v47 = vld [vmem:[%s9125_s4 + $0xc0] sm:$0xff]   ;;  %v6370_v59 = vld [vmem:[%s9125_s4 + $0xc8] sm:$0xff]   ;;  %v6376_v10 = vld [vmem:[%s9125_s4 + $0x90] sm:$0xff]  }
 0x7d1   : > { %v3742_v49 = vsel %vm3732_vm14, %v3731_v44, %v8373_v25  ;;  %v3734_v37 = vsel %vm3732_vm14, %v3727_v31, %v3729_v58  ;;  %v3735_v56 = vsel %vm3732_vm14, %v3729_v58, %v3731_v44  ;;  %4009 = vmatprep.subr.bf16.mxu0 %v3944_v20  ;;  %4051 = vmatpush1.bf16.msra.mxu1 %v3948_v14  ;;  %v3918_v12 = vrot.slane %v3834_v62, 4  ;;  %v5915_v4 = vld [vmem:[%s9122_s1 + $0x80] sm:$0xf]  ;;  %v6371_v44 = vld [vmem:[%s9125_s4 + $0x8] sm:$0xff]   ;;  %v6373_v20 = vld [vmem:[%s9125_s4 + $0x50] sm:$0xff]  }
 0x7d2   : > { %v3775_v26 = vmul.bf16 %v3771_v57, %v3742_v49  ;;  %v3773_v3 = vmul.bf16 %v3757_v7, %v3734_v37  ;;  %4010 = vmatpush1.bf16.msra.mxu0 %v3940_v40  ;;  %4052 = vmatprep.subr.bf16.mxu1 %v3968_v39  ;;  %v3774_v25 = vmul.bf16 %v3764_v16, %v3735_v56  ;;  %v3920_v16 = vrot.slane %v3836_v21, 4  ;;  %v6367_v29 = vld [vmem:[%s9125_s4] sm:$0xff]   ;;  %v4110_v39 = vld [vmem:[#allocation2 + $0x8] sm:$0xff]  ;;  %v4112_v21 = vld [vmem:[#allocation2 + $0x18] sm:$0xff] }
 0x7d3   : > { %4011 = vmatprep.subr.bf16.mxu0 %v3960_v52  ;;  %v3964_v57 = vsel %vm907_vm3, %v8269_v13, %v3912_v18  ;;  %v3885_v11 = vrot.slane %v8578_v32, %v6741_v2  ;;  %v3871_v42 = vrot.slane %v8580_v6, %v6741_v2  ;;  %v3878_v1 = vrot.slane %v8589_v63, %v6741_v2  ;;  %v6368_v18 = vld [vmem:[%s9125_s4 + $0x80] sm:$0xff]   ;;  %v6372_v58 = vld [vmem:[%s9125_s4 + $0x88] sm:$0xff]   ;;  %v6374_v14 = vld [vmem:[%s9125_s4 + $0xd0] sm:$0xff]  }
 0x7d4   : > { %v3841_v23 = vpop.permute.xlu1 %3840  ;;  %v3839_v48 = vpop.permute.xlu0 %3838  ;;  %v3984_v33 = vsel %vm907_vm3, %v3775_v26, %v3921_v53  ;;  %v3976_v13 = vsel %vm907_vm3, %v3773_v3, %v3919_v22  ;;  %v3980_v50 = vsel %vm907_vm3, %v3774_v25, %v3920_v16  ;;  %v3972_v52 = vsel %vm907_vm3, %v3772_v24, %v3918_v12  ;;  %v6375_v40 = vld [vmem:[%s9125_s4 + $0x10] sm:$0xff]   ;;  %v6377_v49 = vld [vmem:[%s9125_s4 + $0x58] sm:$0xff]   ;;  %v6381_v34 = vld [vmem:[%s9125_s4 + $0x60] sm:$0xff]  }
 0x7d5   : > { %v3847_v7 = vsel %vm3846_vm15, %v3839_v48, %v3841_v23  ;;  %4053 = vmatpush1.bf16.msra.mxu1 %v3964_v57  ;;  %v6378_v37 = vld [vmem:[%s9125_s4 + $0xd8] sm:$0xff]   ;;  %v6382_v26 = vld [vmem:[%s9125_s4 + $0xe0] sm:$0xff]   ;;  %v6386_v22 = vld [vmem:[%s9125_s4 + $0xe8] sm:$0xff]   ;;  %vm6435_vm13 = vmmov 0  }
 0x7d6   : > { %4012 = vmatpush1.bf16.msra.mxu0 %v3956_v60  ;;  %4054 = vmatprep.subr.bf16.mxu1 %v3984_v33  ;;  %v3886_v28 = vmul.bf16 %v3864_v15, %v3847_v7  ;;  %v6379_v56 = vld [vmem:[%s9125_s4 + $0x18] sm:$0xff]   ;;  %v6383_v3 = vld [vmem:[%s9125_s4 + $0x20] sm:$0xff]   ;;  %v6385_v15 = vld [vmem:[%s9125_s4 + $0x68] sm:$0xff]  }
 0x7d7   : > { %4013 = vmatprep.subr.bf16.mxu0 %v3976_v13  ;;  %v6380_v53 = vld [vmem:[%s9125_s4 + $0x98] sm:$0xff]   ;;  %v6384_v62 = vld [vmem:[%s9125_s4 + $0xa0] sm:$0xff]   ;;  %v6387_v25 = vld [vmem:[%s9125_s4 + $0x28] sm:$0xff]  }
 0x7d8   : > { %v3845_v54 = vpop.permute.xlu1 %3844  ;;  %v3843_v35 = vpop.permute.xlu0 %3842  ;;  %v3987_v63 = vsel %vm907_vm3, %v3886_v28, 1065369472  ;;  %v6390_v57 = vld [vmem:[%s9125_s4 + $0xf0] sm:$0xff]   ;;  %v6393_v7 = vld [vmem:[%s9125_s4 + $0x78] sm:$0xff]   ;;  %v4109_v16 = vld [vmem:[#allocation2] sm:$0xff] }
 0x7d9   : > { %v3856_v32 = vsel %vm3846_vm15, %v3845_v54, %v3839_v48  ;;  %v3848_v43 = vsel %vm3846_vm15, %v3841_v23, %v3843_v35  ;;  %v3849_v41 = vsel %vm3846_vm15, %v3843_v35, %v3845_v54  ;;  %4055 = vmatpush1.bf16.msra.mxu1 %v3980_v50  ;;  %v3999_v38 = vand.u32 %v3987_v63, %v9299_v45  ;;  %v6388_v23 = vld [vmem:[%s9125_s4 + $0xa8] sm:$0xff]   ;;  %v6389_v48 = vld [vmem:[%s9125_s4 + $0x70] sm:$0xff]   ;;  %v6394_v0 = vld [vmem:[%s9125_s4 + $0xf8] sm:$0xff]  }
 0x7da   : > { %v3889_v6 = vmul.bf16 %v3885_v11, %v3856_v32  ;;  %v3887_v17 = vmul.bf16 %v3871_v42, %v3848_v43  ;;  %v3888_v8 = vmul.bf16 %v3878_v1, %v3849_v41  ;;  %4014 = vmatpush1.bf16.msra.mxu0 %v3972_v52  ;;  %v6391_v33 = vld [vmem:[%s9125_s4 + $0x30] sm:$0xff]   ;;  %v6395_v60 = vld [vmem:[%s9125_s4 + $0x38] sm:$0xff]   ;;  %v6434_v42 = vmov 0.0  }
 0x7db   : > { %v6392_v24 = vld [vmem:[%s9125_s4 + $0xb0] sm:$0xff]   ;;  %v6396_v11 = vld [vmem:[%s9125_s4 + $0xb8] sm:$0xff]  }
 0x7dc   : > { %v3993_v55 = vsel %vm907_vm3, %v3889_v6, 1065369472  ;;  %v3989_v31 = vsel %vm907_vm3, %v3887_v17, 1065369472  ;;  %v3991_v30 = vsel %vm907_vm3, %v3888_v8, 1065369472 }
 0x7dd   : > { %v4003_v27 = vand.u32 %v3991_v30, %v9299_v45  ;;  %v4001_v61 = vand.u32 %v3989_v31, %v9299_v45  ;;  %v4005_v46 = vand.u32 %v3993_v55, %v9299_v45  ;;  %v4111_v13 = vld [vmem:[#allocation2 + $0x10] sm:$0xff] }
 0x7df   : > { %4015 = vmatprep.subr.bf16.mxu0 %v4001_v61  ;;  %4056 = vmatprep.subr.bf16.mxu1 %v4005_v46 }
 0x7e0   : > { %4016 = vmatpush1.bf16.msra.mxu0 %v3999_v38  ;;  %4057 = vmatpush1.bf16.msra.mxu1 %v4003_v27 }
 0x7e1   : > { %5990 = vmatprep.subr.bf16.mxu0 %v6365_v9  ;;  %6018 = vmatprep.subr.bf16.mxu1 %v6366_v47 }
 0x7e3   : > { %5916 = vmatmul.mubr.msk.bf16.vlgmr.msra.gmra.mrb[36].mxu0 %vm982_vm11, %v5915_v4  ;;  %5917 = vmatmul.mubr.msk.bf16.vlgmr.msra.gmra.mrb[36].mxu1 %vm982_vm11, %v5915_v4 }
 0x7e4   : > { %5991 = vmatpush3.bf16.msra.mxu0 %v6367_v29  ;;  %4405 = vmatprep.mubr.bf16.mxu0 %v4110_v39 }
 0x7e5   : > { %6019 = vmatpush3.bf16.msra.mxu1 %v6368_v18  ;;  %4454 = vmatprep.mubr.bf16.mxu1 %v4112_v21 }
 0x7e6   : > { %5992 = vmatprep.subr.bf16.mxu0 %v6369_v19  ;;  %6020 = vmatprep.subr.bf16.mxu1 %v6370_v59 }
 0x7e8   : > { %5993 = vmatpush3.bf16.msra.mxu0 %v6371_v44 }
 0x7e9   : > { %6021 = vmatpush3.bf16.msra.mxu1 %v6372_v58  ;;  %5994 = vmatprep.subr.bf16.mxu0 %v6373_v20 }
 0x7ea   : > { %6022 = vmatprep.subr.bf16.mxu1 %v6374_v14 }
 0x7ec   : > { %5995 = vmatpush3.bf16.msra.mxu0 %v6375_v40 }
 0x7ed   : > { %6023 = vmatpush3.bf16.msra.mxu1 %v6376_v10  ;;  %5996 = vmatprep.subr.bf16.mxu0 %v6377_v49 }
 0x7ee   : > { %6024 = vmatprep.subr.bf16.mxu1 %v6378_v37 }
 0x7f0   : > { %5997 = vmatpush3.bf16.msra.mxu0 %v6379_v56 }
 0x7f1   : > { %6025 = vmatpush3.bf16.msra.mxu1 %v6380_v53  ;;  %5998 = vmatprep.subr.bf16.mxu0 %v6381_v34 }
 0x7f2   : > { %6026 = vmatprep.subr.bf16.mxu1 %v6382_v26 }
 0x7f4   : > { %5999 = vmatpush3.bf16.msra.mxu0 %v6383_v3 }
 0x7f5   : > { %6027 = vmatpush3.bf16.msra.mxu1 %v6384_v62  ;;  %6000 = vmatprep.subr.bf16.mxu0 %v6385_v15 }
 0x7f6   : > { %6028 = vmatprep.subr.bf16.mxu1 %v6386_v22 }
 0x7f8   : > { %6001 = vmatpush3.bf16.msra.mxu0 %v6387_v25 }
 0x7f9   : > { %6029 = vmatpush3.bf16.msra.mxu1 %v6388_v23  ;;  %6002 = vmatprep.subr.bf16.mxu0 %v6389_v48 }
 0x7fa   : > { %6030 = vmatprep.subr.bf16.mxu1 %v6390_v57 }
 0x7fc   : > { %6003 = vmatpush3.bf16.msra.mxu0 %v6391_v33  ;;  %v6397_v33 = vld [vmem:[%s9122_s1 + $0x90] sm:$0xff]  }
 0x7fd   : > { %6031 = vmatpush3.bf16.msra.mxu1 %v6392_v24  ;;  %6004 = vmatprep.subr.bf16.mxu0 %v6393_v7  ;;  %v9300_v24 = vld [vmem:[#allocation4_spill] sm:$0xff]  ;;  %v6398_v7 = vld [vmem:[%s9122_s1 + $0xa0] sm:$0xff]  }
 0x7fe   : > { %6032 = vmatprep.subr.bf16.mxu1 %v6394_v0 }
 0x800   : > { %6005 = vmatpush3.bf16.msra.mxu0 %v6395_v60 }
 0x801   : > { %6033 = vmatpush3.bf16.msra.mxu1 %v6396_v11  ;;  %6095 = vmatprep.subr.bf16.mxu0 %v6434_v42 }
 0x803   : > { %4406 = vmatmul.mubr.bf16.vlgmr.msra.gmra.mrb[40].mxu0 %v4109_v16 }
 0x804   : > { %4455 = vmatmul.mubr.bf16.vlgmr.msra.gmra.mrb[40].mxu1 %v4111_v13 }
 0x8b6   : > { %v4041_v1 = vpop.f32.mrb[36].mxu0  ;;  %v4082_v12 = vpop.f32.mrb[36].mxu1 }
 0x8b7   : > { %v4089_v28 = vpack.c.bf16 %v4041_v1, %v4041_v1  ;;  %v4091_v54 = vpack.c.bf16 %v4082_v12, %v4082_v12  ;;  %v4043_v35 = vpop.f32.mrb[37].mxu0  ;;  %v4084_v50 = vpop.f32.mrb[37].mxu1 }
 0x8b8   : > { %v4090_v32 = vpack.c.bf16 %v4043_v35, %v4043_v35  ;;  %v4092_v43 = vpack.c.bf16 %v4084_v50, %v4084_v50  ;;  %v4045_v41 = vpop.f32.mrb[38].mxu0  ;;  %v4086_v52 = vpop.f32.mrb[38].mxu1  ;;  %v6399_v35 = vld [vmem:[%s9122_s1 + $0xa8] sm:$0xff]  }
 0x8b9   : > { %v4097_v6 = vrot.slane %v4089_v28, 4  ;;  %v4099_v17 = vrot.slane %v4091_v54, 4  ;;  %v4046_v8 = vpop.f32.mrb[39].mxu0  ;;  %v4087_v63 = vpop.f32.mrb[39].mxu1 }
 0x8ba   : > { %v4098_v55 = vrot.slane %v4090_v32, 4  ;;  %v4100_v31 = vrot.slane %v4092_v43, 4 }
 0x8bb   : > { %4105 = vst [vmem:[#allocation2 + $0x20] sm:$0xf0] %v4097_v6  ;;  %4107 = vst [vmem:[#allocation2 + $0x30] sm:$0xf0] %v4099_v17 }
 0x8bc   : > { %4106 = vst [vmem:[#allocation2 + $0x28] sm:$0xf0] %v4098_v55  ;;  %4108 = vst [vmem:[#allocation2 + $0x38] sm:$0xf0] %v4100_v31  ;;  %v4783_v31 = vld [vmem:[%s9124_s3] sm:$0x1] }
 0x8c2   : > { %v4113_v61 = vld [vmem:[#allocation2 + $0x20] sm:$0xff]  ;;  %v4115_v46 = vld [vmem:[#allocation2 + $0x30] sm:$0xff] }
 0x8c3   : > { %v4114_v30 = vld [vmem:[#allocation2 + $0x28] sm:$0xff]  ;;  %v4116_v27 = vld [vmem:[#allocation2 + $0x38] sm:$0xff] }
 0x8c4   : > { %4413 = vmatprep.mubr.bf16.mxu0 %v4114_v30  ;;  %4462 = vmatprep.mubr.bf16.mxu1 %v4116_v27  ;;  %v4785_v30 = vshrl.u32 %v4783_v31, 16  ;;  %v4793_v27 = vld [vmem:[%s9124_s3] sm:$0x8] }
 0x8c5   : > { %4414 = vmatmul.mubr.bf16.gmra.mrb[44].mxu0 %v4113_v61  ;;  %4463 = vmatmul.mubr.bf16.gmra.mrb[44].mxu1 %v4115_v46  ;;  %v4795_v46 = vpack.i.b16 %v4793_v27, %v4793_v27 }
 0x8c6   : > { %6101 = vmatprep.mubr.msk.bf16.mxu0 %vm6435_vm13, %v6434_v42  ;;  %6109 = vmatprep.mubr.msk.bf16.mxu1 %vm265_vm1, %v6398_v7  ;;  %v4786_v61 = vpack.i.b16 %v4785_v30, %v4785_v30  ;;  %v5309_v30 = vld [vmem:[%s9124_s3] sm:$0x4] }
 0x8d6   : > { %v6006_v9 = vpop.f32.mrb[40].mxu0 }
 0x8d7   : > { %v6034_v47 = vpop.f32.mrb[40].mxu1  ;;  %v6007_v38 = vpop.f32.mrb[41].mxu0 }
 0x8d8   : > { %v6008_v4 = vadd.f32 %v6007_v38, %v6006_v9  ;;  %v6035_v29 = vpop.f32.mrb[41].mxu1  ;;  %v6009_v18 = vpop.f32.mrb[42].mxu0  ;;  %v4791_v9 = vrot.slane %v4786_v61, %v6602_v51  ;;  %v4637_v61 = vld [vmem:[%s9124_s3] sm:$0x2] }
 0x8d9   : > { %v6036_v19 = vadd.f32 %v6035_v29, %v6034_v47  ;;  %v6037_v59 = vpop.f32.mrb[42].mxu1  ;;  %v6010_v39 = vpop.f32.mrb[43].mxu0  ;;  %v4800_v47 = vrot.slane %v4795_v46, %v6741_v2 }
 0x8da   : > { %v6011_v21 = vadd.f32 %v6010_v39, %v6009_v18  ;;  %v6038_v44 = vpop.f32.mrb[43].mxu1 }
 0x8db   : > { %v4457_v58 = vadd.f32 %v6036_v19, %v6008_v4  ;;  %v6039_v20 = vadd.f32 %v6038_v44, %v6037_v59 }
 0x8dd   : > { %v4460_v14 = vadd.f32 %v6039_v20, %v6011_v21 }
 0x8df   : > { %v4471_v40 = vpack.c.bf16 %v4460_v14, %v4457_v58  ;;  %v5964_v58 = vld [vmem:[%s9122_s1 + $0xc0] sm:$0xf] }
 0x8e1   : > { %6096 = vmatpush3.bf16.msra.mxu0 %v4471_v40 }
 0x8e2   : > { %6097 = vmatprep.subr.bf16.mxu0 %v6434_v42 }
 0x998   : > { %v6012_v10 = vpop.f32.mrb[44].mxu0  ;;  %v6040_v49 = vpop.f32.mrb[44].mxu1 }
 0x999   : > { %v6013_v37 = vpop.f32.mrb[45].mxu0  ;;  %v6041_v56 = vpop.f32.mrb[45].mxu1 }
 0x99a   : > { %v6014_v53 = vadd.f32 %v6013_v37, %v6012_v10  ;;  %v6042_v34 = vadd.f32 %v6041_v56, %v6040_v49  ;;  %v6015_v26 = vpop.f32.mrb[46].mxu0  ;;  %v6043_v3 = vpop.f32.mrb[46].mxu1  ;;  %v4865_v56 = vld [vmem:[%s9124_s3 + $0x4] sm:$0x1] }
 0x99b   : > { %v6016_v62 = vpop.f32.mrb[47].mxu0  ;;  %v6044_v15 = vpop.f32.mrb[47].mxu1 }
 0x99c   : > { %v4465_v22 = vadd.f32 %v6042_v34, %v6014_v53  ;;  %v6017_v25 = vadd.f32 %v6016_v62, %v6015_v26  ;;  %v6045_v23 = vadd.f32 %v6044_v15, %v6043_v3  ;;  %v4878_v53 = vshrl.u32 %v4865_v56, 16  ;;  %v4890_v34 = vld [vmem:[%s9124_s3 + $0x4] sm:$0x2] }
 0x99d   : > { %v4903_v3 = vshrl.u32 %v4890_v34, 16  ;;  %v4867_v62 = vpack.i.b16 %v4865_v56, %v4865_v56 }
 0x99e   : > { %v4468_v48 = vadd.f32 %v6045_v23, %v6017_v25  ;;  %v4879_v26 = vpack.i.b16 %v4878_v53, %v4878_v53  ;;  %v4915_v25 = vld [vmem:[%s9124_s3 + $0x4] sm:$0x4]  ;;  %v8873_v23 = vld [vmem:[%s9124_s3] sm:$0x1] }
 0x9a0   : > { %v4472_v57 = vpack.c.bf16 %v4468_v48, %v4465_v22  ;;  %v4884_v15 = vrot.slane %v4879_v26, %v6602_v51  ;;  %v4904_v22 = vpack.i.b16 %v4903_v3, %v4903_v3  ;;  %v4872_v48 = vrot.slane %v4867_v62, %v6602_v51 }
 0x9a1   : > { %v4614_v3 = vpack.i.b16 %v8873_v23, %v8873_v23 }
 0x9a2   : > { %6098 = vmatpush3.bf16.msra.mxu0 %v4472_v57  ;;  %v4892_v57 = vpack.i.b16 %v4890_v34, %v4890_v34 }
 0x9a3   : > { %6099 = vmatprep.subr.bf16.mxu0 %v6434_v42 }
 0x9a6   : > { %6100 = vmatpush3.bf16.msra.mxu0 %v9300_v24 }
 0x9a7   : > { %6113 = vmatprep.subr.bf16.mxu0 %v6434_v42 }
 0x9a9   : > { %6102 = vmatmul.mubr.msk.bf16.vlgmr.msra.gmra.mrb[48].mxu0 %vm4481_vm0, %v6397_v33  ;;  %v4940_v33 = vld [vmem:[%s9124_s3 + $0x4] sm:$0x8] }
 0x9aa   : > { %6123 = vmatprep.mubr.msk.bf16.mxu0 %vm6435_vm13, %v6434_v42 }
 0xa7c   : > { %v4519_v0 = vpop.f32.mrb[48].mxu0 }
 0xa7d   : > { %v4526_v60 = vmul.f32 0.1, %v4519_v0  ;;  %v6103_v11 = vpop.f32.mrb[49].mxu0 }
 0xa7e   : > { %v4522_v16 = vpop.f32.mrb[50].mxu0  ;;  %v4953_v11 = vshrl.u32 %v4940_v33, 16 }
 0xa7f   : > { %v4527_v13 = vmul.f32 0.1, %v4522_v16  ;;  %v6104_v1 = vpop.f32.mrb[51].mxu0  ;;  %v4528_v12 = vmax.f32 %v4519_v0, %v4526_v60  ;;  %v4917_v60 = vpack.i.b16 %v4915_v25, %v4915_v25 }
 0xa80   : > { %v4928_v1 = vshrl.u32 %v4915_v25, 16 }
 0xa81   : > { %v4529_v28 = vmax.f32 %v4522_v16, %v4527_v13  ;;  %v4909_v13 = vrot.slane %v4904_v22, %v6717_v5 }
 0xa82   : > { %v4929_v31 = vpack.i.b16 %v4928_v1, %v4928_v1 }
 0xa83   : > { %v4530_v54 = vpack.c.bf16 %v4529_v28, %v4528_v12  ;;  %v4625_v12 = vshrl.u32 %v8873_v23, 16  ;;  %v5299_v28 = vld [vmem:[%s9124_s3] sm:$0x2]  ;;  %v4687_v23 = vld [vmem:[%s9124_s3] sm:$0x8] }
 0xa84   : > { %v5301_v27 = vshrl.u32 %v5299_v28, 16  ;;  %v4689_v28 = vpack.i.b16 %v4687_v23, %v4687_v23 }
 0xa85   : > { %6105 = vmatprep.subr.bf16.mxu1 %v4530_v54  ;;  %v4626_v46 = vpack.i.b16 %v4625_v12, %v4625_v12 }
 0xa86   : > { %6106 = vmatpush3.bf16.msra.mxu1 %v4530_v54 }
 0xa87   : > { %6107 = vmatprep.subr.bf16.mxu1 %v9300_v24 }
 0xa8a   : > { %6108 = vmatpush3.bf16.msra.mxu1 %v9300_v24 }
 0xa8b   : > { %6127 = vmatprep.subr.bf16.mxu1 %v6434_v42 }
 0xa8d   : > { %6110 = vmatmul.mubr.msk.bf16.vlgmr.msra.gmra.mrb[48].mxu1 %vm265_vm1, %v6399_v35 }
 0xa8e   : > { %6131 = vmatprep.mubr.msk.bf16.mxu1 %vm6435_vm13, %v6434_v42 }
 0xb60   : > { %v6111_v50 = vpop.f32.mrb[48].mxu1 }
 0xb61   : > { %v4586_v32 = vpop.f32.mrb[49].mxu1  ;;  %v4603_v41 = vmax.f32 %v6111_v50, 0.0  ;;  %v4897_v50 = vrot.slane %v4892_v57, %v6717_v5 }
 0xb62   : > { %v6112_v43 = vpop.f32.mrb[50].mxu1  ;;  %v4601_v17 = vmax.f32 %v4586_v32, 0.0  ;;  %v4942_v32 = vpack.i.b16 %v4940_v33, %v4940_v33 }
 0xb63   : > { %v4604_v52 = vmax.f32 %v6112_v43, 0.0  ;;  %v4589_v6 = vpop.f32.mrb[51].mxu1 }
 0xb64   : > { %v4602_v8 = vmax.f32 %v4589_v6, 0.0  ;;  %v4954_v6 = vpack.i.b16 %v4953_v11, %v4953_v11 }
 0xb65   : > { %v8796_v63 = vpack.c.bf16 %v4604_v52, %v4603_v41  ;;  %v4922_v52 = vrot.slane %v4917_v60, %v6678_v36  ;;  %v4619_v60 = vrot.slane %v4614_v3, %v6602_v51 }
 0xb66   : > { %v8798_v55 = vpack.c.bf16 %v4602_v8, %v4601_v17 }
 0xb68   : > { %4621 = vrot.lane.b32.xlu0 %v8798_v55, %s6436_s26  ;;  %4683 = vrot.lane.b32.xlu1 %v8798_v55, %s6437_s15 }
 0xbda   : > { %v8812_v38 = vpop.permute.xlu0 %4621  ;;  %v8814_v4 = vpop.permute.xlu1 %4683 }
 0xbdb   : > { %v4792_v29 = vmul.bf16 %v4791_v9, %v8812_v38  ;;  %v4801_v18 = vmul.bf16 %v4800_v47, %v8814_v4 }
 0xbdd   : > { %v4803_v19 = vrot.slane %v4792_v29, 4  ;;  %v4805_v59 = vrot.slane %v4801_v18, 4  ;;  %v4947_v29 = vrot.slane %v4942_v32, %v6741_v2 }
 0xbdf   : > { %v4810_v39 = vsel %vm907_vm3, %v4805_v59, 1065369472  ;;  %v4807_v21 = vsel %vm907_vm3, %v4803_v19, %v8798_v55  ;;  %v4959_v59 = vrot.slane %v4954_v6, %v6741_v2 }
 0xbe0   : > { %6128 = vmatpush3.bf16.msra.mxu1 %v4807_v21  ;;  %v4816_v44 = vand.u32 %v4810_v39, %v9299_v45  ;;  %v5311_v39 = vpack.i.b16 %v5309_v30, %v5309_v30  ;;  %v4650_v21 = vshrl.u32 %v4637_v61, 16 }
 0xbe1   : > { %6129 = vmatprep.subr.bf16.mxu1 %v6434_v42 }
 0xbe2   : > { %v5316_v34 = vrot.slane %v5311_v39, %v6678_v36  ;;  %v4651_v26 = vpack.i.b16 %v4650_v21, %v4650_v21 }
 0xbe4   : > { %6130 = vmatpush3.bf16.msra.mxu1 %v4816_v44 }
 0xbe5   : > { %6135 = vmatprep.subr.bf16.mxu1 %v6434_v42 }
 0xbe7   : > { %6132 = vmatmul.mubr.msk.bf16.vlgmr.msra.gmra.mrb[52].mxu1 %vm1217_vm12, %v5964_v58 }
 0xbe8   : > { %6145 = vmatprep.mubr.msk.bf16.mxu1 %vm6435_vm13, %v6434_v42 }
 0xcba   : > { %v4852_v20 = vpop.f32.mrb[52].mxu1 }
 0xcbb   : > { %v4858_v14 = vmax.f32 %v4852_v20, 0.0  ;;  %v6133_v40 = vpop.f32.mrb[53].mxu1  ;;  %v4934_v20 = vrot.slane %v4929_v31, %v6678_v36 }
 0xcbc   : > { %v4855_v10 = vpop.f32.mrb[54].mxu1  ;;  %v4631_v40 = vrot.slane %v4626_v46, %v6602_v51 }
 0xcbd   : > { %v8830_v49 = vpack.c.bf16 %v4858_v14, %v4858_v14  ;;  %v6134_v37 = vpop.f32.mrb[55].mxu1  ;;  %v5302_v14 = vpack.i.b16 %v5301_v27, %v5301_v27  ;;  %v5966_v27 = vld [vmem:[%s9122_s1 + $0xd0] sm:$0xf] }
 0xcbe   : > { %v4632_v57 = vmul.bf16 %v4631_v40, %v8812_v38 }
 0xcbf   : > { %4861 = vrot.lane.b32.xlu1 %v8830_v49, %s6438_s12  ;;  %4874 = vrot.lane.b32.xlu0 %v8830_v49, %s6439_s27  ;;  %v5307_v25 = vrot.slane %v5302_v14, %v6717_v5  ;;  %v5058_v14 = vld [vmem:[%s9124_s3] sm:$0x4] }
 0xcc3   : > { %4886 = vrot.lane.b32.xlu1 %v8830_v49, %s6440_s25  ;;  %4899 = vrot.lane.b32.xlu0 %v8830_v49, %s6425_s8 }
 0xcc7   : > { %4936 = vrot.lane.b32.xlu1 %v8830_v49, %s6441_s13  ;;  %4911 = vrot.lane.b32.xlu0 %v8830_v49, %s6420_s24 }
 0xccb   : > { %4949 = vrot.lane.b32.xlu1 %v8830_v49, %s6442_s9  ;;  %4924 = vrot.lane.b32.xlu0 %v8830_v49, %s6443_s14 }
 0xccf   : > { %5054 = vrot.lane.b32.xlu1 %v8796_v63, %s6413_s28  ;;  %5040 = vrot.lane.b32.xlu0 %v8796_v63, %s6414_s29 }
 0xcd3   : > { %4646 = vrot.lane.b32.xlu1 %v8798_v55, %s6414_s29  ;;  %4608 = vrot.lane.b32.xlu0 %v8798_v55, %s6444_s30  ;;  %s6449_s29 = smov 35  }
 0xcd7   : > { %4658 = vrot.lane.b32.xlu1 %v8798_v55, %s6413_s28  ;;  %4633 = vrot.lane.b32.xlu0 %v8798_v55, %s6445_s16  ;;  %s6450_s28 = smov 88   ;;  %s9301_s16 = sshll.u32 %s9303_s19, 5 }
 0xcdb   : > { %4696 = vrot.lane.b32.xlu1 %v8798_v55, %s6446_s17  ;;  %4671 = vrot.lane.b32.xlu0 %v8798_v55, %s6447_s21  ;;  %s224_s21 = scalar_lea.vmem %s9126_s5, %s9301_s16 }
 0xd31   : > { %v4862_v7 = vpop.permute.xlu1 %4861  ;;  %v4875_v0 = vpop.permute.xlu0 %4874 }
 0xd32   : > { %v4885_v16 = vmul.bf16 %v4884_v15, %v4875_v0  ;;  %v4873_v54 = vmul.bf16 %v4872_v48, %v4862_v7  ;;  %v4662_v48 = vld [vmem:[%s9124_s3] sm:$0x4] }
 0xd33   : > { %v4664_v11 = vpack.i.b16 %v4662_v48, %v4662_v48 }
 0xd34   : > { %v4962_v35 = vrot.slane %v4885_v16, 4  ;;  %v4639_v16 = vpack.i.b16 %v4637_v61, %v4637_v61  ;;  %v5044_v61 = vld [vmem:[%s9124_s3] sm:$0x2] }
 0xd35   : > { %v4887_v43 = vpop.permute.xlu1 %4886  ;;  %v4900_v41 = vpop.permute.xlu0 %4899  ;;  %v4669_v6 = vrot.slane %v4664_v11, %v6678_v36 }
 0xd36   : > { %v4910_v17 = vmul.bf16 %v4909_v13, %v4900_v41  ;;  %v4971_v8 = vsel %vm907_vm3, %v4873_v54, %v4962_v35  ;;  %v4898_v9 = vmul.bf16 %v4897_v50, %v4887_v43  ;;  %v4700_v54 = vshrl.u32 %v4687_v23, 16 }
 0xd37   : > { %6136 = vmatpush3.bf16.msra.mxu1 %v4971_v8  ;;  %v4675_v35 = vshrl.u32 %v4662_v48, 16  ;;  %v4709_v50 = vrot.slane %v4632_v57, 4  ;;  %v4644_v30 = vrot.slane %v4639_v16, %v6717_v5 }
 0xd38   : > { %v4964_v47 = vrot.slane %v4910_v17, 4  ;;  %6137 = vmatprep.subr.bf16.mxu1 %v6434_v42 }
 0xd39   : > { %v4937_v18 = vpop.permute.xlu1 %4936  ;;  %v4912_v19 = vpop.permute.xlu0 %4911 }
 0xd3a   : > { %v4923_v44 = vmul.bf16 %v4922_v52, %v4912_v19  ;;  %v4975_v58 = vsel %vm907_vm3, %v4898_v9, %v4964_v47  ;;  %v4948_v10 = vmul.bf16 %v4947_v29, %v4937_v18  ;;  %v4701_v9 = vpack.i.b16 %v4700_v54, %v4700_v54 }
 0xd3b   : > { %6138 = vmatpush3.bf16.msra.mxu1 %v4975_v58  ;;  %v4676_v47 = vpack.i.b16 %v4675_v35, %v4675_v35  ;;  %v4694_v29 = vrot.slane %v4689_v28, %v6741_v2 }
 0xd3c   : > { %v4966_v37 = vrot.slane %v4923_v44, 4  ;;  %6139 = vmatprep.subr.bf16.mxu1 %v6434_v42  ;;  %v4968_v33 = vrot.slane %v4948_v10, 4  ;;  %v4706_v10 = vrot.slane %v4701_v9, %v6741_v2 }
 0xd3d   : > { %v4950_v56 = vpop.permute.xlu1 %4949  ;;  %v4925_v53 = vpop.permute.xlu0 %4924  ;;  %v4695_v3 = vmul.bf16 %v4694_v29, %v8814_v4 }
 0xd3e   : > { %v4960_v62 = vmul.bf16 %v4959_v59, %v4950_v56  ;;  %v4935_v15 = vmul.bf16 %v4934_v20, %v4925_v53  ;;  %v4979_v22 = vsel %vm907_vm3, %v8830_v49, %v4966_v37  ;;  %v4656_v49 = vrot.slane %v4651_v26, %v6717_v5 }
 0xd3f   : > { %6140 = vmatpush3.bf16.msra.mxu1 %v4979_v22  ;;  %v5046_v20 = vshrl.u32 %v5044_v61, 16  ;;  %v4681_v37 = vrot.slane %v4676_v47, %v6678_v36 }
 0xd40   : > { %6141 = vmatprep.subr.bf16.mxu1 %v6434_v42  ;;  %v4986_v13 = vsel %vm907_vm3, %v4960_v62, 1065369472  ;;  %v4983_v12 = vsel %vm907_vm3, %v4935_v15, %v4968_v33  ;;  %v5060_v62 = vpack.i.b16 %v5058_v14, %v5058_v14  ;;  %v5972_v15 = vld [vmem:[%s9122_s1 + $0x100] sm:$0xf]  ;;  %v4715_v33 = vrot.slane %v4695_v3, 4 }
 0xd41   : > { %v8914_v7 = vpop.permute.xlu1 %5054  ;;  %v8916_v0 = vpop.permute.xlu0 %5040  ;;  %v4992_v32 = vand.u32 %v4986_v13, %v9299_v45  ;;  %v5047_v22 = vpack.i.b16 %v5046_v20, %v5046_v20  ;;  %v5962_v13 = vld [vmem:[%s9122_s1 + $0xb0] sm:$0xf] }
 0xd42   : > { %v5317_v38 = vmul.bf16 %v5316_v34, %v8914_v7  ;;  %v5308_v1 = vmul.bf16 %v5307_v25, %v8916_v0  ;;  %v5065_v4 = vrot.slane %v5060_v62, %v6678_v36  ;;  %v5128_v62 = vld [vmem:[%s9124_s3 + $0x4] sm:$0x1] }
 0xd43   : > { %6142 = vmatpush3.bf16.msra.mxu1 %v4983_v12  ;;  %v5052_v23 = vrot.slane %v5047_v22, %v6717_v5  ;;  %v5141_v22 = vshrl.u32 %v5128_v62, 16 }
 0xd44   : > { %6143 = vmatprep.subr.bf16.mxu1 %v6434_v42  ;;  %v5321_v43 = vrot.slane %v5317_v38, 4  ;;  %v5319_v17 = vrot.slane %v5308_v1, 4  ;;  %v5066_v11 = vmul.bf16 %v5065_v4, %v8914_v7  ;;  %v5067_v38 = vrot.slane %v8796_v63, 4 }
 0xd45   : > { %v4647_v41 = vpop.permute.xlu1 %4646  ;;  %v4609_v52 = vpop.permute.xlu0 %4608  ;;  %v5053_v16 = vmul.bf16 %v5052_v23, %v8916_v0  ;;  %v5968_v0 = vld [vmem:[%s9122_s1 + $0xe0] sm:$0xf]  ;;  %v5130_v4 = vpack.i.b16 %v5128_v62, %v5128_v62 }
 0xd46   : > { %v4657_v8 = vmul.bf16 %v4656_v49, %v4647_v41  ;;  %v4620_v31 = vmul.bf16 %v4619_v60, %v4609_v52  ;;  %v5327_v18 = vsel %vm907_vm3, %v5321_v43, 1065369472  ;;  %v5324_v58 = vsel %vm907_vm3, %v5319_v17, %v8796_v63 }
 0xd47   : > { %6144 = vmatpush3.bf16.msra.mxu1 %v4992_v32  ;;  %v5333_v53 = vand.u32 %v5327_v18, %v9299_v45  ;;  %v5073_v1 = vsel %vm907_vm3, %v5066_v11, 1065369472  ;;  %v5070_v12 = vsel %vm907_vm3, %v5053_v16, %v5067_v38 }
 0xd48   : > { %v4718_v46 = vsel %vm907_vm3, %v4620_v31, %v4709_v50  ;;  %6171 = vmatprep.subr.bf16.mxu1 %v6434_v42  ;;  %v4711_v39 = vrot.slane %v4657_v8, 4  ;;  %v5079_v7 = vand.u32 %v5073_v1, %v9299_v45 }
 0xd49   : > { %v4659_v19 = vpop.permute.xlu1 %4658  ;;  %v4634_v59 = vpop.permute.xlu0 %4633  ;;  %6114 = vmatpush3.bf16.msra.mxu0 %v4718_v46 }
 0xd4a   : > { %v4670_v21 = vmul.bf16 %v4669_v6, %v4659_v19  ;;  %v4645_v44 = vmul.bf16 %v4644_v30, %v4634_v59  ;;  %6146 = vmatmul.mubr.msk.bf16.vlgmr.msra.gmra.mrb[56].mxu1 %vm982_vm11, %v5966_v27  ;;  %6115 = vmatprep.subr.bf16.mxu0 %v6434_v42 }
 0xd4b   : > { %6172 = vmatpush3.bf16.msra.mxu1 %v5324_v58  ;;  %6175 = vmatprep.mubr.msk.bf16.mxu1 %vm6435_vm13, %v6434_v42 }
 0xd4c   : > { %v4713_v40 = vrot.slane %v4670_v21, 4  ;;  %v4722_v56 = vsel %vm907_vm3, %v4645_v44, %v4711_v39  ;;  %6173 = vmatprep.subr.bf16.mxu1 %v6434_v42  ;;  %v5382_v39 = vld [vmem:[%s9124_s3] sm:$0x1]  ;;  %v5396_v44 = vld [vmem:[%s9124_s3] sm:$0x8] }
 0xd4d   : > { %v4697_v34 = vpop.permute.xlu1 %4696  ;;  %v4672_v26 = vpop.permute.xlu0 %4671  ;;  %6116 = vmatpush3.bf16.msra.mxu0 %v4722_v56  ;;  %v5384_v21 = vshrl.u32 %v5382_v39, 16  ;;  %v5398_v20 = vpack.i.b16 %v5396_v44, %v5396_v44 }
 0xd4e   : > { %6117 = vmatprep.subr.bf16.mxu0 %v6434_v42  ;;  %v4707_v25 = vmul.bf16 %v4706_v10, %v4697_v34  ;;  %v4682_v48 = vmul.bf16 %v4681_v37, %v4672_v26  ;;  %v4726_v57 = vsel %vm907_vm3, %v8798_v55, %v4713_v40 }
 0xd4f   : > { %6174 = vmatpush3.bf16.msra.mxu1 %v5333_v53  ;;  %v5385_v58 = vpack.i.b16 %v5384_v21, %v5384_v21  ;;  %v5403_v40 = vrot.slane %v5398_v20, %v6741_v2 }
 0xd50   : > { %6179 = vmatprep.subr.bf16.mxu1 %v6434_v42  ;;  %v4733_v49 = vsel %vm907_vm3, %v4707_v25, 1065369472  ;;  %v4730_v60 = vsel %vm907_vm3, %v4682_v48, %v4715_v33  ;;  %v5974_v25 = vld [vmem:[%s9122_s1 + $0x110] sm:$0xf]  ;;  %v5142_v48 = vpack.i.b16 %v5141_v22, %v5141_v22 }
 0xd51   : > { %6118 = vmatpush3.bf16.msra.mxu0 %v4726_v57  ;;  %v4739_v55 = vand.u32 %v4733_v49, %v9299_v45  ;;  %v5390_v14 = vrot.slane %v5385_v58, %v6602_v51  ;;  %v5153_v57 = vld [vmem:[%s9124_s3 + $0x4] sm:$0x2] }
 0xd52   : > { %6176 = vmatmul.mubr.msk.bf16.vlgmr.msra.gmra.mrb[60].mxu1 %vm1217_vm12, %v5972_v15  ;;  %6119 = vmatprep.subr.bf16.mxu0 %v6434_v42  ;;  %v5147_v33 = vrot.slane %v5142_v48, %v6602_v51  ;;  %v5166_v23 = vshrl.u32 %v5153_v57, 16 }
 0xd53   : > { %6183 = vmatprep.mubr.msk.bf16.mxu1 %vm6435_vm13, %v6434_v42 }
 0xd54   : > { %v5167_v11 = vpack.i.b16 %v5166_v23, %v5166_v23 }
 0xd55   : > { %6120 = vmatpush3.bf16.msra.mxu0 %v4730_v60 }
 0xd56   : > { %6121 = vmatprep.subr.bf16.mxu0 %v6434_v42  ;;  %v5172_v1 = vrot.slane %v5167_v11, %v6717_v5 }
 0xd59   : > { %6122 = vmatpush3.bf16.msra.mxu0 %v4739_v55  ;;  %v5135_v55 = vrot.slane %v5130_v4, %v6602_v51 }
 0xd5a   : > { %6149 = vmatprep.subr.bf16.mxu0 %v6434_v42 }
 0xd5c   : > { %6124 = vmatmul.mubr.msk.bf16.vlgmr.msra.gmra.mrb[52].mxu0 %vm982_vm11, %v5962_v13 }
 0xd5d   : > { %6150 = vmatpush3.bf16.msra.mxu0 %v5070_v12  ;;  %6153 = vmatprep.mubr.msk.bf16.mxu0 %vm6435_vm13, %v6434_v42  ;;  %v5155_v12 = vpack.i.b16 %v5153_v57, %v5153_v57 }
 0xd5e   : > { %6151 = vmatprep.subr.bf16.mxu0 %v6434_v42 }
 0xd61   : > { %6152 = vmatpush3.bf16.msra.mxu0 %v5079_v7  ;;  %v5178_v7 = vld [vmem:[%s9124_s3 + $0x4] sm:$0x4] }
 0xd62   : > { %6157 = vmatprep.subr.bf16.mxu0 %v6434_v42 }
 0xd64   : > { %6154 = vmatmul.mubr.msk.bf16.vlgmr.msra.gmra.mrb[56].mxu0 %vm1217_vm12, %v5968_v0 }
 0xd65   : > { %6167 = vmatprep.mubr.msk.bf16.mxu0 %vm6435_vm13, %v6434_v42 }
 0xe1d   : > { %v5028_v63 = vpop.f32.mrb[56].mxu1 }
 0xe1e   : > { %v5034_v28 = vpack.c.bf16 %v5028_v63, %v5028_v63  ;;  %v6147_v54 = vpop.f32.mrb[57].mxu1 }
 0xe1f   : > { %v5031_v35 = vpop.f32.mrb[58].mxu1  ;;  %v5160_v54 = vrot.slane %v5155_v12, %v6717_v5 }
 0xe20   : > { %v5036_v50 = vrot.slane %v5034_v28, 4  ;;  %v6148_v32 = vpop.f32.mrb[59].mxu1  ;;  %v5180_v35 = vpack.i.b16 %v5178_v7, %v5178_v7 }
 0xe22   : > { %5038 = vst [vmem:[#allocation3] sm:$0xf0] %v5036_v50  ;;  %v5203_v50 = vld [vmem:[%s9124_s3 + $0x4] sm:$0x8] }
 0xe25   : > { %v5369_v43 = vpop.f32.mrb[60].mxu1 }
 0xe26   : > { %v5375_v41 = vmax.f32 %v5369_v43, 0.0  ;;  %v6177_v52 = vpop.f32.mrb[61].mxu1 }
 0xe27   : > { %v5372_v6 = vpop.f32.mrb[62].mxu1  ;;  %v5185_v52 = vrot.slane %v5180_v35, %v6678_v36 }
 0xe28   : > { %v5376_v17 = vpack.c.bf16 %v5375_v41, %v5375_v41  ;;  %v6178_v8 = vpop.f32.mrb[63].mxu1  ;;  %v5205_v6 = vpack.i.b16 %v5203_v50, %v5203_v50 }
 0xe2a   : > { %5378 = vrot.lane.b32.xlu0 %v5376_v17, %s6436_s26  ;;  %5392 = vrot.lane.b32.xlu1 %v5376_v17, %s6437_s15  ;;  %v5405_v56 = vrot.slane %v5376_v17, 4  ;;  %v5191_v17 = vshrl.u32 %v5178_v7, 16  ;;  %s6451_s26 = smov 93  }
 0xe2f   : > { %v4775_v31 = vpop.f32.mrb[52].mxu0 }
 0xe30   : > { %v4781_v30 = vpack.c.bf16 %v4775_v31, %v4775_v31  ;;  %v6125_v27 = vpop.f32.mrb[53].mxu0 }
 0xe31   : > { %v4778_v61 = vpop.f32.mrb[54].mxu0  ;;  %v5210_v27 = vrot.slane %v5205_v6, %v6741_v2 }
 0xe32   : > { %4782 = vst [vmem:[#allocation3] sm:$0xf] %v4781_v30  ;;  %v6126_v46 = vpop.f32.mrb[55].mxu0  ;;  %v5192_v61 = vpack.i.b16 %v5191_v17, %v5191_v17 }
 0xe33   : > { %v5216_v46 = vshrl.u32 %v5203_v50, 16 }
 0xe35   : > { %v5217_v39 = vpack.i.b16 %v5216_v46, %v5216_v46 }
 0xe37   : > { %v5115_v9 = vpop.f32.mrb[56].mxu0  ;;  %v5222_v20 = vrot.slane %v5217_v39, %v6741_v2 }
 0xe38   : > { %v5121_v47 = vmax.f32 %v5115_v9, 0.0  ;;  %v6155_v29 = vpop.f32.mrb[57].mxu0 }
 0xe39   : > { %v5118_v18 = vpop.f32.mrb[58].mxu0 }
 0xe3a   : > { %v8993_v19 = vpack.c.bf16 %v5121_v47, %v5121_v47  ;;  %v6156_v59 = vpop.f32.mrb[59].mxu0  ;;  %v5197_v18 = vrot.slane %v5192_v61, %v6678_v36 }
 0xe3c   : > { %5137 = vrot.lane.b32.xlu1 %v8993_v19, %s6439_s27 }
 0xe40   : > { %5124 = vrot.lane.b32.xlu1 %v8993_v19, %s6438_s12 }
 0xe44   : > { %5162 = vrot.lane.b32.xlu1 %v8993_v19, %s6425_s8 }
 0xe48   : > { %5149 = vrot.lane.b32.xlu1 %v8993_v19, %s6440_s25 }
 0xe4c   : > { %5174 = vrot.lane.b32.xlu1 %v8993_v19, %s6420_s24 }
 0xe50   : > { %5199 = vrot.lane.b32.xlu1 %v8993_v19, %s6441_s13 }
 0xe54   : > { %5187 = vrot.lane.b32.xlu1 %v8993_v19, %s6443_s14 }
 0xe58   : > { %5212 = vrot.lane.b32.xlu1 %v8993_v19, %s6442_s9 }
 0xe9c   : > { %v5379_v10 = vpop.permute.xlu0 %5378  ;;  %v5393_v37 = vpop.permute.xlu1 %5392 }
 0xe9d   : > { %v5391_v53 = vmul.bf16 %v5390_v14, %v5379_v10  ;;  %v5404_v34 = vmul.bf16 %v5403_v40, %v5393_v37 }
 0xe9f   : > { %v5411_v26 = vsel %vm907_vm3, %v5404_v34, 1065369472  ;;  %v5408_v3 = vsel %vm907_vm3, %v5391_v53, %v5405_v56  ;;  %v5640_v56 = vld [vmem:[#allocation3] sm:$0xff]  ;;  %v5970_v53 = vld [vmem:[%s9122_s1 + $0xf0] sm:$0xf] }
 0xea0   : > { %6180 = vmatpush3.bf16.msra.mxu1 %v5408_v3  ;;  %v5417_v15 = vand.u32 %v5411_v26, %v9299_v45 }
 0xea1   : > { %6181 = vmatprep.subr.bf16.mxu1 %v6434_v42 }
 0xea4   : > { %6182 = vmatpush3.bf16.msra.mxu1 %v5417_v15 }
 0xea5   : > { %6187 = vmatprep.subr.bf16.mxu1 %v6434_v42 }
 0xea7   : > { %6184 = vmatmul.mubr.msk.bf16.vlgmr.msra.gmra.mrb[64].mxu1 %vm1217_vm12, %v5974_v25  ;;  %v5466_v25 = vld [vmem:[%s9124_s3 + $0x8] sm:$0x1] }
 0xea8   : > { %6197 = vmatprep.mubr.msk.bf16.mxu1 %vm6435_vm13, %v6434_v42  ;;  %v5479_v48 = vshrl.u32 %v5466_v25, 16  ;;  %v5468_v23 = vpack.i.b16 %v5466_v25, %v5466_v25 }
 0xeaa   : > { %v5480_v57 = vpack.i.b16 %v5479_v48, %v5479_v48  ;;  %v5473_v11 = vrot.slane %v5468_v23, %v6602_v51  ;;  %v6401_v48 = vld [vmem:[%s9122_s1 + $0x138] sm:$0xff]  }
 0xeac   : > { %v5485_v4 = vrot.slane %v5480_v57, %v6602_v51  ;;  %v5541_v51 = vld [vmem:[%s9124_s3 + $0x8] sm:$0x8] }
 0xead   : > { %v5543_v6 = vpack.i.b16 %v5541_v51, %v5541_v51  ;;  %v5554_v61 = vshrl.u32 %v5541_v51, 16 }
 0xeae   : > { %v5138_v49 = vpop.permute.xlu1 %5137 }
 0xeaf   : > { %v5148_v60 = vmul.bf16 %v5147_v33, %v5138_v49  ;;  %v5491_v33 = vld [vmem:[%s9124_s3 + $0x8] sm:$0x2] }
 0xeb0   : > { %v5504_v49 = vshrl.u32 %v5491_v33, 16  ;;  %v5493_v7 = vpack.i.b16 %v5491_v33, %v5491_v33 }
 0xeb1   : > { %v5225_v16 = vrot.slane %v5148_v60, 4 }
 0xeb2   : > { %v5125_v13 = vpop.permute.xlu1 %5124  ;;  %v5498_v50 = vrot.slane %v5493_v7, %v6717_v5 }
 0xeb3   : > { %v5136_v38 = vmul.bf16 %v5135_v55, %v5125_v13 }
 0xeb5   : > { %v5234_v0 = vsel %vm907_vm3, %v5136_v38, %v5225_v16  ;;  %v5505_v16 = vpack.i.b16 %v5504_v49, %v5504_v49 }
 0xeb6   : > { %v5163_v63 = vpop.permute.xlu1 %5162  ;;  %6158 = vmatpush3.bf16.msra.mxu0 %v5234_v0  ;;  %v5516_v0 = vld [vmem:[%s9124_s3 + $0x8] sm:$0x4] }
 0xeb7   : > { %v5173_v28 = vmul.bf16 %v5172_v1, %v5163_v63  ;;  %6159 = vmatprep.subr.bf16.mxu0 %v6434_v42  ;;  %v5510_v12 = vrot.slane %v5505_v16, %v6717_v5  ;;  %v5529_v17 = vshrl.u32 %v5516_v0, 16  ;;  %v5548_v5 = vrot.slane %v5543_v6, %v6741_v2 }
 0xeb9   : > { %v5227_v32 = vrot.slane %v5173_v28, 4 }
 0xeba   : > { %v5150_v43 = vpop.permute.xlu1 %5149 }
 0xebb   : > { %v5161_v41 = vmul.bf16 %v5160_v54, %v5150_v43  ;;  %v5518_v54 = vpack.i.b16 %v5516_v0, %v5516_v0 }
 0xebd   : > { %v5238_v8 = vsel %vm907_vm3, %v5161_v41, %v5227_v32  ;;  %v5523_v43 = vrot.slane %v5518_v54, %v6678_v36 }
 0xebe   : > { %v5175_v31 = vpop.permute.xlu1 %5174  ;;  %6160 = vmatpush3.bf16.msra.mxu0 %v5238_v8 }
 0xebf   : > { %v5186_v30 = vmul.bf16 %v5185_v52, %v5175_v31  ;;  %6161 = vmatprep.subr.bf16.mxu0 %v6434_v42 }
 0xec1   : > { %v5229_v9 = vrot.slane %v5186_v30, 4 }
 0xec2   : > { %v5200_v47 = vpop.permute.xlu1 %5199 }
 0xec3   : > { %v5211_v29 = vmul.bf16 %v5210_v27, %v5200_v47  ;;  %v5242_v59 = vsel %vm907_vm3, %v8993_v19, %v5229_v9  ;;  %v5530_v27 = vpack.i.b16 %v5529_v17, %v5529_v17 }
 0xec4   : > { %6162 = vmatpush3.bf16.msra.mxu0 %v5242_v59  ;;  %v5555_v59 = vpack.i.b16 %v5554_v61, %v5554_v61 }
 0xec5   : > { %v5231_v21 = vrot.slane %v5211_v29, 4  ;;  %6163 = vmatprep.subr.bf16.mxu0 %v6434_v42 }
 0xec6   : > { %v5188_v44 = vpop.permute.xlu1 %5187 }
 0xec7   : > { %v5198_v58 = vmul.bf16 %v5197_v18, %v5188_v44  ;;  %v5535_v18 = vrot.slane %v5530_v27, %v6678_v36 }
 0xec9   : > { %v5246_v14 = vsel %vm907_vm3, %v5198_v58, %v5231_v21  ;;  %v5560_v58 = vrot.slane %v5555_v59, %v6741_v2 }
 0xeca   : > { %v5213_v40 = vpop.permute.xlu1 %5212  ;;  %6164 = vmatpush3.bf16.msra.mxu0 %v5246_v14 }
 0xecb   : > { %v5223_v10 = vmul.bf16 %v5222_v20, %v5213_v40  ;;  %6165 = vmatprep.subr.bf16.mxu0 %v6434_v42 }
 0xecd   : > { %v5249_v37 = vsel %vm907_vm3, %v5223_v10, 1065369472 }
 0xece   : > { %v5255_v19 = vand.u32 %v5249_v37, %v9299_v45  ;;  %v5976_v37 = vld [vmem:[%s9122_s1 + $0x120] sm:$0xf] }
 0xed0   : > { %6166 = vmatpush3.bf16.msra.mxu0 %v5255_v19 }
 0xed1   : > { %6201 = vmatprep.subr.bf16.mxu0 %v5640_v56 }
 0xed3   : > { %6168 = vmatmul.mubr.msk.bf16.vlgmr.msra.gmra.mrb[60].mxu0 %vm982_vm11, %v5970_v53 }
 0xed4   : > { %6202 = vmatpush3.bf16.msra.mxu0 %v5640_v56 }
 0xf7a   : > { %v5453_v34 = vpop.f32.mrb[64].mxu1 }
 0xf7b   : > { %v5459_v26 = vmax.f32 %v5453_v34, 0.0  ;;  %v6185_v3 = vpop.f32.mrb[65].mxu1 }
 0xf7c   : > { %v5456_v62 = vpop.f32.mrb[66].mxu1 }
 0xf7d   : > { %v5460_v15 = vpack.c.bf16 %v5459_v26, %v5459_v26  ;;  %v6186_v22 = vpop.f32.mrb[67].mxu1 }
 0xf7f   : > { %5475 = vrot.lane.b32.xlu0 %v5460_v15, %s6448_s23 }
 0xf83   : > { %5462 = vrot.lane.b32.xlu0 %v5460_v15, %s6427_s10 }
 0xf87   : > { %5500 = vrot.lane.b32.xlu0 %v5460_v15, %s6431_s11 }
 0xf8b   : > { %5487 = vrot.lane.b32.xlu0 %v5460_v15, %s6449_s29 }
 0xf8f   : > { %5512 = vrot.lane.b32.xlu0 %v5460_v15, %s6428_s6 }
 0xf93   : > { %5537 = vrot.lane.b32.xlu0 %v5460_v15, %s6450_s28 }
 0xf97   : > { %5525 = vrot.lane.b32.xlu0 %v5460_v15, %s6451_s26 }
 0xf9b   : > { %5550 = vrot.lane.b32.xlu0 %v5460_v15, %s6424_s7 }
 0xfa6   : > { %v5291_v19 = vpop.f32.mrb[60].mxu0 }
 0xfa7   : > { %v5297_v2 = vpack.c.bf16 %v5291_v19, %v5291_v19  ;;  %v6169_v56 = vpop.f32.mrb[61].mxu0 }
 0xfa8   : > { %v5294_v53 = vpop.f32.mrb[62].mxu0 }
 0xfa9   : > { %5298 = vst [vmem:[#allocation3 + $0x8] sm:$0xf] %v5297_v2  ;;  %v6170_v34 = vpop.f32.mrb[63].mxu0 }
 0xff1   : > { %v5476_v60 = vpop.permute.xlu0 %5475 }
 0xff2   : > { %v5486_v55 = vmul.bf16 %v5485_v4, %v5476_v60 }
 0xff4   : > { %v5563_v38 = vrot.slane %v5486_v55, 4 }
 0xff5   : > { %v5463_v13 = vpop.permute.xlu0 %5462 }
 0xff6   : > { %v5474_v1 = vmul.bf16 %v5473_v11, %v5463_v13 }
 0xff8   : > { %v5572_v63 = vsel %vm907_vm3, %v5474_v1, %v5563_v38 }
 0xff9   : > { %v5501_v28 = vpop.permute.xlu0 %5500  ;;  %6188 = vmatpush3.bf16.msra.mxu1 %v5572_v63 }
 0xffa   : > { %v5511_v35 = vmul.bf16 %v5510_v12, %v5501_v28  ;;  %6189 = vmatprep.subr.bf16.mxu1 %v6434_v42 }
 0xffc   : > { %v5565_v41 = vrot.slane %v5511_v35, 4 }
 0xffd   : > { %v5488_v32 = vpop.permute.xlu0 %5487 }
 0xffe   : > { %v5499_v52 = vmul.bf16 %v5498_v50, %v5488_v32 }
0x1000   : > { %v5576_v8 = vsel %vm907_vm3, %v5499_v52, %v5565_v41 }
0x1001   : > { %6190 = vmatpush3.bf16.msra.mxu1 %v5576_v8  ;;  %v5513_v31 = vpop.permute.xlu0 %5512 }
0x1002   : > { %v5524_v30 = vmul.bf16 %v5523_v43, %v5513_v31  ;;  %6191 = vmatprep.subr.bf16.mxu1 %v6434_v42 }
0x1004   : > { %v5567_v46 = vrot.slane %v5524_v30, 4 }
0x1005   : > { %v5538_v9 = vpop.permute.xlu0 %5537 }
0x1006   : > { %v5549_v47 = vmul.bf16 %v5548_v5, %v5538_v9  ;;  %v5580_v29 = vsel %vm907_vm3, %v5460_v15, %v5567_v46 }
0x1007   : > { %6192 = vmatpush3.bf16.msra.mxu1 %v5580_v29 }
0x1008   : > { %6193 = vmatprep.subr.bf16.mxu1 %v6434_v42  ;;  %v5569_v21 = vrot.slane %v5549_v47, 4 }
0x1009   : > { %v5526_v39 = vpop.permute.xlu0 %5525 }
0x100a   : > { %v5536_v44 = vmul.bf16 %v5535_v18, %v5526_v39 }
0x100c   : > { %v5584_v20 = vsel %vm907_vm3, %v5536_v44, %v5569_v21 }
0x100d   : > { %6194 = vmatpush3.bf16.msra.mxu1 %v5584_v20  ;;  %v5551_v14 = vpop.permute.xlu0 %5550 }
0x100e   : > { %v5561_v40 = vmul.bf16 %v5560_v58, %v5551_v14  ;;  %6195 = vmatprep.subr.bf16.mxu1 %v6434_v42  ;;  %v6400_v42 = vld [vmem:[%s9122_s1 + $0x130] sm:$0xff]  }
0x100f   : > { %6207 = vmatprep.mubr.msk.bf16.mxu0 %vm4481_vm0, %v6400_v42 }
0x1010   : > { %v5587_v10 = vsel %vm907_vm3, %v5561_v40, 1065369472 }
0x1011   : > { %v5593_v36 = vand.u32 %v5587_v10, %v9299_v45 }
0x1013   : > { %6196 = vmatpush3.bf16.msra.mxu1 %v5593_v36 }
0x1016   : > { %6198 = vmatmul.mubr.msk.bf16.vlgmr.msra.gmra.mrb[68].mxu1 %vm982_vm11, %v5976_v37 }
0x10e9   : > { %v5629_v45 = vpop.f32.mrb[68].mxu1 }
0x10ea   : > { %v5635_v26 = vpack.c.bf16 %v5629_v45, %v5629_v45  ;;  %v6199_v3 = vpop.f32.mrb[69].mxu1 }
0x10eb   : > { %v5632_v62 = vpop.f32.mrb[70].mxu1 }
0x10ec   : > { %v5637_v15 = vrot.slane %v5635_v26, 4  ;;  %v6200_v22 = vpop.f32.mrb[71].mxu1 }
0x10ee   : > { %5639 = vst [vmem:[#allocation3 + $0x8] sm:$0xf0] %v5637_v15 }
0x10f5   : > { %v5641_v25 = vld [vmem:[#allocation3 + $0x8] sm:$0xff] }
0x10f6   : > { %6203 = vmatprep.subr.bf16.mxu0 %v5641_v25 }
0x10f7   : > { %6204 = vmatpush3.bf16.msra.mxu0 %v5641_v25 }
0x10f8   : > { %6205 = vmatprep.subr.bf16.mxu0 %v9300_v24 }
0x10fb   : > { %6206 = vmatpush3.bf16.msra.mxu0 %v9300_v24 }
0x10fe   : > { %6208 = vmatmul.mubr.msk.bf16.vlgmr.msra.gmra.mrb[64].mxu0 %vm4481_vm0, %v6401_v48 }
0x11d1   : > { %v6209_v57 = vpop.f32.mrb[64].mxu0 }
0x11d2   : > { %v5714_v33 = vmul.f32 0.1, %v6209_v57  ;;  %v5697_v4 = vpop.f32.mrb[65].mxu0 }
0x11d3   : > { %v5712_v23 = vmul.f32 0.1, %v5697_v4  ;;  %v6210_v49 = vpop.f32.mrb[66].mxu0 }
0x11d4   : > { %v5718_v60 = vmax.f32 %v6209_v57, %v5714_v33  ;;  %v5715_v55 = vmul.f32 0.1, %v6210_v49  ;;  %v5700_v11 = vpop.f32.mrb[67].mxu0 }
0x11d5   : > { %v5716_v16 = vmax.f32 %v5697_v4, %v5712_v23  ;;  %v5713_v13 = vmul.f32 0.1, %v5700_v11 }
0x11d6   : > { %5722 = vst [vmem:[%s224_s21 + $0x10] sm:$0xff] %v5718_v60  ;;  %v5719_v38 = vmax.f32 %v6210_v49, %v5715_v55 }
0x11d7   : > { %5720 = vst [vmem:[%s224_s21] sm:$0xff] %v5716_v16  ;;  %v5717_v24 = vmax.f32 %v5700_v11, %v5713_v13 }
0x11d8   : > { %5723 = vst [vmem:[%s224_s21 + $0x18] sm:$0xff] %v5719_v38 }
0x11d9   : > { %5721 = vst [vmem:[%s224_s21 + $0x8] sm:$0xff] %v5717_v24 }
0x11da PF: > { %s15_s18 = sadd.s32 1, %s6408_s18  }
0x11db   : > { %p12_p4 = scmp.ge.s32.totalorder %s15_s18, 4  }
0x11dd   :  { %14 = sbr.rel (!%p12_p4) target bundleno = 1 (0x1), region = 89 }

</bundles_post_ra>
